<compile_context>
chip_gen: v7x
topology: tpu7x:2x2x1
jax: 0.10.0
libtpu: 0.0.40
codegen_flags: <defaults>
</compile_context>

<pallas_src>
import functools

import jax
import jax.numpy as jnp
from jax.experimental import pallas as pl
from jax.experimental.pallas import tpu as pltpu


# ----------------------------------------------------------------------------
# helpers
# ----------------------------------------------------------------------------
def _layer_norm(x, gamma, beta, eps=1e-5):
    mean = jnp.mean(x, axis=-1, keepdims=True)
    var = jnp.mean(jnp.square(x - mean), axis=-1, keepdims=True)
    return (x - mean) * jax.lax.rsqrt(var + eps) * gamma + beta


def _bdot(a, b):
    """MXU matmul: bf16 operands, f32 accumulation."""
    return jnp.dot(a.astype(jnp.bfloat16), b.astype(jnp.bfloat16),
                   preferred_element_type=jnp.float32)


def _full_spec(arr):
    nd = arr.ndim
    return pl.BlockSpec(arr.shape, lambda b, _n=nd: (0,) * _n)


def _pick_block_batch(LB, Q, H):
    """Batch elements per grid step: fill MXU rows, bound the VMEM working set,
    keep >=2 parallel grid steps for the v7x dual TensorCore."""
    per_elem = 8 * Q * Q * H * 4                 # ~8 live f32 copies of edge slab
    nb = max(1, (16 * 1024 * 1024) // max(per_elem, 1))
    nb = min(nb, max(1, 128 // Q))               # node-path matmul M ~ 128 rows
    if LB >= 2:
        nb = min(nb, LB // 2)                    # expose >=2 parallel grid steps
    nb = max(1, min(nb, LB))
    if (nb * Q) % 8 != 0:                        # (8,128) sublane rule for blocks
        nb = LB                                  # single full block fallback
    return nb


# ----------------------------------------------------------------------------
# fused kernel: projections + dense edges + all GT layers + edge classifier
# ----------------------------------------------------------------------------
def fused_head_kernel(hs_ref,
                      w_proj_ref, b_proj_ref,
                      w_qkv_ref, w_e_ref,
                      w_oh_ref, b_oh_ref, w_oe_ref, b_oe_ref, ln1_ref,
                      w_f1h_ref, b_f1h_ref, w_f2h_ref, b_f2h_ref,
                      w_f1e_ref, b_f1e_ref, w_f2e_ref, b_f2e_ref, ln2_ref,
                      wc1_ref, bc1_ref, wc2_ref, bc2_ref, wc3_ref, bc3_ref,
                      out_ref, *, num_layers, hidden_dim, nb, q):
    H = hidden_dim
    Q = q
    NBQ = nb * Q
    M = nb * Q * Q
    inv_sqrt_d = 1.0 / float(H) ** 0.5

    # ---- input projections (e1 | e2 | node fused in one dot) ----
    x = hs_ref[...]                                               # (nb*Q, C) f32
    p = _bdot(x, w_proj_ref[...]) + b_proj_ref[...]               # (nb*Q, 3H)
    e1 = p[:, 0:H].reshape(nb, Q, H)
    e2 = p[:, H:2 * H].reshape(nb, Q, H)
    h = p[:, 2 * H:3 * H]                                         # (nb*Q, H)
    # edge_features == 'sum':  e[b, i, j, :] = e1[b, j, :] + e2[b, i, :]
    e = (e1[:, None, :, :] + e2[:, :, None, :]).reshape(M, H)     # (nb*Q*Q, H)

    # ---- graph-transformer layers (edge slab stays resident in VMEM) ----
    for l in range(num_layers):
        qkv = _bdot(h, w_qkv_ref[l])                              # (nb*Q, 3H)
        Qh = qkv[:, 0:H].reshape(nb, Q, H)
        Kh = qkv[:, H:2 * H].reshape(nb, Q, H)
        Vh = qkv[:, 2 * H:3 * H].reshape(nb, Q, H)
        Ee = _bdot(e, w_e_ref[l]).reshape(nb, Q, Q, H)

        # implicit attention with edge gating (f32 elementwise / reductions)
        s4 = (Qh[:, :, None, :] * Kh[:, None, :, :]) * inv_sqrt_d * Ee
        att = jnp.exp(jnp.clip(jnp.sum(s4, axis=-1), -5.0, 5.0))  # (nb, Q, Q)
        num = jnp.einsum('bij,bjh->bih', att.astype(jnp.bfloat16),
                         Vh.astype(jnp.bfloat16),
                         preferred_element_type=jnp.float32)      # (nb, Q, H)
        den = jnp.sum(att, axis=-1, keepdims=True) + 1e-6         # (nb, Q, 1)
        h_attn = (num * pl.reciprocal(den, approx=True)).reshape(NBQ, H)
        e_attn = s4.reshape(M, H)

        # O projections + residual + LayerNorm
        h1 = h + _bdot(h_attn, w_oh_ref[l]) + b_oh_ref[l]
        h1 = _layer_norm(h1, ln1_ref[l, 0:1, :], ln1_ref[l, 1:2, :])
        ee1 = e + _bdot(e_attn, w_oe_ref[l]) + b_oe_ref[l]
        ee1 = _layer_norm(ee1, ln1_ref[l, 2:3, :], ln1_ref[l, 3:4, :])

        # FFNs (2x expansion) + residual + LayerNorm
        h2 = jnp.maximum(_bdot(h1, w_f1h_ref[l]) + b_f1h_ref[l], 0.0)
        h2 = _bdot(h2, w_f2h_ref[l]) + b_f2h_ref[l]
        h = _layer_norm(h1 + h2, ln2_ref[l, 0:1, :], ln2_ref[l, 1:2, :])

        ee2 = jnp.maximum(_bdot(ee1, w_f1e_ref[l]) + b_f1e_ref[l], 0.0)
        ee2 = _bdot(ee2, w_f2e_ref[l]) + b_f2e_ref[l]
        e = _layer_norm(ee1 + ee2, ln2_ref[l, 2:3, :], ln2_ref[l, 3:4, :])

    # ---- edge classifier MLP: H -> H/2 -> H/2 -> 1 ----
    y = jnp.maximum(_bdot(e, wc1_ref[...]) + bc1_ref[...], 0.0)
    y = jnp.maximum(_bdot(y, wc2_ref[...]) + bc2_ref[...], 0.0)
    # lane-dense output: rows = (batch, i), lanes = j (no trailing size-1 dim)
    y3 = y.reshape(NBQ, Q, H // 2)
    w3 = wc3_ref[...]                                             # (1, H/2) f32
    out_ref[...] = jnp.sum(y3 * w3[None, :, :], axis=-1) + bc3_ref[...]


# ----------------------------------------------------------------------------
# wrapper
# ----------------------------------------------------------------------------
def dense_graph_transformer_head(hs, params):
    L, B, Q, C = hs.shape
    H = params["hidden_dim"]
    num_layers = params["num_layers"]
    LB = L * B

    nb = _pick_block_batch(LB, Q, H)
    n_blocks = -(-LB // nb)                    # cdiv
    LBp = n_blocks * nb

    x = hs.astype(jnp.float32).reshape(LB, Q, C)
    if LBp != LB:                              # pad batch to a multiple of nb
        x = jnp.concatenate(
            [x, jnp.zeros((LBp - LB, Q, C), jnp.float32)], axis=0)
    x = x.reshape(LBp * Q, C)                  # flat node layout: no in-kernel merge

    bf16 = jnp.bfloat16
    weights = [
        params["w_proj"].astype(bf16), params["b_proj"],
        params["w_qkv"].astype(bf16), params["w_e"].astype(bf16),
        params["w_oh"].astype(bf16), params["b_oh"],
        params["w_oe"].astype(bf16), params["b_oe"], params["ln1"],
        params["w_f1h"].astype(bf16), params["b_f1h"],
        params["w_f2h"].astype(bf16), params["b_f2h"],
        params["w_f1e"].astype(bf16), params["b_f1e"],
        params["w_f2e"].astype(bf16), params["b_f2e"], params["ln2"],
        params["wc1"].astype(bf16), params["bc1"],
        params["wc2"].astype(bf16), params["bc2"],
        params["wc3"], params["bc3"],          # final weighted sum is VPU work: keep f32
    ]

    kernel = functools.partial(fused_head_kernel, num_layers=num_layers,
                               hidden_dim=H, nb=nb, q=Q)
    out = pl.pallas_call(
        kernel,
        grid=(n_blocks,),
        in_specs=[pl.BlockSpec((nb * Q, C), lambda b: (b, 0))]
        + [_full_spec(w) for w in weights],
        out_specs=pl.BlockSpec((nb * Q, Q), lambda b: (b, 0)),
        out_shape=jax.ShapeDtypeStruct((LBp * Q, Q), jnp.float32),
        compiler_params=pltpu.CompilerParams(
            dimension_semantics=("parallel",),
            vmem_limit_bytes=64 * 1024 * 1024),
    )(x, *weights)

    return out[:LB * Q].reshape(L, B, Q, Q, 1)


# ----------------------------------------------------------------------------
# deterministic synthetic parameters (no checkpoint)
# ----------------------------------------------------------------------------
def init_params(key, in_dim, hidden_dim, num_layers):
    C, H = in_dim, hidden_dim
    H2 = H // 2
    F = 2 * H
    Lyr = num_layers
    keys = iter(jax.random.split(key, 64))

    def w(shape, scale=0.05):
        return scale * jax.random.normal(next(keys), shape, jnp.float32)

    def b(shape, scale=0.01):
        return scale * jax.random.normal(next(keys), shape, jnp.float32)

    def ln_stack():                            # (Lyr, 4, H): g_h, b_h, g_e, b_e
        g_h = 1.0 + 0.05 * jax.random.normal(next(keys), (Lyr, 1, H))
        b_h = 0.01 * jax.random.normal(next(keys), (Lyr, 1, H))
        g_e = 1.0 + 0.05 * jax.random.normal(next(keys), (Lyr, 1, H))
        b_e = 0.01 * jax.random.normal(next(keys), (Lyr, 1, H))
        return jnp.concatenate([g_h, b_h, g_e, b_e], axis=1).astype(jnp.float32)

    return {
        "hidden_dim": H, "num_layers": Lyr,
        "w_proj": w((C, 3 * H)), "b_proj": b((1, 3 * H)),   # e1 | e2 | node
        "w_qkv": w((Lyr, H, 3 * H)), "w_e": w((Lyr, H, H)),
        "w_oh": w((Lyr, H, H)), "b_oh": b((Lyr, 1, H)),
        "w_oe": w((Lyr, H, H)), "b_oe": b((Lyr, 1, H)),
        "ln1": ln_stack(),
        "w_f1h": w((Lyr, H, F)), "b_f1h": b((Lyr, 1, F)),
        "w_f2h": w((Lyr, F, H)), "b_f2h": b((Lyr, 1, H)),
        "w_f1e": w((Lyr, H, F)), "b_f1e": b((Lyr, 1, F)),
        "w_f2e": w((Lyr, F, H)), "b_f2e": b((Lyr, 1, H)),
        "ln2": ln_stack(),
        "wc1": w((H, H2)), "bc1": b((1, H2)),
        "wc2": w((H2, H2)), "bc2": b((1, H2)),
        "wc3": w((1, H2)), "bc3": b((1, 1)),   # last MLP weight stored transposed
    }


# ----------------------------------------------------------------------------
# pure-JAX reference (same math, same bf16 matmul operands) for validation
# ----------------------------------------------------------------------------
def reference_forward(hs, params):
    L, B, Q, C = hs.shape
    H = params["hidden_dim"]
    x = hs.reshape(L * B, Q, C).astype(jnp.float32)
    p = _bdot(x, params["w_proj"]) + params["b_proj"]
    e1, e2, h = p[..., 0:H], p[..., H:2 * H], p[..., 2 * H:3 * H]
    e = e1[:, None, :, :] + e2[:, :, None, :]          # e[b,i,j] = e1[b,j]+e2[b,i]
    for l in range(params["num_layers"]):
        qkv = _bdot(h, params["w_qkv"][l])
        Qh, Kh, Vh = qkv[..., 0:H], qkv[..., H:2 * H], qkv[..., 2 * H:3 * H]
        Ee = _bdot(e, params["w_e"][l])
        s = Qh[:, :, None, :] * Kh[:, None, :, :] / float(H) ** 0.5 * Ee
        att = jnp.exp(jnp.clip(s.sum(-1), -5.0, 5.0))
        num = jnp.einsum('bij,bjh->bih', att.astype(jnp.bfloat16),
                         Vh.astype(jnp.bfloat16),
                         preferred_element_type=jnp.float32)
        den = att.sum(-1, keepdims=True) + 1e-6
        h_attn = num / den
        h1 = _layer_norm(h + _bdot(h_attn, params["w_oh"][l]) + params["b_oh"][l],
                         params["ln1"][l, 0], params["ln1"][l, 1])
        ee1 = _layer_norm(e + _bdot(s, params["w_oe"][l]) + params["b_oe"][l],
                          params["ln1"][l, 2], params["ln1"][l, 3])
        h2 = _bdot(jax.nn.relu(_bdot(h1, params["w_f1h"][l]) + params["b_f1h"][l]),
                   params["w_f2h"][l]) + params["b_f2h"][l]
        h = _layer_norm(h1 + h2, params["ln2"][l, 0], params["ln2"][l, 1])
        ee2 = _bdot(jax.nn.relu(_bdot(ee1, params["w_f1e"][l]) + params["b_f1e"][l]),
                    params["w_f2e"][l]) + params["b_f2e"][l]
        e = _layer_norm(ee1 + ee2, params["ln2"][l, 2], params["ln2"][l, 3])
    y = jax.nn.relu(_bdot(e, params["wc1"]) + params["bc1"])
    y = jax.nn.relu(_bdot(y, params["wc2"]) + params["bc2"])
    out = jnp.sum(y * params["wc3"][0], axis=-1, keepdims=True) + params["bc3"]
    return out.reshape(L, B, Q, Q, 1)


# ----------------------------------------------------------------------------
if __name__ == "__main__":
    L, B, Q, C = 2, 2, 8, 32           # hs: L x B x Q x C
    hidden_dim = 32
    num_layers = 2

    key = jax.random.PRNGKey(0)
    k_hs, k_p = jax.random.split(key)
    hs = jax.random.normal(k_hs, (L, B, Q, C), jnp.float32)
    params = init_params(k_p, C, hidden_dim, num_layers)

    out = dense_graph_transformer_head(hs, params)
    out = jax.block_until_ready(out)
    assert out.shape == (L, B, Q, Q, 1), out.shape

    ref = reference_forward(hs, params)
    max_err = float(jnp.max(jnp.abs(out - ref)))
    assert max_err < 2e-2, f"mismatch vs reference: {max_err}"

    print("KERNEL_OK")
</pallas_src>

<mosaic_0001>
module attributes {stable_mosaic.version = 11 : i64} {
  func.func @fused_head_kernel(%arg0: i32, %arg1: memref<16x32xf32, #tpu.memory_space<vmem>>, %arg2: memref<32x96xbf16, #tpu.memory_space<vmem>>, %arg3: memref<1x96xf32, #tpu.memory_space<vmem>>, %arg4: memref<2x32x96xbf16, #tpu.memory_space<vmem>>, %arg5: memref<2x32x32xbf16, #tpu.memory_space<vmem>>, %arg6: memref<2x32x32xbf16, #tpu.memory_space<vmem>>, %arg7: memref<2x1x32xf32, #tpu.memory_space<vmem>>, %arg8: memref<2x32x32xbf16, #tpu.memory_space<vmem>>, %arg9: memref<2x1x32xf32, #tpu.memory_space<vmem>>, %arg10: memref<2x4x32xf32, #tpu.memory_space<vmem>>, %arg11: memref<2x32x64xbf16, #tpu.memory_space<vmem>>, %arg12: memref<2x1x64xf32, #tpu.memory_space<vmem>>, %arg13: memref<2x64x32xbf16, #tpu.memory_space<vmem>>, %arg14: memref<2x1x32xf32, #tpu.memory_space<vmem>>, %arg15: memref<2x32x64xbf16, #tpu.memory_space<vmem>>, %arg16: memref<2x1x64xf32, #tpu.memory_space<vmem>>, %arg17: memref<2x64x32xbf16, #tpu.memory_space<vmem>>, %arg18: memref<2x1x32xf32, #tpu.memory_space<vmem>>, %arg19: memref<2x4x32xf32, #tpu.memory_space<vmem>>, %arg20: memref<32x16xbf16, #tpu.memory_space<vmem>>, %arg21: memref<1x16xf32, #tpu.memory_space<vmem>>, %arg22: memref<16x16xbf16, #tpu.memory_space<vmem>>, %arg23: memref<1x16xf32, #tpu.memory_space<vmem>>, %arg24: memref<1x16xf32, #tpu.memory_space<vmem>>, %arg25: memref<1x1xf32, #tpu.memory_space<vmem>>, %arg26: memref<16x8xf32, #tpu.memory_space<vmem>>) attributes {dimension_semantics = [#tpu.dimension_semantics<parallel>], iteration_bounds = array<i64: 2>, scalar_prefetch = 0 : i64, scratch_operands = 0 : i64, tpu.core_type = #tpu.core_type<tc>, window_params = [{transform_indices = @transform_0, window_bounds = array<i64: 16, 32>}, {pipeline_mode = #tpu.pipeline_mode<synchronous>, transform_indices = @transform_1, window_bounds = array<i64: 32, 96>}, {pipeline_mode = #tpu.pipeline_mode<synchronous>, transform_indices = @transform_2, window_bounds = array<i64: 1, 96>}, {pipeline_mode = #tpu.pipeline_mode<synchronous>, transform_indices = @transform_3, window_bounds = array<i64: 2, 32, 96>}, {pipeline_mode = #tpu.pipeline_mode<synchronous>, transform_indices = @transform_4, window_bounds = array<i64: 2, 32, 32>}, {pipeline_mode = #tpu.pipeline_mode<synchronous>, transform_indices = @transform_5, window_bounds = array<i64: 2, 32, 32>}, {pipeline_mode = #tpu.pipeline_mode<synchronous>, transform_indices = @transform_6, window_bounds = array<i64: 2, 1, 32>}, {pipeline_mode = #tpu.pipeline_mode<synchronous>, transform_indices = @transform_7, window_bounds = array<i64: 2, 32, 32>}, {pipeline_mode = #tpu.pipeline_mode<synchronous>, transform_indices = @transform_8, window_bounds = array<i64: 2, 1, 32>}, {pipeline_mode = #tpu.pipeline_mode<synchronous>, transform_indices = @transform_9, window_bounds = array<i64: 2, 4, 32>}, {pipeline_mode = #tpu.pipeline_mode<synchronous>, transform_indices = @transform_10, window_bounds = array<i64: 2, 32, 64>}, {pipeline_mode = #tpu.pipeline_mode<synchronous>, transform_indices = @transform_11, window_bounds = array<i64: 2, 1, 64>}, {pipeline_mode = #tpu.pipeline_mode<synchronous>, transform_indices = @transform_12, window_bounds = array<i64: 2, 64, 32>}, {pipeline_mode = #tpu.pipeline_mode<synchronous>, transform_indices = @transform_13, window_bounds = array<i64: 2, 1, 32>}, {pipeline_mode = #tpu.pipeline_mode<synchronous>, transform_indices = @transform_14, window_bounds = array<i64: 2, 32, 64>}, {pipeline_mode = #tpu.pipeline_mode<synchronous>, transform_indices = @transform_15, window_bounds = array<i64: 2, 1, 64>}, {pipeline_mode = #tpu.pipeline_mode<synchronous>, transform_indices = @transform_16, window_bounds = array<i64: 2, 64, 32>}, {pipeline_mode = #tpu.pipeline_mode<synchronous>, transform_indices = @transform_17, window_bounds = array<i64: 2, 1, 32>}, {pipeline_mode = #tpu.pipeline_mode<synchronous>, transform_indices = @transform_18, window_bounds = array<i64: 2, 4, 32>}, {pipeline_mode = #tpu.pipeline_mode<synchronous>, transform_indices = @transform_19, window_bounds = array<i64: 32, 16>}, {pipeline_mode = #tpu.pipeline_mode<synchronous>, transform_indices = @transform_20, window_bounds = array<i64: 1, 16>}, {pipeline_mode = #tpu.pipeline_mode<synchronous>, transform_indices = @transform_21, window_bounds = array<i64: 16, 16>}, {pipeline_mode = #tpu.pipeline_mode<synchronous>, transform_indices = @transform_22, window_bounds = array<i64: 1, 16>}, {pipeline_mode = #tpu.pipeline_mode<synchronous>, transform_indices = @transform_23, window_bounds = array<i64: 1, 16>}, {pipeline_mode = #tpu.pipeline_mode<synchronous>, transform_indices = @transform_24, window_bounds = array<i64: 1, 1>}, {transform_indices = @transform_25, window_bounds = array<i64: 16, 8>}]} {
    %c0 = arith.constant 0 : index
    %c0_0 = arith.constant 0 : index
    %0 = vector.load %arg1[%c0, %c0_0] : memref<16x32xf32, #tpu.memory_space<vmem>>, vector<16x32xf32>
    %c0_1 = arith.constant 0 : index
    %c0_2 = arith.constant 0 : index
    %1 = vector.load %arg2[%c0_1, %c0_2] : memref<32x96xbf16, #tpu.memory_space<vmem>>, vector<32x96xbf16>
    %2 = arith.truncf %0 : vector<16x32xf32> to vector<16x32xbf16>
    %cst = arith.constant dense<0.000000e+00> : vector<16x96xf32>
    %3 = tpu.matmul %2, %1, %cst {dimension_numbers = #tpu.dot_dimension_numbers<[1], [0], [0], [1], [0, 0, 1, 1], [], []>} : vector<16x32xbf16>, vector<32x96xbf16>, vector<16x96xf32> -> vector<16x96xf32>
    %c0_3 = arith.constant 0 : index
    %c0_4 = arith.constant 0 : index
    %4 = vector.load %arg3[%c0_3, %c0_4] : memref<1x96xf32, #tpu.memory_space<vmem>>, vector<1x96xf32>
    %5 = vector.broadcast %4 : vector<1x96xf32> to vector<16x96xf32>
    %6 = arith.addf %3, %5 : vector<16x96xf32>
    %7 = vector.extract_strided_slice %6 {offsets = [0, 0], sizes = [16, 32], strides = [1, 1]} : vector<16x96xf32> to vector<16x32xf32>
    %8 = vector.shape_cast %7 : vector<16x32xf32> to vector<2x8x32xf32>
    %9 = vector.extract_strided_slice %6 {offsets = [0, 32], sizes = [16, 32], strides = [1, 1]} : vector<16x96xf32> to vector<16x32xf32>
    %10 = vector.shape_cast %9 : vector<16x32xf32> to vector<2x8x32xf32>
    %11 = vector.extract_strided_slice %6 {offsets = [0, 64], sizes = [16, 32], strides = [1, 1]} : vector<16x96xf32> to vector<16x32xf32>
    %12 = vector.shape_cast %8 : vector<2x8x32xf32> to vector<2x1x8x32xf32>
    %13 = vector.shape_cast %10 : vector<2x8x32xf32> to vector<2x8x1x32xf32>
    %14 = vector.broadcast %12 : vector<2x1x8x32xf32> to vector<2x8x8x32xf32>
    %15 = vector.broadcast %13 : vector<2x8x1x32xf32> to vector<2x8x8x32xf32>
    %16 = arith.addf %14, %15 : vector<2x8x8x32xf32>
    %17 = vector.shape_cast %16 : vector<2x8x8x32xf32> to vector<128x32xf32>
    %c0_5 = arith.constant 0 : index
    %c0_6 = arith.constant 0 : index
    %c0_7 = arith.constant 0 : index
    %18 = vector.load %arg4[%c0_5, %c0_6, %c0_7] : memref<2x32x96xbf16, #tpu.memory_space<vmem>>, vector<1x32x96xbf16>
    %19 = vector.shape_cast %18 : vector<1x32x96xbf16> to vector<32x96xbf16>
    %20 = arith.truncf %11 : vector<16x32xf32> to vector<16x32xbf16>
    %cst_8 = arith.constant dense<0.000000e+00> : vector<16x96xf32>
    %21 = tpu.matmul %20, %19, %cst_8 {dimension_numbers = #tpu.dot_dimension_numbers<[1], [0], [0], [1], [0, 0, 1, 1], [], []>} : vector<16x32xbf16>, vector<32x96xbf16>, vector<16x96xf32> -> vector<16x96xf32>
    %22 = vector.extract_strided_slice %21 {offsets = [0, 0], sizes = [16, 32], strides = [1, 1]} : vector<16x96xf32> to vector<16x32xf32>
    %23 = vector.shape_cast %22 : vector<16x32xf32> to vector<2x8x32xf32>
    %24 = vector.extract_strided_slice %21 {offsets = [0, 32], sizes = [16, 32], strides = [1, 1]} : vector<16x96xf32> to vector<16x32xf32>
    %25 = vector.shape_cast %24 : vector<16x32xf32> to vector<2x8x32xf32>
    %26 = vector.extract_strided_slice %21 {offsets = [0, 64], sizes = [16, 32], strides = [1, 1]} : vector<16x96xf32> to vector<16x32xf32>
    %27 = vector.shape_cast %26 : vector<16x32xf32> to vector<2x8x32xf32>
    %c0_9 = arith.constant 0 : index
    %c0_10 = arith.constant 0 : index
    %c0_11 = arith.constant 0 : index
    %28 = vector.load %arg5[%c0_9, %c0_10, %c0_11] : memref<2x32x32xbf16, #tpu.memory_space<vmem>>, vector<1x32x32xbf16>
    %29 = vector.shape_cast %28 : vector<1x32x32xbf16> to vector<32x32xbf16>
    %30 = arith.truncf %17 : vector<128x32xf32> to vector<128x32xbf16>
    %cst_12 = arith.constant dense<0.000000e+00> : vector<128x32xf32>
    %31 = tpu.matmul %30, %29, %cst_12 {dimension_numbers = #tpu.dot_dimension_numbers<[1], [0], [0], [1], [0, 0, 1, 1], [], []>} : vector<128x32xbf16>, vector<32x32xbf16>, vector<128x32xf32> -> vector<128x32xf32>
    %32 = vector.shape_cast %31 : vector<128x32xf32> to vector<2x8x8x32xf32>
    %33 = vector.shape_cast %23 : vector<2x8x32xf32> to vector<2x8x1x32xf32>
    %34 = vector.shape_cast %25 : vector<2x8x32xf32> to vector<2x1x8x32xf32>
    %35 = vector.broadcast %33 : vector<2x8x1x32xf32> to vector<2x8x8x32xf32>
    %36 = vector.broadcast %34 : vector<2x1x8x32xf32> to vector<2x8x8x32xf32>
    %37 = arith.mulf %35, %36 : vector<2x8x8x32xf32>
    %cst_13 = arith.constant 0.176776692 : f32
    %38 = vector.broadcast %cst_13 : f32 to vector<2x8x8x32xf32>
    %39 = arith.mulf %37, %38 : vector<2x8x8x32xf32>
    %40 = arith.mulf %39, %32 : vector<2x8x8x32xf32>
    %cst_14 = arith.constant dense<0.000000e+00> : vector<2x8x8xf32>
    %41 = vector.multi_reduction <add>, %40, %cst_14 [3] : vector<2x8x8x32xf32> to vector<2x8x8xf32>
    %cst_15 = arith.constant -5.000000e+00 : f32
    %cst_16 = arith.constant 5.000000e+00 : f32
    %42 = vector.broadcast %cst_15 : f32 to vector<2x8x8xf32>
    %43 = arith.maximumf %42, %41 : vector<2x8x8xf32>
    %44 = vector.broadcast %cst_16 : f32 to vector<2x8x8xf32>
    %45 = arith.minimumf %44, %43 : vector<2x8x8xf32>
    %46 = math.exp %45 : vector<2x8x8xf32>
    %47 = arith.truncf %46 : vector<2x8x8xf32> to vector<2x8x8xbf16>
    %48 = arith.truncf %27 : vector<2x8x32xf32> to vector<2x8x32xbf16>
    "tpu.trace_start"() <{level = 10 : i32, message = "bij,bjh->bih"}> : () -> ()
    %cst_17 = arith.constant dense<0.000000e+00> : vector<2x8x32xf32>
    %49 = tpu.matmul %47, %48, %cst_17 {dimension_numbers = #tpu.dot_dimension_numbers<[2], [1], [1], [2], [0, 0, 0, 1, 1, 2], [0], [0]>} : vector<2x8x8xbf16>, vector<2x8x32xbf16>, vector<2x8x32xf32> -> vector<2x8x32xf32>
    "tpu.trace_stop"() : () -> ()
    %cst_18 = arith.constant dense<0.000000e+00> : vector<2x8xf32>
    %50 = vector.multi_reduction <add>, %46, %cst_18 [2] : vector<2x8x8xf32> to vector<2x8xf32>
    %51 = vector.shape_cast %50 : vector<2x8xf32> to vector<2x8x1xf32>
    %cst_19 = arith.constant 9.99999997E-7 : f32
    %52 = vector.broadcast %cst_19 : f32 to vector<2x8x1xf32>
    %53 = arith.addf %51, %52 : vector<2x8x1xf32>
    %54 = tpu.reciprocal %53 {approx = true} : vector<2x8x1xf32> -> vector<2x8x1xf32>
    %55 = vector.broadcast %54 : vector<2x8x1xf32> to vector<2x8x32xf32>
    %56 = arith.mulf %49, %55 : vector<2x8x32xf32>
    %57 = vector.shape_cast %56 : vector<2x8x32xf32> to vector<16x32xf32>
    %58 = vector.shape_cast %40 : vector<2x8x8x32xf32> to vector<128x32xf32>
    %c0_20 = arith.constant 0 : index
    %c0_21 = arith.constant 0 : index
    %c0_22 = arith.constant 0 : index
    %59 = vector.load %arg6[%c0_20, %c0_21, %c0_22] : memref<2x32x32xbf16, #tpu.memory_space<vmem>>, vector<1x32x32xbf16>
    %60 = vector.shape_cast %59 : vector<1x32x32xbf16> to vector<32x32xbf16>
    %61 = arith.truncf %57 : vector<16x32xf32> to vector<16x32xbf16>
    %cst_23 = arith.constant dense<0.000000e+00> : vector<16x32xf32>
    %62 = tpu.matmul %61, %60, %cst_23 {dimension_numbers = #tpu.dot_dimension_numbers<[1], [0], [0], [1], [0, 0, 1, 1], [], []>} : vector<16x32xbf16>, vector<32x32xbf16>, vector<16x32xf32> -> vector<16x32xf32>
    %63 = arith.addf %11, %62 : vector<16x32xf32>
    %c0_24 = arith.constant 0 : index
    %c0_25 = arith.constant 0 : index
    %c0_26 = arith.constant 0 : index
    %64 = vector.load %arg7[%c0_24, %c0_25, %c0_26] : memref<2x1x32xf32, #tpu.memory_space<vmem>>, vector<1x1x32xf32>
    %65 = vector.shape_cast %64 : vector<1x1x32xf32> to vector<1x32xf32>
    %66 = vector.broadcast %65 : vector<1x32xf32> to vector<16x32xf32>
    %67 = arith.addf %63, %66 : vector<16x32xf32>
    %c0_27 = arith.constant 0 : index
    %c0_28 = arith.constant 0 : index
    %c0_29 = arith.constant 0 : index
    %68 = vector.load %arg10[%c0_27, %c0_28, %c0_29] : memref<2x4x32xf32, #tpu.memory_space<vmem>>, vector<1x1x32xf32>
    %69 = vector.shape_cast %68 : vector<1x1x32xf32> to vector<1x32xf32>
    %c0_30 = arith.constant 0 : index
    %c1 = arith.constant 1 : index
    %c0_31 = arith.constant 0 : index
    %70 = vector.load %arg10[%c0_30, %c1, %c0_31] : memref<2x4x32xf32, #tpu.memory_space<vmem>>, vector<1x1x32xf32>
    %71 = vector.shape_cast %70 : vector<1x1x32xf32> to vector<1x32xf32>
    %cst_32 = arith.constant dense<0.000000e+00> : vector<16xf32>
    %72 = vector.multi_reduction <add>, %67, %cst_32 [1] : vector<16x32xf32> to vector<16xf32>
    %73 = vector.shape_cast %72 : vector<16xf32> to vector<16x1xf32>
    %cst_33 = arith.constant 3.200000e+01 : f32
    %74 = vector.broadcast %cst_33 : f32 to vector<16x1xf32>
    %75 = arith.divf %73, %74 : vector<16x1xf32>
    %76 = vector.broadcast %75 : vector<16x1xf32> to vector<16x32xf32>
    %77 = arith.subf %67, %76 : vector<16x32xf32>
    %78 = arith.mulf %77, %77 : vector<16x32xf32>
    %cst_34 = arith.constant dense<0.000000e+00> : vector<16xf32>
    %79 = vector.multi_reduction <add>, %78, %cst_34 [1] : vector<16x32xf32> to vector<16xf32>
    %80 = vector.shape_cast %79 : vector<16xf32> to vector<16x1xf32>
    %cst_35 = arith.constant 3.200000e+01 : f32
    %81 = vector.broadcast %cst_35 : f32 to vector<16x1xf32>
    %82 = arith.divf %80, %81 : vector<16x1xf32>
    %83 = vector.broadcast %75 : vector<16x1xf32> to vector<16x32xf32>
    %84 = arith.subf %67, %83 : vector<16x32xf32>
    %cst_36 = arith.constant 9.99999974E-6 : f32
    %85 = vector.broadcast %cst_36 : f32 to vector<16x1xf32>
    %86 = arith.addf %82, %85 : vector<16x1xf32>
    %87 = math.rsqrt %86 : vector<16x1xf32>
    %88 = vector.broadcast %87 : vector<16x1xf32> to vector<16x32xf32>
    %89 = arith.mulf %84, %88 : vector<16x32xf32>
    %90 = vector.broadcast %69 : vector<1x32xf32> to vector<16x32xf32>
    %91 = arith.mulf %89, %90 : vector<16x32xf32>
    %92 = vector.broadcast %71 : vector<1x32xf32> to vector<16x32xf32>
    %93 = arith.addf %91, %92 : vector<16x32xf32>
    %c0_37 = arith.constant 0 : index
    %c0_38 = arith.constant 0 : index
    %c0_39 = arith.constant 0 : index
    %94 = vector.load %arg8[%c0_37, %c0_38, %c0_39] : memref<2x32x32xbf16, #tpu.memory_space<vmem>>, vector<1x32x32xbf16>
    %95 = vector.shape_cast %94 : vector<1x32x32xbf16> to vector<32x32xbf16>
    %96 = arith.truncf %58 : vector<128x32xf32> to vector<128x32xbf16>
    %cst_40 = arith.constant dense<0.000000e+00> : vector<128x32xf32>
    %97 = tpu.matmul %96, %95, %cst_40 {dimension_numbers = #tpu.dot_dimension_numbers<[1], [0], [0], [1], [0, 0, 1, 1], [], []>} : vector<128x32xbf16>, vector<32x32xbf16>, vector<128x32xf32> -> vector<128x32xf32>
    %98 = arith.addf %17, %97 : vector<128x32xf32>
    %c0_41 = arith.constant 0 : index
    %c0_42 = arith.constant 0 : index
    %c0_43 = arith.constant 0 : index
    %99 = vector.load %arg9[%c0_41, %c0_42, %c0_43] : memref<2x1x32xf32, #tpu.memory_space<vmem>>, vector<1x1x32xf32>
    %100 = vector.shape_cast %99 : vector<1x1x32xf32> to vector<1x32xf32>
    %101 = vector.broadcast %100 : vector<1x32xf32> to vector<128x32xf32>
    %102 = arith.addf %98, %101 : vector<128x32xf32>
    %c0_44 = arith.constant 0 : index
    %c2 = arith.constant 2 : index
    %c0_45 = arith.constant 0 : index
    %103 = vector.load %arg10[%c0_44, %c2, %c0_45] : memref<2x4x32xf32, #tpu.memory_space<vmem>>, vector<1x1x32xf32>
    %104 = vector.shape_cast %103 : vector<1x1x32xf32> to vector<1x32xf32>
    %c0_46 = arith.constant 0 : index
    %c3 = arith.constant 3 : index
    %c0_47 = arith.constant 0 : index
    %105 = vector.load %arg10[%c0_46, %c3, %c0_47] : memref<2x4x32xf32, #tpu.memory_space<vmem>>, vector<1x1x32xf32>
    %106 = vector.shape_cast %105 : vector<1x1x32xf32> to vector<1x32xf32>
    %cst_48 = arith.constant dense<0.000000e+00> : vector<128xf32>
    %107 = vector.multi_reduction <add>, %102, %cst_48 [1] : vector<128x32xf32> to vector<128xf32>
    %108 = vector.shape_cast %107 : vector<128xf32> to vector<128x1xf32>
    %cst_49 = arith.constant 3.200000e+01 : f32
    %109 = vector.broadcast %cst_49 : f32 to vector<128x1xf32>
    %110 = arith.divf %108, %109 : vector<128x1xf32>
    %111 = vector.broadcast %110 : vector<128x1xf32> to vector<128x32xf32>
    %112 = arith.subf %102, %111 : vector<128x32xf32>
    %113 = arith.mulf %112, %112 : vector<128x32xf32>
    %cst_50 = arith.constant dense<0.000000e+00> : vector<128xf32>
    %114 = vector.multi_reduction <add>, %113, %cst_50 [1] : vector<128x32xf32> to vector<128xf32>
    %115 = vector.shape_cast %114 : vector<128xf32> to vector<128x1xf32>
    %cst_51 = arith.constant 3.200000e+01 : f32
    %116 = vector.broadcast %cst_51 : f32 to vector<128x1xf32>
    %117 = arith.divf %115, %116 : vector<128x1xf32>
    %118 = vector.broadcast %110 : vector<128x1xf32> to vector<128x32xf32>
    %119 = arith.subf %102, %118 : vector<128x32xf32>
    %cst_52 = arith.constant 9.99999974E-6 : f32
    %120 = vector.broadcast %cst_52 : f32 to vector<128x1xf32>
    %121 = arith.addf %117, %120 : vector<128x1xf32>
    %122 = math.rsqrt %121 : vector<128x1xf32>
    %123 = vector.broadcast %122 : vector<128x1xf32> to vector<128x32xf32>
    %124 = arith.mulf %119, %123 : vector<128x32xf32>
    %125 = vector.broadcast %104 : vector<1x32xf32> to vector<128x32xf32>
    %126 = arith.mulf %124, %125 : vector<128x32xf32>
    %127 = vector.broadcast %106 : vector<1x32xf32> to vector<128x32xf32>
    %128 = arith.addf %126, %127 : vector<128x32xf32>
    %c0_53 = arith.constant 0 : index
    %c0_54 = arith.constant 0 : index
    %c0_55 = arith.constant 0 : index
    %129 = vector.load %arg11[%c0_53, %c0_54, %c0_55] : memref<2x32x64xbf16, #tpu.memory_space<vmem>>, vector<1x32x64xbf16>
    %130 = vector.shape_cast %129 : vector<1x32x64xbf16> to vector<32x64xbf16>
    %131 = arith.truncf %93 : vector<16x32xf32> to vector<16x32xbf16>
    %cst_56 = arith.constant dense<0.000000e+00> : vector<16x64xf32>
    %132 = tpu.matmul %131, %130, %cst_56 {dimension_numbers = #tpu.dot_dimension_numbers<[1], [0], [0], [1], [0, 0, 1, 1], [], []>} : vector<16x32xbf16>, vector<32x64xbf16>, vector<16x64xf32> -> vector<16x64xf32>
    %c0_57 = arith.constant 0 : index
    %c0_58 = arith.constant 0 : index
    %c0_59 = arith.constant 0 : index
    %133 = vector.load %arg12[%c0_57, %c0_58, %c0_59] : memref<2x1x64xf32, #tpu.memory_space<vmem>>, vector<1x1x64xf32>
    %134 = vector.shape_cast %133 : vector<1x1x64xf32> to vector<1x64xf32>
    %135 = vector.broadcast %134 : vector<1x64xf32> to vector<16x64xf32>
    %136 = arith.addf %132, %135 : vector<16x64xf32>
    %cst_60 = arith.constant 0.000000e+00 : f32
    %137 = vector.broadcast %cst_60 : f32 to vector<16x64xf32>
    %138 = arith.maximumf %136, %137 : vector<16x64xf32>
    %c0_61 = arith.constant 0 : index
    %c0_62 = arith.constant 0 : index
    %c0_63 = arith.constant 0 : index
    %139 = vector.load %arg13[%c0_61, %c0_62, %c0_63] : memref<2x64x32xbf16, #tpu.memory_space<vmem>>, vector<1x64x32xbf16>
    %140 = vector.shape_cast %139 : vector<1x64x32xbf16> to vector<64x32xbf16>
    %141 = arith.truncf %138 : vector<16x64xf32> to vector<16x64xbf16>
    %cst_64 = arith.constant dense<0.000000e+00> : vector<16x32xf32>
    %142 = tpu.matmul %141, %140, %cst_64 {dimension_numbers = #tpu.dot_dimension_numbers<[1], [0], [0], [1], [0, 0, 1, 1], [], []>} : vector<16x64xbf16>, vector<64x32xbf16>, vector<16x32xf32> -> vector<16x32xf32>
    %c0_65 = arith.constant 0 : index
    %c0_66 = arith.constant 0 : index
    %c0_67 = arith.constant 0 : index
    %143 = vector.load %arg14[%c0_65, %c0_66, %c0_67] : memref<2x1x32xf32, #tpu.memory_space<vmem>>, vector<1x1x32xf32>
    %144 = vector.shape_cast %143 : vector<1x1x32xf32> to vector<1x32xf32>
    %145 = vector.broadcast %144 : vector<1x32xf32> to vector<16x32xf32>
    %146 = arith.addf %142, %145 : vector<16x32xf32>
    %147 = arith.addf %93, %146 : vector<16x32xf32>
    %c0_68 = arith.constant 0 : index
    %c0_69 = arith.constant 0 : index
    %c0_70 = arith.constant 0 : index
    %148 = vector.load %arg19[%c0_68, %c0_69, %c0_70] : memref<2x4x32xf32, #tpu.memory_space<vmem>>, vector<1x1x32xf32>
    %149 = vector.shape_cast %148 : vector<1x1x32xf32> to vector<1x32xf32>
    %c0_71 = arith.constant 0 : index
    %c1_72 = arith.constant 1 : index
    %c0_73 = arith.constant 0 : index
    %150 = vector.load %arg19[%c0_71, %c1_72, %c0_73] : memref<2x4x32xf32, #tpu.memory_space<vmem>>, vector<1x1x32xf32>
    %151 = vector.shape_cast %150 : vector<1x1x32xf32> to vector<1x32xf32>
    %cst_74 = arith.constant dense<0.000000e+00> : vector<16xf32>
    %152 = vector.multi_reduction <add>, %147, %cst_74 [1] : vector<16x32xf32> to vector<16xf32>
    %153 = vector.shape_cast %152 : vector<16xf32> to vector<16x1xf32>
    %cst_75 = arith.constant 3.200000e+01 : f32
    %154 = vector.broadcast %cst_75 : f32 to vector<16x1xf32>
    %155 = arith.divf %153, %154 : vector<16x1xf32>
    %156 = vector.broadcast %155 : vector<16x1xf32> to vector<16x32xf32>
    %157 = arith.subf %147, %156 : vector<16x32xf32>
    %158 = arith.mulf %157, %157 : vector<16x32xf32>
    %cst_76 = arith.constant dense<0.000000e+00> : vector<16xf32>
    %159 = vector.multi_reduction <add>, %158, %cst_76 [1] : vector<16x32xf32> to vector<16xf32>
    %160 = vector.shape_cast %159 : vector<16xf32> to vector<16x1xf32>
    %cst_77 = arith.constant 3.200000e+01 : f32
    %161 = vector.broadcast %cst_77 : f32 to vector<16x1xf32>
    %162 = arith.divf %160, %161 : vector<16x1xf32>
    %163 = vector.broadcast %155 : vector<16x1xf32> to vector<16x32xf32>
    %164 = arith.subf %147, %163 : vector<16x32xf32>
    %cst_78 = arith.constant 9.99999974E-6 : f32
    %165 = vector.broadcast %cst_78 : f32 to vector<16x1xf32>
    %166 = arith.addf %162, %165 : vector<16x1xf32>
    %167 = math.rsqrt %166 : vector<16x1xf32>
    %168 = vector.broadcast %167 : vector<16x1xf32> to vector<16x32xf32>
    %169 = arith.mulf %164, %168 : vector<16x32xf32>
    %170 = vector.broadcast %149 : vector<1x32xf32> to vector<16x32xf32>
    %171 = arith.mulf %169, %170 : vector<16x32xf32>
    %172 = vector.broadcast %151 : vector<1x32xf32> to vector<16x32xf32>
    %173 = arith.addf %171, %172 : vector<16x32xf32>
    %c0_79 = arith.constant 0 : index
    %c0_80 = arith.constant 0 : index
    %c0_81 = arith.constant 0 : index
    %174 = vector.load %arg15[%c0_79, %c0_80, %c0_81] : memref<2x32x64xbf16, #tpu.memory_space<vmem>>, vector<1x32x64xbf16>
    %175 = vector.shape_cast %174 : vector<1x32x64xbf16> to vector<32x64xbf16>
    %176 = arith.truncf %128 : vector<128x32xf32> to vector<128x32xbf16>
    %cst_82 = arith.constant dense<0.000000e+00> : vector<128x64xf32>
    %177 = tpu.matmul %176, %175, %cst_82 {dimension_numbers = #tpu.dot_dimension_numbers<[1], [0], [0], [1], [0, 0, 1, 1], [], []>} : vector<128x32xbf16>, vector<32x64xbf16>, vector<128x64xf32> -> vector<128x64xf32>
    %c0_83 = arith.constant 0 : index
    %c0_84 = arith.constant 0 : index
    %c0_85 = arith.constant 0 : index
    %178 = vector.load %arg16[%c0_83, %c0_84, %c0_85] : memref<2x1x64xf32, #tpu.memory_space<vmem>>, vector<1x1x64xf32>
    %179 = vector.shape_cast %178 : vector<1x1x64xf32> to vector<1x64xf32>
    %180 = vector.broadcast %179 : vector<1x64xf32> to vector<128x64xf32>
    %181 = arith.addf %177, %180 : vector<128x64xf32>
    %cst_86 = arith.constant 0.000000e+00 : f32
    %182 = vector.broadcast %cst_86 : f32 to vector<128x64xf32>
    %183 = arith.maximumf %181, %182 : vector<128x64xf32>
    %c0_87 = arith.constant 0 : index
    %c0_88 = arith.constant 0 : index
    %c0_89 = arith.constant 0 : index
    %184 = vector.load %arg17[%c0_87, %c0_88, %c0_89] : memref<2x64x32xbf16, #tpu.memory_space<vmem>>, vector<1x64x32xbf16>
    %185 = vector.shape_cast %184 : vector<1x64x32xbf16> to vector<64x32xbf16>
    %186 = arith.truncf %183 : vector<128x64xf32> to vector<128x64xbf16>
    %cst_90 = arith.constant dense<0.000000e+00> : vector<128x32xf32>
    %187 = tpu.matmul %186, %185, %cst_90 {dimension_numbers = #tpu.dot_dimension_numbers<[1], [0], [0], [1], [0, 0, 1, 1], [], []>} : vector<128x64xbf16>, vector<64x32xbf16>, vector<128x32xf32> -> vector<128x32xf32>
    %c0_91 = arith.constant 0 : index
    %c0_92 = arith.constant 0 : index
    %c0_93 = arith.constant 0 : index
    %188 = vector.load %arg18[%c0_91, %c0_92, %c0_93] : memref<2x1x32xf32, #tpu.memory_space<vmem>>, vector<1x1x32xf32>
    %189 = vector.shape_cast %188 : vector<1x1x32xf32> to vector<1x32xf32>
    %190 = vector.broadcast %189 : vector<1x32xf32> to vector<128x32xf32>
    %191 = arith.addf %187, %190 : vector<128x32xf32>
    %192 = arith.addf %128, %191 : vector<128x32xf32>
    %c0_94 = arith.constant 0 : index
    %c2_95 = arith.constant 2 : index
    %c0_96 = arith.constant 0 : index
    %193 = vector.load %arg19[%c0_94, %c2_95, %c0_96] : memref<2x4x32xf32, #tpu.memory_space<vmem>>, vector<1x1x32xf32>
    %194 = vector.shape_cast %193 : vector<1x1x32xf32> to vector<1x32xf32>
    %c0_97 = arith.constant 0 : index
    %c3_98 = arith.constant 3 : index
    %c0_99 = arith.constant 0 : index
    %195 = vector.load %arg19[%c0_97, %c3_98, %c0_99] : memref<2x4x32xf32, #tpu.memory_space<vmem>>, vector<1x1x32xf32>
    %196 = vector.shape_cast %195 : vector<1x1x32xf32> to vector<1x32xf32>
    %cst_100 = arith.constant dense<0.000000e+00> : vector<128xf32>
    %197 = vector.multi_reduction <add>, %192, %cst_100 [1] : vector<128x32xf32> to vector<128xf32>
    %198 = vector.shape_cast %197 : vector<128xf32> to vector<128x1xf32>
    %cst_101 = arith.constant 3.200000e+01 : f32
    %199 = vector.broadcast %cst_101 : f32 to vector<128x1xf32>
    %200 = arith.divf %198, %199 : vector<128x1xf32>
    %201 = vector.broadcast %200 : vector<128x1xf32> to vector<128x32xf32>
    %202 = arith.subf %192, %201 : vector<128x32xf32>
    %203 = arith.mulf %202, %202 : vector<128x32xf32>
    %cst_102 = arith.constant dense<0.000000e+00> : vector<128xf32>
    %204 = vector.multi_reduction <add>, %203, %cst_102 [1] : vector<128x32xf32> to vector<128xf32>
    %205 = vector.shape_cast %204 : vector<128xf32> to vector<128x1xf32>
    %cst_103 = arith.constant 3.200000e+01 : f32
    %206 = vector.broadcast %cst_103 : f32 to vector<128x1xf32>
    %207 = arith.divf %205, %206 : vector<128x1xf32>
    %208 = vector.broadcast %200 : vector<128x1xf32> to vector<128x32xf32>
    %209 = arith.subf %192, %208 : vector<128x32xf32>
    %cst_104 = arith.constant 9.99999974E-6 : f32
    %210 = vector.broadcast %cst_104 : f32 to vector<128x1xf32>
    %211 = arith.addf %207, %210 : vector<128x1xf32>
    %212 = math.rsqrt %211 : vector<128x1xf32>
    %213 = vector.broadcast %212 : vector<128x1xf32> to vector<128x32xf32>
    %214 = arith.mulf %209, %213 : vector<128x32xf32>
    %215 = vector.broadcast %194 : vector<1x32xf32> to vector<128x32xf32>
    %216 = arith.mulf %214, %215 : vector<128x32xf32>
    %217 = vector.broadcast %196 : vector<1x32xf32> to vector<128x32xf32>
    %218 = arith.addf %216, %217 : vector<128x32xf32>
    %c1_105 = arith.constant 1 : index
    %c0_106 = arith.constant 0 : index
    %c0_107 = arith.constant 0 : index
    %219 = vector.load %arg4[%c1_105, %c0_106, %c0_107] : memref<2x32x96xbf16, #tpu.memory_space<vmem>>, vector<1x32x96xbf16>
    %220 = vector.shape_cast %219 : vector<1x32x96xbf16> to vector<32x96xbf16>
    %221 = arith.truncf %173 : vector<16x32xf32> to vector<16x32xbf16>
    %cst_108 = arith.constant dense<0.000000e+00> : vector<16x96xf32>
    %222 = tpu.matmul %221, %220, %cst_108 {dimension_numbers = #tpu.dot_dimension_numbers<[1], [0], [0], [1], [0, 0, 1, 1], [], []>} : vector<16x32xbf16>, vector<32x96xbf16>, vector<16x96xf32> -> vector<16x96xf32>
    %223 = vector.extract_strided_slice %222 {offsets = [0, 0], sizes = [16, 32], strides = [1, 1]} : vector<16x96xf32> to vector<16x32xf32>
    %224 = vector.shape_cast %223 : vector<16x32xf32> to vector<2x8x32xf32>
    %225 = vector.extract_strided_slice %222 {offsets = [0, 32], sizes = [16, 32], strides = [1, 1]} : vector<16x96xf32> to vector<16x32xf32>
    %226 = vector.shape_cast %225 : vector<16x32xf32> to vector<2x8x32xf32>
    %c1_109 = arith.constant 1 : index
    %c0_110 = arith.constant 0 : index
    %c0_111 = arith.constant 0 : index
    %227 = vector.load %arg5[%c1_109, %c0_110, %c0_111] : memref<2x32x32xbf16, #tpu.memory_space<vmem>>, vector<1x32x32xbf16>
    %228 = vector.shape_cast %227 : vector<1x32x32xbf16> to vector<32x32xbf16>
    %229 = arith.truncf %218 : vector<128x32xf32> to vector<128x32xbf16>
    %cst_112 = arith.constant dense<0.000000e+00> : vector<128x32xf32>
    %230 = tpu.matmul %229, %228, %cst_112 {dimension_numbers = #tpu.dot_dimension_numbers<[1], [0], [0], [1], [0, 0, 1, 1], [], []>} : vector<128x32xbf16>, vector<32x32xbf16>, vector<128x32xf32> -> vector<128x32xf32>
    %231 = vector.shape_cast %230 : vector<128x32xf32> to vector<2x8x8x32xf32>
    %232 = vector.shape_cast %224 : vector<2x8x32xf32> to vector<2x8x1x32xf32>
    %233 = vector.shape_cast %226 : vector<2x8x32xf32> to vector<2x1x8x32xf32>
    %234 = vector.broadcast %232 : vector<2x8x1x32xf32> to vector<2x8x8x32xf32>
    %235 = vector.broadcast %233 : vector<2x1x8x32xf32> to vector<2x8x8x32xf32>
    %236 = arith.mulf %234, %235 : vector<2x8x8x32xf32>
    %cst_113 = arith.constant 0.176776692 : f32
    %237 = vector.broadcast %cst_113 : f32 to vector<2x8x8x32xf32>
    %238 = arith.mulf %236, %237 : vector<2x8x8x32xf32>
    %239 = arith.mulf %238, %231 : vector<2x8x8x32xf32>
    %240 = vector.shape_cast %239 : vector<2x8x8x32xf32> to vector<128x32xf32>
    %c1_114 = arith.constant 1 : index
    %c0_115 = arith.constant 0 : index
    %c0_116 = arith.constant 0 : index
    %241 = vector.load %arg8[%c1_114, %c0_115, %c0_116] : memref<2x32x32xbf16, #tpu.memory_space<vmem>>, vector<1x32x32xbf16>
    %242 = vector.shape_cast %241 : vector<1x32x32xbf16> to vector<32x32xbf16>
    %243 = arith.truncf %240 : vector<128x32xf32> to vector<128x32xbf16>
    %cst_117 = arith.constant dense<0.000000e+00> : vector<128x32xf32>
    %244 = tpu.matmul %243, %242, %cst_117 {dimension_numbers = #tpu.dot_dimension_numbers<[1], [0], [0], [1], [0, 0, 1, 1], [], []>} : vector<128x32xbf16>, vector<32x32xbf16>, vector<128x32xf32> -> vector<128x32xf32>
    %245 = arith.addf %218, %244 : vector<128x32xf32>
    %c1_118 = arith.constant 1 : index
    %c0_119 = arith.constant 0 : index
    %c0_120 = arith.constant 0 : index
    %246 = vector.load %arg9[%c1_118, %c0_119, %c0_120] : memref<2x1x32xf32, #tpu.memory_space<vmem>>, vector<1x1x32xf32>
    %247 = vector.shape_cast %246 : vector<1x1x32xf32> to vector<1x32xf32>
    %248 = vector.broadcast %247 : vector<1x32xf32> to vector<128x32xf32>
    %249 = arith.addf %245, %248 : vector<128x32xf32>
    %c1_121 = arith.constant 1 : index
    %c2_122 = arith.constant 2 : index
    %c0_123 = arith.constant 0 : index
    %250 = vector.load %arg10[%c1_121, %c2_122, %c0_123] : memref<2x4x32xf32, #tpu.memory_space<vmem>>, vector<1x1x32xf32>
    %251 = vector.shape_cast %250 : vector<1x1x32xf32> to vector<1x32xf32>
    %c1_124 = arith.constant 1 : index
    %c3_125 = arith.constant 3 : index
    %c0_126 = arith.constant 0 : index
    %252 = vector.load %arg10[%c1_124, %c3_125, %c0_126] : memref<2x4x32xf32, #tpu.memory_space<vmem>>, vector<1x1x32xf32>
    %253 = vector.shape_cast %252 : vector<1x1x32xf32> to vector<1x32xf32>
    %cst_127 = arith.constant dense<0.000000e+00> : vector<128xf32>
    %254 = vector.multi_reduction <add>, %249, %cst_127 [1] : vector<128x32xf32> to vector<128xf32>
    %255 = vector.shape_cast %254 : vector<128xf32> to vector<128x1xf32>
    %cst_128 = arith.constant 3.200000e+01 : f32
    %256 = vector.broadcast %cst_128 : f32 to vector<128x1xf32>
    %257 = arith.divf %255, %256 : vector<128x1xf32>
    %258 = vector.broadcast %257 : vector<128x1xf32> to vector<128x32xf32>
    %259 = arith.subf %249, %258 : vector<128x32xf32>
    %260 = arith.mulf %259, %259 : vector<128x32xf32>
    %cst_129 = arith.constant dense<0.000000e+00> : vector<128xf32>
    %261 = vector.multi_reduction <add>, %260, %cst_129 [1] : vector<128x32xf32> to vector<128xf32>
    %262 = vector.shape_cast %261 : vector<128xf32> to vector<128x1xf32>
    %cst_130 = arith.constant 3.200000e+01 : f32
    %263 = vector.broadcast %cst_130 : f32 to vector<128x1xf32>
    %264 = arith.divf %262, %263 : vector<128x1xf32>
    %265 = vector.broadcast %257 : vector<128x1xf32> to vector<128x32xf32>
    %266 = arith.subf %249, %265 : vector<128x32xf32>
    %cst_131 = arith.constant 9.99999974E-6 : f32
    %267 = vector.broadcast %cst_131 : f32 to vector<128x1xf32>
    %268 = arith.addf %264, %267 : vector<128x1xf32>
    %269 = math.rsqrt %268 : vector<128x1xf32>
    %270 = vector.broadcast %269 : vector<128x1xf32> to vector<128x32xf32>
    %271 = arith.mulf %266, %270 : vector<128x32xf32>
    %272 = vector.broadcast %251 : vector<1x32xf32> to vector<128x32xf32>
    %273 = arith.mulf %271, %272 : vector<128x32xf32>
    %274 = vector.broadcast %253 : vector<1x32xf32> to vector<128x32xf32>
    %275 = arith.addf %273, %274 : vector<128x32xf32>
    %c1_132 = arith.constant 1 : index
    %c0_133 = arith.constant 0 : index
    %c0_134 = arith.constant 0 : index
    %276 = vector.load %arg15[%c1_132, %c0_133, %c0_134] : memref<2x32x64xbf16, #tpu.memory_space<vmem>>, vector<1x32x64xbf16>
    %277 = vector.shape_cast %276 : vector<1x32x64xbf16> to vector<32x64xbf16>
    %278 = arith.truncf %275 : vector<128x32xf32> to vector<128x32xbf16>
    %cst_135 = arith.constant dense<0.000000e+00> : vector<128x64xf32>
    %279 = tpu.matmul %278, %277, %cst_135 {dimension_numbers = #tpu.dot_dimension_numbers<[1], [0], [0], [1], [0, 0, 1, 1], [], []>} : vector<128x32xbf16>, vector<32x64xbf16>, vector<128x64xf32> -> vector<128x64xf32>
    %c1_136 = arith.constant 1 : index
    %c0_137 = arith.constant 0 : index
    %c0_138 = arith.constant 0 : index
    %280 = vector.load %arg16[%c1_136, %c0_137, %c0_138] : memref<2x1x64xf32, #tpu.memory_space<vmem>>, vector<1x1x64xf32>
    %281 = vector.shape_cast %280 : vector<1x1x64xf32> to vector<1x64xf32>
    %282 = vector.broadcast %281 : vector<1x64xf32> to vector<128x64xf32>
    %283 = arith.addf %279, %282 : vector<128x64xf32>
    %cst_139 = arith.constant 0.000000e+00 : f32
    %284 = vector.broadcast %cst_139 : f32 to vector<128x64xf32>
    %285 = arith.maximumf %283, %284 : vector<128x64xf32>
    %c1_140 = arith.constant 1 : index
    %c0_141 = arith.constant 0 : index
    %c0_142 = arith.constant 0 : index
    %286 = vector.load %arg17[%c1_140, %c0_141, %c0_142] : memref<2x64x32xbf16, #tpu.memory_space<vmem>>, vector<1x64x32xbf16>
    %287 = vector.shape_cast %286 : vector<1x64x32xbf16> to vector<64x32xbf16>
    %288 = arith.truncf %285 : vector<128x64xf32> to vector<128x64xbf16>
    %cst_143 = arith.constant dense<0.000000e+00> : vector<128x32xf32>
    %289 = tpu.matmul %288, %287, %cst_143 {dimension_numbers = #tpu.dot_dimension_numbers<[1], [0], [0], [1], [0, 0, 1, 1], [], []>} : vector<128x64xbf16>, vector<64x32xbf16>, vector<128x32xf32> -> vector<128x32xf32>
    %c1_144 = arith.constant 1 : index
    %c0_145 = arith.constant 0 : index
    %c0_146 = arith.constant 0 : index
    %290 = vector.load %arg18[%c1_144, %c0_145, %c0_146] : memref<2x1x32xf32, #tpu.memory_space<vmem>>, vector<1x1x32xf32>
    %291 = vector.shape_cast %290 : vector<1x1x32xf32> to vector<1x32xf32>
    %292 = vector.broadcast %291 : vector<1x32xf32> to vector<128x32xf32>
    %293 = arith.addf %289, %292 : vector<128x32xf32>
    %294 = arith.addf %275, %293 : vector<128x32xf32>
    %c1_147 = arith.constant 1 : index
    %c2_148 = arith.constant 2 : index
    %c0_149 = arith.constant 0 : index
    %295 = vector.load %arg19[%c1_147, %c2_148, %c0_149] : memref<2x4x32xf32, #tpu.memory_space<vmem>>, vector<1x1x32xf32>
    %296 = vector.shape_cast %295 : vector<1x1x32xf32> to vector<1x32xf32>
    %c1_150 = arith.constant 1 : index
    %c3_151 = arith.constant 3 : index
    %c0_152 = arith.constant 0 : index
    %297 = vector.load %arg19[%c1_150, %c3_151, %c0_152] : memref<2x4x32xf32, #tpu.memory_space<vmem>>, vector<1x1x32xf32>
    %298 = vector.shape_cast %297 : vector<1x1x32xf32> to vector<1x32xf32>
    %cst_153 = arith.constant dense<0.000000e+00> : vector<128xf32>
    %299 = vector.multi_reduction <add>, %294, %cst_153 [1] : vector<128x32xf32> to vector<128xf32>
    %300 = vector.shape_cast %299 : vector<128xf32> to vector<128x1xf32>
    %cst_154 = arith.constant 3.200000e+01 : f32
    %301 = vector.broadcast %cst_154 : f32 to vector<128x1xf32>
    %302 = arith.divf %300, %301 : vector<128x1xf32>
    %303 = vector.broadcast %302 : vector<128x1xf32> to vector<128x32xf32>
    %304 = arith.subf %294, %303 : vector<128x32xf32>
    %305 = arith.mulf %304, %304 : vector<128x32xf32>
    %cst_155 = arith.constant dense<0.000000e+00> : vector<128xf32>
    %306 = vector.multi_reduction <add>, %305, %cst_155 [1] : vector<128x32xf32> to vector<128xf32>
    %307 = vector.shape_cast %306 : vector<128xf32> to vector<128x1xf32>
    %cst_156 = arith.constant 3.200000e+01 : f32
    %308 = vector.broadcast %cst_156 : f32 to vector<128x1xf32>
    %309 = arith.divf %307, %308 : vector<128x1xf32>
    %310 = vector.broadcast %302 : vector<128x1xf32> to vector<128x32xf32>
    %311 = arith.subf %294, %310 : vector<128x32xf32>
    %cst_157 = arith.constant 9.99999974E-6 : f32
    %312 = vector.broadcast %cst_157 : f32 to vector<128x1xf32>
    %313 = arith.addf %309, %312 : vector<128x1xf32>
    %314 = math.rsqrt %313 : vector<128x1xf32>
    %315 = vector.broadcast %314 : vector<128x1xf32> to vector<128x32xf32>
    %316 = arith.mulf %311, %315 : vector<128x32xf32>
    %317 = vector.broadcast %296 : vector<1x32xf32> to vector<128x32xf32>
    %318 = arith.mulf %316, %317 : vector<128x32xf32>
    %319 = vector.broadcast %298 : vector<1x32xf32> to vector<128x32xf32>
    %320 = arith.addf %318, %319 : vector<128x32xf32>
    %c0_158 = arith.constant 0 : index
    %c0_159 = arith.constant 0 : index
    %321 = vector.load %arg20[%c0_158, %c0_159] : memref<32x16xbf16, #tpu.memory_space<vmem>>, vector<32x16xbf16>
    %322 = arith.truncf %320 : vector<128x32xf32> to vector<128x32xbf16>
    %cst_160 = arith.constant dense<0.000000e+00> : vector<128x16xf32>
    %323 = tpu.matmul %322, %321, %cst_160 {dimension_numbers = #tpu.dot_dimension_numbers<[1], [0], [0], [1], [0, 0, 1, 1], [], []>} : vector<128x32xbf16>, vector<32x16xbf16>, vector<128x16xf32> -> vector<128x16xf32>
    %c0_161 = arith.constant 0 : index
    %c0_162 = arith.constant 0 : index
    %324 = vector.load %arg21[%c0_161, %c0_162] : memref<1x16xf32, #tpu.memory_space<vmem>>, vector<1x16xf32>
    %325 = vector.broadcast %324 : vector<1x16xf32> to vector<128x16xf32>
    %326 = arith.addf %323, %325 : vector<128x16xf32>
    %cst_163 = arith.constant 0.000000e+00 : f32
    %327 = vector.broadcast %cst_163 : f32 to vector<128x16xf32>
    %328 = arith.maximumf %326, %327 : vector<128x16xf32>
    %c0_164 = arith.constant 0 : index
    %c0_165 = arith.constant 0 : index
    %329 = vector.load %arg22[%c0_164, %c0_165] : memref<16x16xbf16, #tpu.memory_space<vmem>>, vector<16x16xbf16>
    %330 = arith.truncf %328 : vector<128x16xf32> to vector<128x16xbf16>
    %cst_166 = arith.constant dense<0.000000e+00> : vector<128x16xf32>
    %331 = tpu.matmul %330, %329, %cst_166 {dimension_numbers = #tpu.dot_dimension_numbers<[1], [0], [0], [1], [0, 0, 1, 1], [], []>} : vector<128x16xbf16>, vector<16x16xbf16>, vector<128x16xf32> -> vector<128x16xf32>
    %c0_167 = arith.constant 0 : index
    %c0_168 = arith.constant 0 : index
    %332 = vector.load %arg23[%c0_167, %c0_168] : memref<1x16xf32, #tpu.memory_space<vmem>>, vector<1x16xf32>
    %333 = vector.broadcast %332 : vector<1x16xf32> to vector<128x16xf32>
    %334 = arith.addf %331, %333 : vector<128x16xf32>
    %cst_169 = arith.constant 0.000000e+00 : f32
    %335 = vector.broadcast %cst_169 : f32 to vector<128x16xf32>
    %336 = arith.maximumf %334, %335 : vector<128x16xf32>
    %337 = vector.shape_cast %336 : vector<128x16xf32> to vector<16x8x16xf32>
    %c0_170 = arith.constant 0 : index
    %c0_171 = arith.constant 0 : index
    %338 = vector.load %arg24[%c0_170, %c0_171] : memref<1x16xf32, #tpu.memory_space<vmem>>, vector<1x16xf32>
    %339 = vector.shape_cast %338 : vector<1x16xf32> to vector<1x1x16xf32>
    %340 = vector.broadcast %339 : vector<1x1x16xf32> to vector<16x8x16xf32>
    %341 = arith.mulf %337, %340 : vector<16x8x16xf32>
    %cst_172 = arith.constant dense<0.000000e+00> : vector<16x8xf32>
    %342 = vector.multi_reduction <add>, %341, %cst_172 [2] : vector<16x8x16xf32> to vector<16x8xf32>
    %c0_173 = arith.constant 0 : index
    %c0_174 = arith.constant 0 : index
    %343 = vector.load %arg25[%c0_173, %c0_174] : memref<1x1xf32, #tpu.memory_space<vmem>>, vector<1x1xf32>
    %344 = vector.broadcast %343 : vector<1x1xf32> to vector<16x8xf32>
    %345 = arith.addf %342, %344 : vector<16x8xf32>
    %c0_175 = arith.constant 0 : index
    %c0_176 = arith.constant 0 : index
    %346 = vector.load %arg26[%c0_175, %c0_176] : memref<16x8xf32, #tpu.memory_space<vmem>>, vector<16x8xf32>
    tpu.vector_store %arg26[%c0_175, %c0_176], %345 {strides = array<i32>} : memref<16x8xf32, #tpu.memory_space<vmem>>, vector<16x8xf32>,
    return
  }
  func.func @transform_0(%arg0: i32) -> (i32, i32) {
    %c0_i32 = arith.constant 0 : i32
    %c0_i32_0 = arith.constant 0 : i32
    return %arg0, %c0_i32 : i32, i32
  }
  func.func @transform_1(%arg0: i32) -> (i32, i32) {
    %c0_i32 = arith.constant 0 : i32
    %c0_i32_0 = arith.constant 0 : i32
    %c0_i32_1 = arith.constant 0 : i32
    return %c0_i32, %c0_i32_0 : i32, i32
  }
  func.func @transform_2(%arg0: i32) -> (i32, i32) {
    %c0_i32 = arith.constant 0 : i32
    %c0_i32_0 = arith.constant 0 : i32
    %c0_i32_1 = arith.constant 0 : i32
    return %c0_i32, %c0_i32_0 : i32, i32
  }
  func.func @transform_3(%arg0: i32) -> (i32, i32, i32) {
    %c0_i32 = arith.constant 0 : i32
    %c0_i32_0 = arith.constant 0 : i32
    %c0_i32_1 = arith.constant 0 : i32
    %c0_i32_2 = arith.constant 0 : i32
    return %c0_i32, %c0_i32_0, %c0_i32_1 : i32, i32, i32
  }
  func.func @transform_4(%arg0: i32) -> (i32, i32, i32) {
    %c0_i32 = arith.constant 0 : i32
    %c0_i32_0 = arith.constant 0 : i32
    %c0_i32_1 = arith.constant 0 : i32
    %c0_i32_2 = arith.constant 0 : i32
    return %c0_i32, %c0_i32_0, %c0_i32_1 : i32, i32, i32
  }
  func.func @transform_5(%arg0: i32) -> (i32, i32, i32) {
    %c0_i32 = arith.constant 0 : i32
    %c0_i32_0 = arith.constant 0 : i32
    %c0_i32_1 = arith.constant 0 : i32
    %c0_i32_2 = arith.constant 0 : i32
    return %c0_i32, %c0_i32_0, %c0_i32_1 : i32, i32, i32
  }
  func.func @transform_6(%arg0: i32) -> (i32, i32, i32) {
    %c0_i32 = arith.constant 0 : i32
    %c0_i32_0 = arith.constant 0 : i32
    %c0_i32_1 = arith.constant 0 : i32
    %c0_i32_2 = arith.constant 0 : i32
    return %c0_i32, %c0_i32_0, %c0_i32_1 : i32, i32, i32
  }
  func.func @transform_7(%arg0: i32) -> (i32, i32, i32) {
    %c0_i32 = arith.constant 0 : i32
    %c0_i32_0 = arith.constant 0 : i32
    %c0_i32_1 = arith.constant 0 : i32
    %c0_i32_2 = arith.constant 0 : i32
    return %c0_i32, %c0_i32_0, %c0_i32_1 : i32, i32, i32
  }
  func.func @transform_8(%arg0: i32) -> (i32, i32, i32) {
    %c0_i32 = arith.constant 0 : i32
    %c0_i32_0 = arith.constant 0 : i32
    %c0_i32_1 = arith.constant 0 : i32
    %c0_i32_2 = arith.constant 0 : i32
    return %c0_i32, %c0_i32_0, %c0_i32_1 : i32, i32, i32
  }
  func.func @transform_9(%arg0: i32) -> (i32, i32, i32) {
    %c0_i32 = arith.constant 0 : i32
    %c0_i32_0 = arith.constant 0 : i32
    %c0_i32_1 = arith.constant 0 : i32
    %c0_i32_2 = arith.constant 0 : i32
    return %c0_i32, %c0_i32_0, %c0_i32_1 : i32, i32, i32
  }
  func.func @transform_10(%arg0: i32) -> (i32, i32, i32) {
    %c0_i32 = arith.constant 0 : i32
    %c0_i32_0 = arith.constant 0 : i32
    %c0_i32_1 = arith.constant 0 : i32
    %c0_i32_2 = arith.constant 0 : i32
    return %c0_i32, %c0_i32_0, %c0_i32_1 : i32, i32, i32
  }
  func.func @transform_11(%arg0: i32) -> (i32, i32, i32) {
    %c0_i32 = arith.constant 0 : i32
    %c0_i32_0 = arith.constant 0 : i32
    %c0_i32_1 = arith.constant 0 : i32
    %c0_i32_2 = arith.constant 0 : i32
    return %c0_i32, %c0_i32_0, %c0_i32_1 : i32, i32, i32
  }
  func.func @transform_12(%arg0: i32) -> (i32, i32, i32) {
    %c0_i32 = arith.constant 0 : i32
    %c0_i32_0 = arith.constant 0 : i32
    %c0_i32_1 = arith.constant 0 : i32
    %c0_i32_2 = arith.constant 0 : i32
    return %c0_i32, %c0_i32_0, %c0_i32_1 : i32, i32, i32
  }
  func.func @transform_13(%arg0: i32) -> (i32, i32, i32) {
    %c0_i32 = arith.constant 0 : i32
    %c0_i32_0 = arith.constant 0 : i32
    %c0_i32_1 = arith.constant 0 : i32
    %c0_i32_2 = arith.constant 0 : i32
    return %c0_i32, %c0_i32_0, %c0_i32_1 : i32, i32, i32
  }
  func.func @transform_14(%arg0: i32) -> (i32, i32, i32) {
    %c0_i32 = arith.constant 0 : i32
    %c0_i32_0 = arith.constant 0 : i32
    %c0_i32_1 = arith.constant 0 : i32
    %c0_i32_2 = arith.constant 0 : i32
    return %c0_i32, %c0_i32_0, %c0_i32_1 : i32, i32, i32
  }
  func.func @transform_15(%arg0: i32) -> (i32, i32, i32) {
    %c0_i32 = arith.constant 0 : i32
    %c0_i32_0 = arith.constant 0 : i32
    %c0_i32_1 = arith.constant 0 : i32
    %c0_i32_2 = arith.constant 0 : i32
    return %c0_i32, %c0_i32_0, %c0_i32_1 : i32, i32, i32
  }
  func.func @transform_16(%arg0: i32) -> (i32, i32, i32) {
    %c0_i32 = arith.constant 0 : i32
    %c0_i32_0 = arith.constant 0 : i32
    %c0_i32_1 = arith.constant 0 : i32
    %c0_i32_2 = arith.constant 0 : i32
    return %c0_i32, %c0_i32_0, %c0_i32_1 : i32, i32, i32
  }
  func.func @transform_17(%arg0: i32) -> (i32, i32, i32) {
    %c0_i32 = arith.constant 0 : i32
    %c0_i32_0 = arith.constant 0 : i32
    %c0_i32_1 = arith.constant 0 : i32
    %c0_i32_2 = arith.constant 0 : i32
    return %c0_i32, %c0_i32_0, %c0_i32_1 : i32, i32, i32
  }
  func.func @transform_18(%arg0: i32) -> (i32, i32, i32) {
    %c0_i32 = arith.constant 0 : i32
    %c0_i32_0 = arith.constant 0 : i32
    %c0_i32_1 = arith.constant 0 : i32
    %c0_i32_2 = arith.constant 0 : i32
    return %c0_i32, %c0_i32_0, %c0_i32_1 : i32, i32, i32
  }
  func.func @transform_19(%arg0: i32) -> (i32, i32) {
    %c0_i32 = arith.constant 0 : i32
    %c0_i32_0 = arith.constant 0 : i32
    %c0_i32_1 = arith.constant 0 : i32
    return %c0_i32, %c0_i32_0 : i32, i32
  }
  func.func @transform_20(%arg0: i32) -> (i32, i32) {
    %c0_i32 = arith.constant 0 : i32
    %c0_i32_0 = arith.constant 0 : i32
    %c0_i32_1 = arith.constant 0 : i32
    return %c0_i32, %c0_i32_0 : i32, i32
  }
  func.func @transform_21(%arg0: i32) -> (i32, i32) {
    %c0_i32 = arith.constant 0 : i32
    %c0_i32_0 = arith.constant 0 : i32
    %c0_i32_1 = arith.constant 0 : i32
    return %c0_i32, %c0_i32_0 : i32, i32
  }
  func.func @transform_22(%arg0: i32) -> (i32, i32) {
    %c0_i32 = arith.constant 0 : i32
    %c0_i32_0 = arith.constant 0 : i32
    %c0_i32_1 = arith.constant 0 : i32
    return %c0_i32, %c0_i32_0 : i32, i32
  }
  func.func @transform_23(%arg0: i32) -> (i32, i32) {
    %c0_i32 = arith.constant 0 : i32
    %c0_i32_0 = arith.constant 0 : i32
    %c0_i32_1 = arith.constant 0 : i32
    return %c0_i32, %c0_i32_0 : i32, i32
  }
  func.func @transform_24(%arg0: i32) -> (i32, i32) {
    %c0_i32 = arith.constant 0 : i32
    %c0_i32_0 = arith.constant 0 : i32
    %c0_i32_1 = arith.constant 0 : i32
    return %c0_i32, %c0_i32_0 : i32, i32
  }
  func.func @transform_25(%arg0: i32) -> (i32, i32) {
    %c0_i32 = arith.constant 0 : i32
    %c0_i32_0 = arith.constant 0 : i32
    return %arg0, %c0_i32 : i32, i32
  }
}

</mosaic_0001>

<bundles_post_ra>
// kernel: tpu_custom_call.1
= control target key start
LH: loop header
LB: loop body
LE: loop exit
PB: predicated region body
PF: predicated region fallthrough
CT: control target
= control target key end

     0   :  { %s10694_s0 = inlined_call_operand.hbm [shape: f32[32,32], index: 0, kind: input, shape index: {}]   ;;  %s10695_s1 = inlined_call_operand.hbm [shape: bf16[32,96], index: 1, kind: input, shape index: {}]   ;;  %s10696_s2 = inlined_call_operand.hbm [shape: f32[1,96], index: 2, kind: input, shape index: {}]   ;;  %s10697_s3 = inlined_call_operand.hbm [shape: bf16[2,32,96], index: 3, kind: input, shape index: {}]   ;;  %s10698_s4 = inlined_call_operand.hbm [shape: bf16[2,32,32], index: 4, kind: input, shape index: {}]   ;;  %s10699_s5 = inlined_call_operand.hbm [shape: bf16[2,32,32], index: 5, kind: input, shape index: {}]   ;;  %s10700_s6 = inlined_call_operand.hbm [shape: f32[2,1,32], index: 6, kind: input, shape index: {}]   ;;  %s10701_s7 = inlined_call_operand.hbm [shape: bf16[2,32,32], index: 7, kind: input, shape index: {}]   ;;  %s10702_s8 = inlined_call_operand.hbm [shape: f32[2,1,32], index: 8, kind: input, shape index: {}]   ;;  %s10703_s9 = inlined_call_operand.hbm [shape: f32[2,4,32], index: 9, kind: input, shape index: {}]   ;;  %s10704_s10 = inlined_call_operand.hbm [shape: bf16[2,32,64], index: 10, kind: input, shape index: {}]   ;;  %s10705_s11 = inlined_call_operand.hbm [shape: f32[2,1,64], index: 11, kind: input, shape index: {}]   ;;  %s10706_s12 = inlined_call_operand.hbm [shape: bf16[2,64,32], index: 12, kind: input, shape index: {}]   ;;  %s10707_s13 = inlined_call_operand.hbm [shape: f32[2,1,32], index: 13, kind: input, shape index: {}]   ;;  %s10708_s14 = inlined_call_operand.hbm [shape: bf16[2,32,64], index: 14, kind: input, shape index: {}]   ;;  %s10709_s15 = inlined_call_operand.hbm [shape: f32[2,1,64], index: 15, kind: input, shape index: {}]   ;;  %s10710_s16 = inlined_call_operand.hbm [shape: bf16[2,64,32], index: 16, kind: input, shape index: {}]   ;;  %s10711_s17 = inlined_call_operand.hbm [shape: f32[2,1,32], index: 17, kind: input, shape index: {}]   ;;  %s10712_s18 = inlined_call_operand.hbm [shape: f32[2,4,32], index: 18, kind: input, shape index: {}]   ;;  %s10713_s19 = inlined_call_operand.hbm [shape: bf16[32,16], index: 19, kind: input, shape index: {}]   ;;  %s10714_s20 = inlined_call_operand.hbm [shape: f32[1,16], index: 20, kind: input, shape index: {}]   ;;  %s10715_s21 = inlined_call_operand.hbm [shape: bf16[16,16], index: 21, kind: input, shape index: {}]   ;;  %s10716_s22 = inlined_call_operand.hbm [shape: f32[1,16], index: 22, kind: input, shape index: {}]   ;;  %s10717_s23 = inlined_call_operand.hbm [shape: f32[1,16], index: 23, kind: input, shape index: {}]   ;;  %s10718_s24 = inlined_call_operand.<no memory space> [shape: f32[1,1], index: 24, kind: input, shape index: {}]   ;;  %s10719_s25 = inlined_call_operand.hbm [shape: f32[32,8], index: 25, kind: output, shape index: {}]  }
   0x1   :  { %10773 = sst [smem:[#allocation73_spill]] %s10694_s0  ;;  %v30_v0 = vstv %s10718_s24 }
   0x2   :  { %10774 = sst [smem:[#allocation74_spill]] %s10695_s1  ;;  %31 = vst [vmem:[#allocation2] sm:$0x1] %v30_v0 }
   0x3   :  { %10775 = sst [smem:[#allocation75_spill]] %s10696_s2 }
   0x4   :  { %10776 = sst [smem:[#allocation76_spill]] %s10697_s3 }
   0x5   :  { %10777 = sst [smem:[#allocation77_spill]] %s10698_s4 }
   0x6   :  { %10778 = sst [smem:[#allocation78_spill]] %s10699_s5 }
   0x7   :  { %10779 = sst [smem:[#allocation79_spill]] %s10700_s6 }
   0x8   :  { %10780 = sst [smem:[#allocation80_spill]] %s10701_s7 }
   0x9   :  { %10781 = sst [smem:[#allocation81_spill]] %s10702_s8 }
   0xa   :  { %10782 = sst [smem:[#allocation82_spill]] %s10703_s9 }
   0xb   :  { %10783 = sst [smem:[#allocation83_spill]] %s10705_s11 }
   0xc   :  { %10784 = sst [smem:[#allocation84_spill]] %s10707_s13 }
   0xd   :  { %10785 = sst [smem:[#allocation85_spill]] %s10709_s15 }
   0xe   :  { %10786 = sst [smem:[#allocation86_spill]] %s10716_s22 }
   0xf   :  { %10787 = sst [smem:[#allocation87_spill]] %s10717_s23 }
  0x10   :  { %10788 = sst [smem:[#allocation88_spill]] %s10719_s25 }
  0x11   :  { %32 = vsyncpa [#allocation4], 0 }
  0x12   :  { %34 = vsyncpa [#allocation4 + $0x1], 0 }
  0x13   :  { %35 = vsyncpa [#allocation7], 0 }
  0x14   :  { %36 = vsyncpa [#allocation10], 0 }
  0x15   :  { %37 = vsyncpa [#allocation13], 0 }
  0x16   :  { %38 = vsyncpa [#allocation16], 0 }
  0x17   :  { %39 = vsyncpa [#allocation19], 0 }
  0x18   :  { %40 = vsyncpa [#allocation22], 0 }
  0x19   :  { %41 = vsyncpa [#allocation25], 0 }
  0x1a   :  { %42 = vsyncpa [#allocation28], 0 }
  0x1b   :  { %43 = vsyncpa [#allocation31], 0 }
  0x1c   :  { %44 = vsyncpa [#allocation34], 0 }
  0x1d   :  { %45 = vsyncpa [#allocation37], 0 }
  0x1e   :  { %46 = vsyncpa [#allocation40], 0 }
  0x1f   :  { %47 = vsyncpa [#allocation5], 0 }
  0x20   :  { %49 = vsyncpa [#allocation5 + $0x1], 0  ;;  %s8138_s6 = smov 0   ;;  %s8140_s24 = smov 0  }
  0x21   :  { %s8142_s30 = smov 0   ;;  %s8144_s7 = smov 0  }
  0x22 LB: > { %10789 = sst [smem:[#allocation56_spill]] %s7952_s6  ;;  %s7966_s3 = smov [#allocation6]   ;;  %s7964_s7 = sphi %s8144_s7, %s8677_s7   ;;  %s7960_s30 = sphi %s8142_s30, %s10892_s30   ;;  %s7956_s24 = sphi %s8140_s24, %s10891_s24   ;;  %s7952_s6 = sphi %s8138_s6, %s10890_s6  }
  0x23   : > { %10790 = sst [smem:[#allocation57_spill]] %s7956_s24  ;;  %s628_s26 = sshll.u32 %s7966_s3, 4  ;;  %s8164_s26 = int_to_ptr.vmem [resolvable:$true] %s628_s26 }
  0x24   : > { %10791 = sst [smem:[#allocation58_spill]] %s7960_s30  ;;  %s8159_s1 = sadd.s32 4294967295, %s7964_s7  }
  0x25   : > { %10792 = sst [smem:[#allocation59_spill]] %s7964_s7  ;;  %p6050_p0 = scmp.ge.s32.totalorder %s7964_s7, 1 }
  0x26   : > { %10793 = sst [smem:[#allocation60_spill]] %s8159_s1  ;;  %p10743_p1 = scmp.eq.s32.totalorder %s8159_s1, 0 }
  0x27   : > { %p616_p2 = scmp.lt.s32.totalorder %s7964_s7, 3  ;;  %s7967_s27 = smov [#allocation9]  }
  0x28   : > { %s652_s4 = sshll.u32 %s7967_s27, 4  ;;  %s7968_s9 = smov [#allocation12]   ;;  %s8179_s4 = int_to_ptr.vmem [resolvable:$true] %s652_s4 }
  0x29   : > { %p8166_p3 = pnand %p6050_p0, %p616_p2  ;;  %s678_s5 = sshll.u32 %s7968_s9, 4  ;;  %s8181_s5 = int_to_ptr.vmem [resolvable:$true] %s678_s5 }
  0x2a   : > { %s10797_s2 = sld [smem:[#allocation74_spill]] }
  0x2b   : > { %s10794_s8 = scalar_select %p8166_p3, 1, 0 }
  0x2c   : > { %p6771_p5 = pneg %p8166_p3 }
  0x2d   : > { %10795 = sst [smem:[#allocation61_spill]] %s10794_s8 }
  0x2e   : > { %p8175_p6 = pnand %p6771_p5, %p10743_p1 }
  0x30   : > { %s7176_s3 = scalar_lea.hbm %s10797_s2, 256  ;;  %p8191_p8 = pneg %p8175_p6 }
  0x31   : > { %p7177_p7 = scmp.ne.s32.totalorder %s10797_s2, %s7176_s3  ;;  %p7183_p11 = scmp.lt.u32.totalorder %s7176_s3, %s10797_s2 }
  0x33   : > { %p7179_p9 = pnand %p8191_p8, %p7177_p7 }
  0x35   : > { %p7180_p10 = pneg %p7179_p9 }
  0x37   : > { %p7185_p12 = pnand %p7183_p11, %p7180_p10 }
  0x39   : > { %7188 = shalt.err (!%p7185_p12)
}
  0x3a   : > { %s7189_s25 = scalar_lea.vmem %s8164_s26, 256  ;;  %p7197_p5 = scmp.lt.s32.totalorder %s8164_s26, %s8164_s26 }
  0x3b   : > { %p7190_p13 = scmp.ne.s32.totalorder %s8164_s26, %s7189_s25  ;;  %p7198_p4 = scmp.lt.s32.totalorder %s7189_s25, %s7189_s25 }
  0x3d   : > { %p7192_p0 = pnand %p7190_p13, %p8191_p8  ;;  %p7199_p7 = por %p7198_p4, %p7197_p5 }
  0x3f   : > { %p7193_p2 = pneg %p7192_p0 }
  0x41   : > { %p7200_p9 = pnand %p7199_p7, %p7193_p2 }
  0x43   : > { %7203 = shalt.err (!%p7200_p9)
}
  0x44   : > { %s10746_s8 = smov 64   ;;  %s10748_s1 = smov 4  }
  0x45   : > { %6774 = dma.hbm_to_vmem [thread:$0]  (!%p8175_p6), %s10797_s2, 256, %s8164_s26, [#allocation7], %s10746_s8, %s10746_s8, %s10748_s1  }
  0x46   : > { %s10799_s6 = sld [smem:[#allocation76_spill]] }
  0x4c   : > { %s10800_s23 = smov %s10799_s6  ;;  %s7204_s25 = scalar_lea.hbm %s10799_s6, 512 }
  0x4d   : > { %p7205_p4 = scmp.ne.s32.totalorder %s10800_s23, %s7204_s25  ;;  %p7211_p12 = scmp.lt.u32.totalorder %s7204_s25, %s10800_s23 }
  0x4f   : > { %p7207_p10 = pnand %p7205_p4, %p8191_p8 }
  0x51   : > { %p7208_p11 = pneg %p7207_p10 }
  0x53   : > { %p7213_p13 = pnand %p7211_p12, %p7208_p11 }
  0x55   : > { %7216 = shalt.err (!%p7213_p13)
}
  0x56   : > { %s7217_s26 = scalar_lea.vmem %s8179_s4, 512  ;;  %p7225_p7 = scmp.lt.s32.totalorder %s8179_s4, %s8179_s4 }
  0x57   : > { %p7218_p0 = scmp.ne.s32.totalorder %s8179_s4, %s7217_s26  ;;  %p7226_p9 = scmp.lt.s32.totalorder %s7217_s26, %s7217_s26 }
  0x59   : > { %p7220_p2 = pnand %p7218_p0, %p8191_p8  ;;  %p7227_p4 = por %p7226_p9, %p7225_p7 }
  0x5b   : > { %p7221_p5 = pneg %p7220_p2 }
  0x5d   : > { %p7228_p10 = pnand %p7227_p4, %p7221_p5 }
  0x5f   : > { %7231 = shalt.err (!%p7228_p10)
}
  0x60   : > { %6780 = dma.hbm_to_vmem [thread:$0]  (!%p8175_p6), %s10800_s23, 512, %s8179_s4, [#allocation10], %s10746_s8, %s10746_s8, %s10748_s1  }
  0x61   : > { %s10801_s7 = sld [smem:[#allocation78_spill]] }
  0x67   : > { %s10802_s0 = smov %s10801_s7  ;;  %s7232_s29 = scalar_lea.hbm %s10801_s7, 512 }
  0x68   : > { %p7233_p11 = scmp.ne.s32.totalorder %s10802_s0, %s7232_s29  ;;  %p7239_p0 = scmp.lt.u32.totalorder %s7232_s29, %s10802_s0 }
  0x6a   : > { %p7235_p12 = pnand %p7233_p11, %p8191_p8 }
  0x6c   : > { %p7236_p13 = pneg %p7235_p12 }
  0x6e   : > { %p7241_p2 = pnand %p7239_p0, %p7236_p13 }
  0x70   : > { %7244 = shalt.err (!%p7241_p2)
}
  0x71   : > { %s7245_s4 = scalar_lea.vmem %s8181_s5, 512  ;;  %p7253_p4 = scmp.lt.s32.totalorder %s8181_s5, %s8181_s5 }
  0x72   : > { %p7246_p5 = scmp.ne.s32.totalorder %s8181_s5, %s7245_s4  ;;  %p7254_p10 = scmp.lt.s32.totalorder %s7245_s4, %s7245_s4 }
  0x74   : > { %p7248_p7 = pnand %p7246_p5, %p8191_p8  ;;  %p7255_p11 = por %p7254_p10, %p7253_p4 }
  0x76   : > { %p7249_p9 = pneg %p7248_p7 }
  0x78   : > { %p7256_p12 = pnand %p7255_p11, %p7249_p9 }
  0x7a   : > { %7259 = shalt.err (!%p7256_p12)
}
  0x7b   : > { %6786 = dma.hbm_to_vmem [thread:$0]  (!%p8175_p6), %s10802_s0, 512, %s8181_s5, [#allocation13], %s10746_s8, %s10746_s8, %s10748_s1  }
  0x7c   : > { %s7971_s24 = smov [#allocation15]   ;;  %s7972_s7 = smov [#allocation18]  }
  0x7d   : > { %s704_s30 = sshll.u32 %s7971_s24, 4  ;;  %s730_s29 = sshll.u32 %s7972_s7, 4  ;;  %s705_s30 = int_to_ptr.vmem [resolvable:$true] %s704_s30  ;;  %s731_s29 = int_to_ptr.vmem [resolvable:$true] %s730_s29 }
  0x7e   : > { %s10803_s25 = sld [smem:[#allocation80_spill]] }
  0x84   : > { %s7260_s26 = scalar_lea.hbm %s10803_s25, 512 }
  0x85   : > { %p7261_p13 = scmp.ne.s32.totalorder %s10803_s25, %s7260_s26  ;;  %p7267_p5 = scmp.lt.u32.totalorder %s7260_s26, %s10803_s25 }
  0x87   : > { %p7263_p0 = pnand %p7261_p13, %p8191_p8 }
  0x89   : > { %p7264_p2 = pneg %p7263_p0 }
  0x8b   : > { %p7269_p7 = pnand %p7267_p5, %p7264_p2 }
  0x8d   : > { %7272 = shalt.err (!%p7269_p7)
}
  0x8e   : > { %s7273_s5 = scalar_lea.vmem %s705_s30, 512  ;;  %p7281_p11 = scmp.lt.s32.totalorder %s705_s30, %s705_s30 }
  0x8f   : > { %p7274_p9 = scmp.ne.s32.totalorder %s705_s30, %s7273_s5  ;;  %p7282_p12 = scmp.lt.s32.totalorder %s7273_s5, %s7273_s5 }
  0x91   : > { %p7276_p4 = pnand %p7274_p9, %p8191_p8  ;;  %p7283_p1 = por %p7282_p12, %p7281_p11 }
  0x93   : > { %p7277_p10 = pneg %p7276_p4 }
  0x95   : > { %p7284_p3 = pnand %p7283_p1, %p7277_p10 }
  0x97   : > { %7287 = shalt.err (!%p7284_p3)
}
  0x98   : > { %6792 = dma.hbm_to_vmem [thread:$0]  (!%p8175_p6), %s10803_s25, 512, %s705_s30, [#allocation16], %s10746_s8, %s10746_s8, %s10748_s1  }
  0x99   : > { %s10804_s7 = sld [smem:[#allocation82_spill]] }
  0x9f   : > { %s10805_s3 = smov %s10804_s7  ;;  %s7288_s9 = scalar_lea.hbm %s10804_s7, 128 }
  0xa0   : > { %p7289_p1 = scmp.ne.s32.totalorder %s10805_s3, %s7288_s9  ;;  %p7295_p0 = scmp.lt.u32.totalorder %s7288_s9, %s10805_s3 }
  0xa2   : > { %p7291_p3 = pnand %p7289_p1, %p8191_p8 }
  0xa4   : > { %p7292_p13 = pneg %p7291_p3 }
  0xa6   : > { %p7297_p2 = pnand %p7295_p0, %p7292_p13 }
  0xa8   : > { %7300 = shalt.err (!%p7297_p2)
}
  0xa9   : > { %s7301_s23 = scalar_lea.vmem %s731_s29, 128  ;;  %p7309_p4 = scmp.lt.s32.totalorder %s731_s29, %s731_s29 }
  0xaa   : > { %p7302_p5 = scmp.ne.s32.totalorder %s731_s29, %s7301_s23  ;;  %p7310_p10 = scmp.lt.s32.totalorder %s7301_s23, %s7301_s23 }
  0xac   : > { %p7304_p7 = pnand %p7302_p5, %p8191_p8  ;;  %p7311_p11 = por %p7310_p10, %p7309_p4 }
  0xae   : > { %p7305_p9 = pneg %p7304_p7 }
  0xb0   : > { %p7312_p12 = pnand %p7311_p11, %p7305_p9 }
  0xb2   : > { %7315 = shalt.err (!%p7312_p12)
}
  0xb3   : > { %6798 = dma.hbm_to_vmem [thread:$0]  (!%p8175_p6), %s10805_s3, 128, %s731_s29, [#allocation19], %s10746_s8, %s10746_s8, %s10748_s1  }
  0xb4   : > { %s7973_s6 = smov [#allocation21]   ;;  %s7974_s7 = smov [#allocation24]  }
  0xb5   : > { %s756_s24 = sshll.u32 %s7973_s6, 4  ;;  %s782_s9 = sshll.u32 %s7974_s7, 4  ;;  %s757_s24 = int_to_ptr.vmem [resolvable:$true] %s756_s24  ;;  %s783_s9 = int_to_ptr.vmem [resolvable:$true] %s782_s9 }
  0xb6   : > { %s10806_s11 = sld [smem:[#allocation83_spill]] }
  0xbc   : > { %s7316_s22 = scalar_lea.hbm %s10806_s11, 32 }
  0xbd   : > { %p7317_p1 = scmp.ne.s32.totalorder %s10806_s11, %s7316_s22  ;;  %p7323_p0 = scmp.lt.u32.totalorder %s7316_s22, %s10806_s11 }
  0xbf   : > { %p7319_p3 = pnand %p7317_p1, %p8191_p8 }
  0xc1   : > { %p7320_p13 = pneg %p7319_p3 }
  0xc3   : > { %p7325_p2 = pnand %p7323_p0, %p7320_p13 }
  0xc5   : > { %7328 = shalt.err (!%p7325_p2)
}
  0xc6   : > { %s7329_s29 = scalar_lea.vmem %s757_s24, 32  ;;  %p7337_p4 = scmp.lt.s32.totalorder %s757_s24, %s757_s24 }
  0xc7   : > { %p7330_p5 = scmp.ne.s32.totalorder %s757_s24, %s7329_s29  ;;  %p7338_p10 = scmp.lt.s32.totalorder %s7329_s29, %s7329_s29 }
  0xc9   : > { %p7332_p7 = pnand %p7330_p5, %p8191_p8  ;;  %p7339_p11 = por %p7338_p10, %p7337_p4 }
  0xcb   : > { %p7333_p9 = pneg %p7332_p7 }
  0xcd   : > { %p7340_p12 = pnand %p7339_p11, %p7333_p9 }
  0xcf   : > { %7343 = shalt.err (!%p7340_p12)
}
  0xd0   : > { %s10750_s2 = smov 16   ;;  %s10752_s6 = smov 1  }
  0xd1   : > { %6804 = dma.hbm_to_vmem [thread:$0]  (!%p8175_p6), %s10806_s11, 32, %s757_s24, [#allocation22], %s10750_s2, %s10750_s2, %s10752_s6  }
  0xd2   : > { %s10807_s13 = sld [smem:[#allocation84_spill]] }
  0xd8   : > { %s7344_s22 = scalar_lea.hbm %s10807_s13, 32 }
  0xd9   : > { %p7345_p1 = scmp.ne.s32.totalorder %s10807_s13, %s7344_s22  ;;  %p7351_p0 = scmp.lt.u32.totalorder %s7344_s22, %s10807_s13 }
  0xdb   : > { %p7347_p3 = pnand %p7345_p1, %p8191_p8 }
  0xdd   : > { %p7348_p13 = pneg %p7347_p3 }
  0xdf   : > { %p7353_p2 = pnand %p7351_p0, %p7348_p13 }
  0xe1   : > { %7356 = shalt.err (!%p7353_p2)
}
  0xe2   : > { %s7357_s0 = scalar_lea.vmem %s783_s9, 32  ;;  %p7365_p4 = scmp.lt.s32.totalorder %s783_s9, %s783_s9 }
  0xe3   : > { %p7358_p5 = scmp.ne.s32.totalorder %s783_s9, %s7357_s0  ;;  %p7366_p10 = scmp.lt.s32.totalorder %s7357_s0, %s7357_s0 }
  0xe5   : > { %p7360_p7 = pnand %p7358_p5, %p8191_p8  ;;  %p7367_p11 = por %p7366_p10, %p7365_p4 }
  0xe7   : > { %p7361_p9 = pneg %p7360_p7 }
  0xe9   : > { %p7368_p12 = pnand %p7367_p11, %p7361_p9 }
  0xeb   : > { %7371 = shalt.err (!%p7368_p12)
}
  0xec   : > { %6810 = dma.hbm_to_vmem [thread:$0]  (!%p8175_p6), %s10807_s13, 32, %s783_s9, [#allocation25], %s10750_s2, %s10750_s2, %s10752_s6  }
  0xed   : > { %s7977_s26 = smov [#allocation27]   ;;  %s7978_s22 = smov [#allocation30]  }
  0xee   : > { %s808_s4 = sshll.u32 %s7977_s26, 4  ;;  %s834_s5 = sshll.u32 %s7978_s22, 4  ;;  %s809_s4 = int_to_ptr.vmem [resolvable:$true] %s808_s4  ;;  %s835_s5 = int_to_ptr.vmem [resolvable:$true] %s834_s5 }
  0xef   : > { %s10808_s15 = sld [smem:[#allocation85_spill]] }
  0xf5   : > { %s7372_s29 = scalar_lea.hbm %s10808_s15, 32 }
  0xf6   : > { %p7373_p1 = scmp.ne.s32.totalorder %s10808_s15, %s7372_s29  ;;  %p7379_p0 = scmp.lt.u32.totalorder %s7372_s29, %s10808_s15 }
  0xf8   : > { %p7375_p3 = pnand %p7373_p1, %p8191_p8 }
  0xfa   : > { %p7376_p13 = pneg %p7375_p3 }
  0xfc   : > { %p7381_p2 = pnand %p7379_p0, %p7376_p13 }
  0xfe   : > { %7384 = shalt.err (!%p7381_p2)
}
  0xff   : > { %s7385_s9 = scalar_lea.vmem %s809_s4, 32  ;;  %p7393_p4 = scmp.lt.s32.totalorder %s809_s4, %s809_s4 }
 0x100   : > { %p7386_p5 = scmp.ne.s32.totalorder %s809_s4, %s7385_s9  ;;  %p7394_p10 = scmp.lt.s32.totalorder %s7385_s9, %s7385_s9 }
 0x102   : > { %p7388_p7 = pnand %p7386_p5, %p8191_p8  ;;  %p7395_p11 = por %p7394_p10, %p7393_p4 }
 0x104   : > { %p7389_p9 = pneg %p7388_p7 }
 0x106   : > { %p7396_p12 = pnand %p7395_p11, %p7389_p9 }
 0x108   : > { %7399 = shalt.err (!%p7396_p12)
}
 0x109   : > { %6816 = dma.hbm_to_vmem [thread:$0]  (!%p8175_p6), %s10808_s15, 32, %s809_s4, [#allocation28], %s10750_s2, %s10750_s2, %s10752_s6  }
 0x10a   : > { %s7400_s22 = scalar_lea.hbm %s10711_s17, 32 }
 0x10b   : > { %p7401_p1 = scmp.ne.s32.totalorder %s10711_s17, %s7400_s22  ;;  %p7407_p0 = scmp.lt.u32.totalorder %s7400_s22, %s10711_s17 }
 0x10d   : > { %p7403_p3 = pnand %p7401_p1, %p8191_p8 }
 0x10f   : > { %p7404_p13 = pneg %p7403_p3 }
 0x111   : > { %p7409_p2 = pnand %p7407_p0, %p7404_p13 }
 0x113   : > { %7412 = shalt.err (!%p7409_p2)
}
 0x114   : > { %s7413_s24 = scalar_lea.vmem %s835_s5, 32  ;;  %p7421_p4 = scmp.lt.s32.totalorder %s835_s5, %s835_s5 }
 0x115   : > { %p7414_p5 = scmp.ne.s32.totalorder %s835_s5, %s7413_s24  ;;  %p7422_p10 = scmp.lt.s32.totalorder %s7413_s24, %s7413_s24 }
 0x117   : > { %p7416_p7 = pnand %p7414_p5, %p8191_p8  ;;  %p7423_p11 = por %p7422_p10, %p7421_p4 }
 0x119   : > { %p7417_p9 = pneg %p7416_p7 }
 0x11b   : > { %p7424_p12 = pnand %p7423_p11, %p7417_p9 }
 0x11d   : > { %7427 = shalt.err (!%p7424_p12)
}
 0x11e   : > { %6822 = dma.hbm_to_vmem [thread:$0]  (!%p8175_p6), %s10711_s17, 32, %s835_s5, [#allocation31], %s10750_s2, %s10750_s2, %s10752_s6  }
 0x11f   : > { %s7979_s8 = smov [#allocation33]   ;;  %s7980_s7 = smov [#allocation36]  }
 0x120   : > { %s860_s1 = sshll.u32 %s7979_s8, 4  ;;  %s884_s26 = sshll.u32 %s7980_s7, 4  ;;  %s861_s1 = int_to_ptr.vmem [resolvable:$true] %s860_s1  ;;  %s885_s26 = int_to_ptr.vmem [resolvable:$true] %s884_s26 }
 0x121   : > { %s7428_s30 = scalar_lea.hbm %s10713_s19, 256 }
 0x122   : > { %p7429_p1 = scmp.ne.s32.totalorder %s10713_s19, %s7428_s30  ;;  %p7435_p0 = scmp.lt.u32.totalorder %s7428_s30, %s10713_s19 }
 0x124   : > { %p7431_p3 = pnand %p7429_p1, %p8191_p8 }
 0x126   : > { %p7432_p13 = pneg %p7431_p3 }
 0x128   : > { %p7437_p2 = pnand %p7435_p0, %p7432_p13 }
 0x12a   : > { %7440 = shalt.err (!%p7437_p2)
}
 0x12b   : > { %s7441_s5 = scalar_lea.vmem %s861_s1, 256  ;;  %p7449_p4 = scmp.lt.s32.totalorder %s861_s1, %s861_s1 }
 0x12c   : > { %p7442_p5 = scmp.ne.s32.totalorder %s861_s1, %s7441_s5  ;;  %p7450_p10 = scmp.lt.s32.totalorder %s7441_s5, %s7441_s5 }
 0x12e   : > { %p7444_p7 = pnand %p7442_p5, %p8191_p8  ;;  %p7451_p11 = por %p7450_p10, %p7449_p4 }
 0x130   : > { %p7445_p9 = pneg %p7444_p7 }
 0x132   : > { %p7452_p12 = pnand %p7451_p11, %p7445_p9 }
 0x134   : > { %7455 = shalt.err (!%p7452_p12)
}
 0x135   : > { %s10809_s9 = smov 4   ;;  %s10810_s8 = smov 64  }
 0x136   : > { %6828 = dma.hbm_to_vmem [thread:$0]  (!%p8175_p6), %s10713_s19, 256, %s861_s1, [#allocation34], %s10810_s8, %s10810_s8, %s10809_s9  }
 0x137   : > { %s7456_s29 = scalar_lea.hbm %s10715_s21, 128 }
 0x138   : > { %p7457_p1 = scmp.ne.s32.totalorder %s10715_s21, %s7456_s29  ;;  %p7463_p0 = scmp.lt.u32.totalorder %s7456_s29, %s10715_s21 }
 0x13a   : > { %p7459_p3 = pnand %p7457_p1, %p8191_p8 }
 0x13c   : > { %p7460_p13 = pneg %p7459_p3 }
 0x13e   : > { %p7465_p2 = pnand %p7463_p0, %p7460_p13 }
 0x140   : > { %7468 = shalt.err (!%p7465_p2)
}
 0x141   : > { %s7469_s7 = scalar_lea.vmem %s885_s26, 128  ;;  %p7477_p4 = scmp.lt.s32.totalorder %s885_s26, %s885_s26 }
 0x142   : > { %p7470_p5 = scmp.ne.s32.totalorder %s885_s26, %s7469_s7  ;;  %p7478_p10 = scmp.lt.s32.totalorder %s7469_s7, %s7469_s7 }
 0x144   : > { %p7472_p7 = pnand %p7470_p5, %p8191_p8  ;;  %p7479_p11 = por %p7478_p10, %p7477_p4 }
 0x146   : > { %p7473_p9 = pneg %p7472_p7 }
 0x148   : > { %p7480_p12 = pnand %p7479_p11, %p7473_p9 }
 0x14a   : > { %7483 = shalt.err (!%p7480_p12)
}
 0x14b   : > { %6834 = dma.hbm_to_vmem [thread:$0]  (!%p8175_p6), %s10715_s21, 128, %s885_s26, [#allocation37], %s10810_s8, %s10810_s8, %s10809_s9  }
 0x14c   : > { %s7981_s23 = smov [#allocation8]   ;;  %s7982_s29 = smov [#allocation11]  }
 0x14d   : > { %s642_s30 = sshll.u32 %s7981_s23, 4  ;;  %s665_s0 = sshll.u32 %s7982_s29, 4  ;;  %s643_s30 = int_to_ptr.vmem [resolvable:$true] %s642_s30  ;;  %s666_s0 = int_to_ptr.vmem [resolvable:$true] %s665_s0 }
 0x14e   : > { %s10811_s5 = sld [smem:[#allocation75_spill]] }
 0x154   : > { %s7484_s7 = scalar_lea.hbm %s10811_s5, 16 }
 0x155   : > { %p7485_p1 = scmp.ne.s32.totalorder %s10811_s5, %s7484_s7  ;;  %p7491_p0 = scmp.lt.u32.totalorder %s7484_s7, %s10811_s5 }
 0x157   : > { %p7487_p3 = pnand %p7485_p1, %p8191_p8 }
 0x159   : > { %p7488_p13 = pneg %p7487_p3 }
 0x15b   : > { %p7493_p2 = pnand %p7491_p0, %p7488_p13 }
 0x15d   : > { %7496 = shalt.err (!%p7493_p2)
}
 0x15e   : > { %s7497_s26 = scalar_lea.vmem %s643_s30, 16  ;;  %s7504_s22 = scalar_lea.vmem %s643_s30, 32 }
 0x15f   : > { %p7498_p5 = scmp.ne.s32.totalorder %s643_s30, %s7497_s26  ;;  %p7505_p4 = scmp.lt.s32.totalorder %s643_s30, %s643_s30 }
 0x160   : > { %p7506_p10 = scmp.lt.s32.totalorder %s7504_s22, %s7497_s26 }
 0x161   : > { %p7500_p7 = pnand %p7498_p5, %p8191_p8 }
 0x162   : > { %p7507_p11 = por %p7506_p10, %p7505_p4 }
 0x163   : > { %p7501_p9 = pneg %p7500_p7 }
 0x165   : > { %p7508_p12 = pnand %p7507_p11, %p7501_p9 }
 0x167   : > { %7511 = shalt.err (!%p7508_p12)
}
 0x168   : > { %6777 = dma.hbm_to_vmem [thread:$0]  (!%p8175_p6), %s10811_s5, 16, %s643_s30, [#allocation7]  }
 0x169   : > { %s10812_s29 = sld [smem:[#allocation77_spill]] }
 0x16f   : > { %s7512_s24 = scalar_lea.hbm %s10812_s29, 512 }
 0x170   : > { %p7513_p1 = scmp.ne.s32.totalorder %s10812_s29, %s7512_s24  ;;  %p7519_p0 = scmp.lt.u32.totalorder %s7512_s24, %s10812_s29 }
 0x172   : > { %p7515_p3 = pnand %p7513_p1, %p8191_p8 }
 0x174   : > { %p7516_p13 = pneg %p7515_p3 }
 0x176   : > { %p7521_p2 = pnand %p7519_p0, %p7516_p13 }
 0x178   : > { %7524 = shalt.err (!%p7521_p2)
}
 0x179   : > { %s7525_s22 = scalar_lea.vmem %s666_s0, 512  ;;  %p7533_p4 = scmp.lt.s32.totalorder %s666_s0, %s666_s0 }
 0x17a   : > { %p7526_p5 = scmp.ne.s32.totalorder %s666_s0, %s7525_s22  ;;  %p7534_p10 = scmp.lt.s32.totalorder %s7525_s22, %s7525_s22 }
 0x17c   : > { %p7528_p7 = pnand %p7526_p5, %p8191_p8  ;;  %p7535_p11 = por %p7534_p10, %p7533_p4 }
 0x17e   : > { %p7529_p9 = pneg %p7528_p7 }
 0x180   : > { %p7536_p12 = pnand %p7535_p11, %p7529_p9 }
 0x182   : > { %7539 = shalt.err (!%p7536_p12)
}
 0x183   : > { %6783 = dma.hbm_to_vmem [thread:$0]  (!%p8175_p6), %s10812_s29, 512, %s666_s0, [#allocation10], %s10810_s8, %s10810_s8, %s10809_s9  }
 0x184   : > { %s7983_s6 = smov [#allocation14]   ;;  %s7984_s23 = smov [#allocation17]  }
 0x185   : > { %s691_s3 = sshll.u32 %s7983_s6, 4  ;;  %s717_s24 = sshll.u32 %s7984_s23, 4  ;;  %s692_s3 = int_to_ptr.vmem [resolvable:$true] %s691_s3  ;;  %s718_s24 = int_to_ptr.vmem [resolvable:$true] %s717_s24 }
 0x186   : > { %s10813_s1 = sld [smem:[#allocation79_spill]] }
 0x18c   : > { %s7540_s26 = scalar_lea.hbm %s10813_s1, 32 }
 0x18d   : > { %p7541_p1 = scmp.ne.s32.totalorder %s10813_s1, %s7540_s26  ;;  %p7547_p0 = scmp.lt.u32.totalorder %s7540_s26, %s10813_s1 }
 0x18f   : > { %p7543_p3 = pnand %p7541_p1, %p8191_p8 }
 0x191   : > { %p7544_p13 = pneg %p7543_p3 }
 0x193   : > { %p7549_p2 = pnand %p7547_p0, %p7544_p13 }
 0x195   : > { %7552 = shalt.err (!%p7549_p2)
}
 0x196   : > { %s7553_s0 = scalar_lea.vmem %s692_s3, 32  ;;  %p7561_p4 = scmp.lt.s32.totalorder %s692_s3, %s692_s3 }
 0x197   : > { %p7554_p5 = scmp.ne.s32.totalorder %s692_s3, %s7553_s0  ;;  %p7562_p10 = scmp.lt.s32.totalorder %s7553_s0, %s7553_s0 }
 0x199   : > { %p7556_p7 = pnand %p7554_p5, %p8191_p8  ;;  %p7563_p11 = por %p7562_p10, %p7561_p4 }
 0x19b   : > { %p7557_p9 = pneg %p7556_p7 }
 0x19d   : > { %p7564_p12 = pnand %p7563_p11, %p7557_p9 }
 0x19f   : > { %7567 = shalt.err (!%p7564_p12)
}
 0x1a0   : > { %s10814_s5 = smov 1   ;;  %s10815_s2 = smov 16  }
 0x1a1   : > { %6789 = dma.hbm_to_vmem [thread:$0]  (!%p8175_p6), %s10813_s1, 32, %s692_s3, [#allocation13], %s10815_s2, %s10815_s2, %s10814_s5  }
 0x1a2   : > { %s10816_s7 = sld [smem:[#allocation81_spill]] }
 0x1a8   : > { %s10817_s26 = smov %s10816_s7  ;;  %s7568_s22 = scalar_lea.hbm %s10816_s7, 32 }
 0x1a9   : > { %p7569_p1 = scmp.ne.s32.totalorder %s10817_s26, %s7568_s22  ;;  %p7575_p0 = scmp.lt.u32.totalorder %s7568_s22, %s10817_s26 }
 0x1ab   : > { %p7571_p3 = pnand %p7569_p1, %p8191_p8 }
 0x1ad   : > { %p7572_p13 = pneg %p7571_p3 }
 0x1af   : > { %p7577_p2 = pnand %p7575_p0, %p7572_p13 }
 0x1b1   : > { %7580 = shalt.err (!%p7577_p2)
}
 0x1b2   : > { %s7581_s11 = scalar_lea.vmem %s718_s24, 32  ;;  %p7589_p4 = scmp.lt.s32.totalorder %s718_s24, %s718_s24 }
 0x1b3   : > { %p7582_p5 = scmp.ne.s32.totalorder %s718_s24, %s7581_s11  ;;  %p7590_p10 = scmp.lt.s32.totalorder %s7581_s11, %s7581_s11 }
 0x1b5   : > { %p7584_p7 = pnand %p7582_p5, %p8191_p8  ;;  %p7591_p11 = por %p7590_p10, %p7589_p4 }
 0x1b7   : > { %p7585_p9 = pneg %p7584_p7 }
 0x1b9   : > { %p7592_p12 = pnand %p7591_p11, %p7585_p9 }
 0x1bb   : > { %7595 = shalt.err (!%p7592_p12)
}
 0x1bc   : > { %6795 = dma.hbm_to_vmem [thread:$0]  (!%p8175_p6), %s10817_s26, 32, %s718_s24, [#allocation16], %s10815_s2, %s10815_s2, %s10814_s5  }
 0x1bd   : > { %s7985_s3 = smov [#allocation20]   ;;  %s7986_s23 = smov [#allocation23]  }
 0x1be   : > { %s743_s6 = sshll.u32 %s7985_s3, 4  ;;  %s769_s4 = sshll.u32 %s7986_s23, 4  ;;  %s744_s6 = int_to_ptr.vmem [resolvable:$true] %s743_s6  ;;  %s770_s4 = int_to_ptr.vmem [resolvable:$true] %s769_s4 }
 0x1bf   : > { %s7596_s30 = scalar_lea.hbm %s10704_s10, 512 }
 0x1c0   : > { %p7597_p1 = scmp.ne.s32.totalorder %s10704_s10, %s7596_s30  ;;  %p7603_p0 = scmp.lt.u32.totalorder %s7596_s30, %s10704_s10 }
 0x1c2   : > { %p7599_p3 = pnand %p7597_p1, %p8191_p8 }
 0x1c4   : > { %p7600_p13 = pneg %p7599_p3 }
 0x1c6   : > { %p7605_p2 = pnand %p7603_p0, %p7600_p13 }
 0x1c8   : > { %7608 = shalt.err (!%p7605_p2)
}
 0x1c9   : > { %s7609_s24 = scalar_lea.vmem %s744_s6, 512  ;;  %p7617_p4 = scmp.lt.s32.totalorder %s744_s6, %s744_s6 }
 0x1ca   : > { %p7610_p5 = scmp.ne.s32.totalorder %s744_s6, %s7609_s24  ;;  %p7618_p10 = scmp.lt.s32.totalorder %s7609_s24, %s7609_s24 }
 0x1cc   : > { %p7612_p7 = pnand %p7610_p5, %p8191_p8  ;;  %p7619_p11 = por %p7618_p10, %p7617_p4 }
 0x1ce   : > { %p7613_p9 = pneg %p7612_p7 }
 0x1d0   : > { %p7620_p12 = pnand %p7619_p11, %p7613_p9 }
 0x1d2   : > { %7623 = shalt.err (!%p7620_p12)
}
 0x1d3   : > { %6801 = dma.hbm_to_vmem [thread:$0]  (!%p8175_p6), %s10704_s10, 512, %s744_s6, [#allocation19], %s10810_s8, %s10810_s8, %s10809_s9  }
 0x1d4   : > { %s7624_s3 = scalar_lea.hbm %s10706_s12, 1024 }
 0x1d5   : > { %p7625_p1 = scmp.ne.s32.totalorder %s10706_s12, %s7624_s3  ;;  %p7631_p0 = scmp.lt.u32.totalorder %s7624_s3, %s10706_s12 }
 0x1d7   : > { %p7627_p3 = pnand %p7625_p1, %p8191_p8 }
 0x1d9   : > { %p7628_p13 = pneg %p7627_p3 }
 0x1db   : > { %p7633_p2 = pnand %p7631_p0, %p7628_p13 }
 0x1dd   : > { %7636 = shalt.err (!%p7633_p2)
}
 0x1de   : > { %s7637_s0 = scalar_lea.vmem %s770_s4, 1024  ;;  %p7645_p4 = scmp.lt.s32.totalorder %s770_s4, %s770_s4 }
 0x1df   : > { %p7638_p5 = scmp.ne.s32.totalorder %s770_s4, %s7637_s0  ;;  %p7646_p10 = scmp.lt.s32.totalorder %s7637_s0, %s7637_s0 }
 0x1e1   : > { %p7640_p7 = pnand %p7638_p5, %p8191_p8  ;;  %p7647_p11 = por %p7646_p10, %p7645_p4 }
 0x1e3   : > { %p7641_p9 = pneg %p7640_p7 }
 0x1e5   : > { %p7648_p12 = pnand %p7647_p11, %p7641_p9 }
 0x1e7   : > { %7651 = shalt.err (!%p7648_p12)
}
 0x1e8   : > { %6807 = dma.hbm_to_vmem [thread:$0]  (!%p8175_p6), %s10706_s12, 1024, %s770_s4, [#allocation22], %s10810_s8, %s10810_s8, %s10809_s9  }
 0x1e9   : > { %s7987_s13 = smov [#allocation26]   ;;  %s7988_s1 = smov [#allocation29]  }
 0x1ea   : > { %s795_s24 = sshll.u32 %s7987_s13, 4  ;;  %s821_s5 = sshll.u32 %s7988_s1, 4  ;;  %s796_s24 = int_to_ptr.vmem [resolvable:$true] %s795_s24  ;;  %s822_s5 = int_to_ptr.vmem [resolvable:$true] %s821_s5 }
 0x1eb   : > { %s7652_s3 = scalar_lea.hbm %s10708_s14, 512 }
 0x1ec   : > { %p7653_p1 = scmp.ne.s32.totalorder %s10708_s14, %s7652_s3  ;;  %p7659_p0 = scmp.lt.u32.totalorder %s7652_s3, %s10708_s14 }
 0x1ee   : > { %p7655_p3 = pnand %p7653_p1, %p8191_p8 }
 0x1f0   : > { %p7656_p13 = pneg %p7655_p3 }
 0x1f2   : > { %p7661_p2 = pnand %p7659_p0, %p7656_p13 }
 0x1f4   : > { %7664 = shalt.err (!%p7661_p2)
}
 0x1f5   : > { %s7665_s4 = scalar_lea.vmem %s796_s24, 512  ;;  %p7673_p4 = scmp.lt.s32.totalorder %s796_s24, %s796_s24 }
 0x1f6   : > { %p7666_p5 = scmp.ne.s32.totalorder %s796_s24, %s7665_s4  ;;  %p7674_p10 = scmp.lt.s32.totalorder %s7665_s4, %s7665_s4 }
 0x1f8   : > { %p7668_p7 = pnand %p7666_p5, %p8191_p8  ;;  %p7675_p11 = por %p7674_p10, %p7673_p4 }
 0x1fa   : > { %p7669_p9 = pneg %p7668_p7 }
 0x1fc   : > { %p7676_p12 = pnand %p7675_p11, %p7669_p9 }
 0x1fe   : > { %7679 = shalt.err (!%p7676_p12)
}
 0x1ff   : > { %6813 = dma.hbm_to_vmem [thread:$0]  (!%p8175_p6), %s10708_s14, 512, %s796_s24, [#allocation25], %s10810_s8, %s10810_s8, %s10809_s9  }
 0x200   : > { %s7680_s1 = scalar_lea.hbm %s10710_s16, 1024 }
 0x201   : > { %p7681_p1 = scmp.ne.s32.totalorder %s10710_s16, %s7680_s1  ;;  %p7687_p0 = scmp.lt.u32.totalorder %s7680_s1, %s10710_s16 }
 0x203   : > { %p7683_p3 = pnand %p7681_p1, %p8191_p8 }
 0x205   : > { %p7684_p13 = pneg %p7683_p3 }
 0x207   : > { %p7689_p2 = pnand %p7687_p0, %p7684_p13 }
 0x209   : > { %7692 = shalt.err (!%p7689_p2)
}
 0x20a   : > { %s7693_s7 = scalar_lea.vmem %s822_s5, 1024  ;;  %p7701_p4 = scmp.lt.s32.totalorder %s822_s5, %s822_s5 }
 0x20b   : > { %p7694_p5 = scmp.ne.s32.totalorder %s822_s5, %s7693_s7  ;;  %p7702_p10 = scmp.lt.s32.totalorder %s7693_s7, %s7693_s7 }
 0x20d   : > { %p7696_p7 = pnand %p7694_p5, %p8191_p8  ;;  %p7703_p11 = por %p7702_p10, %p7701_p4 }
 0x20f   : > { %p7697_p9 = pneg %p7696_p7 }
 0x211   : > { %p7704_p12 = pnand %p7703_p11, %p7697_p9 }
 0x213   : > { %7707 = shalt.err (!%p7704_p12)
}
 0x214   : > { %6819 = dma.hbm_to_vmem [thread:$0]  (!%p8175_p6), %s10710_s16, 1024, %s822_s5, [#allocation28], %s10810_s8, %s10810_s8, %s10809_s9  }
 0x215   : > { %s7989_s30 = smov [#allocation32]   ;;  %s7990_s0 = smov [#allocation35]  }
 0x216   : > { %s847_s4 = sshll.u32 %s7989_s30, 4  ;;  %s874_s6 = sshll.u32 %s7990_s0, 4  ;;  %s848_s4 = int_to_ptr.vmem [resolvable:$true] %s847_s4  ;;  %s875_s6 = int_to_ptr.vmem [resolvable:$true] %s874_s6 }
 0x217   : > { %s7708_s1 = scalar_lea.hbm %s10712_s18, 128 }
 0x218   : > { %p7709_p1 = scmp.ne.s32.totalorder %s10712_s18, %s7708_s1  ;;  %p7715_p0 = scmp.lt.u32.totalorder %s7708_s1, %s10712_s18 }
 0x21a   : > { %p7711_p3 = pnand %p7709_p1, %p8191_p8 }
 0x21c   : > { %p7712_p13 = pneg %p7711_p3 }
 0x21e   : > { %p7717_p2 = pnand %p7715_p0, %p7712_p13 }
 0x220   : > { %7720 = shalt.err (!%p7717_p2)
}
 0x221   : > { %s7721_s5 = scalar_lea.vmem %s848_s4, 128  ;;  %p7729_p4 = scmp.lt.s32.totalorder %s848_s4, %s848_s4 }
 0x222   : > { %p7722_p5 = scmp.ne.s32.totalorder %s848_s4, %s7721_s5  ;;  %p7730_p10 = scmp.lt.s32.totalorder %s7721_s5, %s7721_s5 }
 0x224   : > { %p7724_p7 = pnand %p7722_p5, %p8191_p8  ;;  %p7731_p11 = por %p7730_p10, %p7729_p4 }
 0x226   : > { %p7725_p9 = pneg %p7724_p7 }
 0x228   : > { %p7732_p12 = pnand %p7731_p11, %p7725_p9 }
 0x22a   : > { %7735 = shalt.err (!%p7732_p12)
}
 0x22b   : > { %6825 = dma.hbm_to_vmem [thread:$0]  (!%p8175_p6), %s10712_s18, 128, %s848_s4, [#allocation31], %s10810_s8, %s10810_s8, %s10809_s9  }
 0x22c   : > { %s7736_s0 = scalar_lea.hbm %s10714_s20, 16 }
 0x22d   : > { %p7737_p1 = scmp.ne.s32.totalorder %s10714_s20, %s7736_s0  ;;  %p7743_p0 = scmp.lt.u32.totalorder %s7736_s0, %s10714_s20 }
 0x22f   : > { %p7739_p3 = pnand %p7737_p1, %p8191_p8 }
 0x231   : > { %p7740_p13 = pneg %p7739_p3 }
 0x233   : > { %p7745_p2 = pnand %p7743_p0, %p7740_p13 }
 0x235   : > { %7748 = shalt.err (!%p7745_p2)
}
 0x236   : > { %s7749_s15 = scalar_lea.vmem %s875_s6, 16  ;;  %s7756_s9 = scalar_lea.vmem %s875_s6, 32 }
 0x237   : > { %p7750_p5 = scmp.ne.s32.totalorder %s875_s6, %s7749_s15  ;;  %p7757_p4 = scmp.lt.s32.totalorder %s875_s6, %s875_s6 }
 0x238   : > { %p7758_p10 = scmp.lt.s32.totalorder %s7756_s9, %s7749_s15 }
 0x239   : > { %p7752_p7 = pnand %p7750_p5, %p8191_p8 }
 0x23a   : > { %p7759_p11 = por %p7758_p10, %p7757_p4 }
 0x23b   : > { %p7753_p9 = pneg %p7752_p7 }
 0x23d   : > { %p7760_p12 = pnand %p7759_p11, %p7753_p9 }
 0x23f   : > { %7763 = shalt.err (!%p7760_p12)
}
 0x240   : > { %6831 = dma.hbm_to_vmem [thread:$0]  (!%p8175_p6), %s10714_s20, 16, %s875_s6, [#allocation34]  }
 0x241   : > { %s7991_s3 = smov [#allocation38]   ;;  %s7992_s5 = smov [#allocation39]  }
 0x242   : > { %s898_s23 = sshll.u32 %s7991_s3, 4  ;;  %s909_s7 = sshll.u32 %s7992_s5, 4  ;;  %s899_s23 = int_to_ptr.vmem [resolvable:$true] %s898_s23  ;;  %s910_s7 = int_to_ptr.vmem [resolvable:$true] %s909_s7 }
 0x243   : > { %s10818_s30 = sld [smem:[#allocation86_spill]] }
 0x249   : > { %s10819_s0 = smov %s10818_s30  ;;  %s7764_s11 = scalar_lea.hbm %s10818_s30, 16 }
 0x24a   : > { %p7765_p1 = scmp.ne.s32.totalorder %s10819_s0, %s7764_s11  ;;  %p7771_p0 = scmp.lt.u32.totalorder %s7764_s11, %s10819_s0 }
 0x24c   : > { %p7767_p3 = pnand %p7765_p1, %p8191_p8 }
 0x24e   : > { %p7768_p13 = pneg %p7767_p3 }
 0x250   : > { %p7773_p2 = pnand %p7771_p0, %p7768_p13 }
 0x252   : > { %7776 = shalt.err (!%p7773_p2)
}
 0x253   : > { %s7777_s6 = scalar_lea.vmem %s899_s23, 16  ;;  %s7784_s9 = scalar_lea.vmem %s899_s23, 32 }
 0x254   : > { %p7778_p5 = scmp.ne.s32.totalorder %s899_s23, %s7777_s6  ;;  %p7785_p4 = scmp.lt.s32.totalorder %s899_s23, %s899_s23 }
 0x255   : > { %p7786_p10 = scmp.lt.s32.totalorder %s7784_s9, %s7777_s6 }
 0x256   : > { %p7780_p7 = pnand %p7778_p5, %p8191_p8 }
 0x257   : > { %p7787_p11 = por %p7786_p10, %p7785_p4 }
 0x258   : > { %p7781_p9 = pneg %p7780_p7 }
 0x25a   : > { %p7788_p12 = pnand %p7787_p11, %p7781_p9 }
 0x25c   : > { %7791 = shalt.err (!%p7788_p12)
}
 0x25d   : > { %6837 = dma.hbm_to_vmem [thread:$0]  (!%p8175_p6), %s10819_s0, 16, %s899_s23, [#allocation37]  }
 0x25e   : > { %s10820_s24 = sld [smem:[#allocation87_spill]] }
 0x264   : > { %s10821_s22 = smov %s10820_s24  ;;  %s7792_s30 = scalar_lea.hbm %s10820_s24, 16 }
 0x265   : > { %p7793_p1 = scmp.ne.s32.totalorder %s10821_s22, %s7792_s30  ;;  %p7799_p0 = scmp.lt.u32.totalorder %s7792_s30, %s10821_s22 }
 0x267   : > { %p7795_p3 = pnand %p7793_p1, %p8191_p8 }
 0x269   : > { %p7796_p13 = pneg %p7795_p3 }
 0x26b   : > { %p7801_p2 = pnand %p7799_p0, %p7796_p13 }
 0x26d   : > { %7804 = shalt.err (!%p7801_p2)
}
 0x26e   : > { %s7805_s15 = scalar_lea.vmem %s910_s7, 16  ;;  %s7812_s23 = scalar_lea.vmem %s910_s7, 32 }
 0x26f   : > { %p7806_p5 = scmp.ne.s32.totalorder %s910_s7, %s7805_s15  ;;  %p7813_p4 = scmp.lt.s32.totalorder %s910_s7, %s910_s7 }
 0x270   : > { %p7814_p10 = scmp.lt.s32.totalorder %s7812_s23, %s7805_s15 }
 0x271   : > { %p7808_p7 = pnand %p7806_p5, %p8191_p8 }
 0x272   : > { %p7815_p11 = por %p7814_p10, %p7813_p4 }
 0x273   : > { %p7809_p9 = pneg %p7808_p7 }
 0x275   : > { %p7816_p12 = pnand %p7815_p11, %p7809_p9 }
 0x277   : > { %7819 = shalt.err (!%p7816_p12)
}
 0x278   : > { %s10822_s8 = sld [smem:[#allocation59_spill]]  ;;  %s10823_s4 = sld [smem:[#allocation58_spill]] }
 0x279   : > { %s10824_s3 = sld [smem:[#allocation57_spill]]  ;;  %s10825_s27 = sld [smem:[#allocation56_spill]] }
 0x27a   : > { %s10826_s5 = sld [smem:[#allocation60_spill]] }
 0x27b   : > { %6840 = dma.hbm_to_vmem [thread:$0]  (!%p8175_p6), %s10821_s22, 16, %s910_s7, [#allocation40]  }
 0x27e   : > { %s6049_s24 = sadd.s32 4294967294, %s10822_s8   ;;  %s8677_s7 = sadd.s32 1, %s10822_s8  }
 0x27f   : > { %s62_s28 = sadd.s32 1, %s10823_s4  ;;  %s59_s30 = ssub.s32 %s10822_s8, %s8677_s7 }
 0x280   : > { %p69_p8 = scmp.ne.s32.totalorder %s10823_s4, %s10824_s3  ;;  %p60_p1 = scmp.eq.s32.totalorder %s59_s30, 0 }
 0x281   : > { %p70_p3 = scmp.eq.s32.totalorder %s10822_s8, 0  ;;  %p75_p13 = scmp.ne.s32.totalorder %s10824_s3, %s10825_s27 }
 0x282   : > { %p603_p0 = scmp.eq.s32.totalorder %s10826_s5, 1  ;;  %p10827_p5 = scmp.eq.s32.totalorder %s10826_s5, 0 }
 0x283   : > { %s8689_s11 = scalar_select %p60_p1, %s10823_s4, %s62_s28  }
 0x284   : > { %p71_p2 = por %p70_p3, %p69_p8  ;;  %p8693_p7 = por %p10827_p5, %p75_p13 }
 0x285   : > { %p8697_p6 = por %p603_p0, %p69_p8  ;;  %p609_p9 = scmp.eq.s32.totalorder %s6049_s24, 1 }
 0x286   : > { %p6872_p4 = scmp.lt.s32.totalorder %s10822_s8, 2  ;;  %s923_s2 = sand.u32 1, %s10823_s4  }
 0x287   : > { %s10829_s1 = scalar_select %p8697_p6, 1, 0 }
 0x288   : > { %p8703_p10 = por %p609_p9, %p75_p13  ;;  %s6075_s23 = sshll.u32 %s923_s2, 4 }
 0x289   : > { %s6276_s6 = sshll.u32 %s10822_s8, 8  ;;  %s10831_s27 = sld [smem:[#allocation73_spill]] }
 0x28a   : > { %s10830_s15 = scalar_select %p8703_p10, 1, 0 }
 0x28b   : > { %s927_s28 = scalar_lea.vmem [#allocation3], %s6075_s23  ;;  %p8713_p11 = pnand %p6872_p4, %p71_p2 }
 0x28c   : > { %s934_s30 = sshll.u32 %s927_s28, 4  ;;  %s8719_s8 = scalar_lea.sflag [#allocation4], %s923_s2  ;;  %s8717_s30 = int_to_ptr.vmem [resolvable:$true] %s934_s30 }
 0x28d   : > { %p7822_p8 = pneg %p8713_p11 }
 0x28f   : > { %s8711_s5 = scalar_lea.hbm %s10831_s27, %s6276_s6  ;;  %s7825_s9 = scalar_lea.hbm %s10831_s27, 512 }
 0x290   : > { %s7820_s4 = scalar_lea.hbm %s8711_s5, 256  ;;  %p7826_p13 = scmp.lt.u32.totalorder %s8711_s5, %s10831_s27 }
 0x291   : > { %p7821_p12 = scmp.ne.s32.totalorder %s8711_s5, %s7820_s4  ;;  %p7827_p0 = scmp.lt.u32.totalorder %s7825_s9, %s7820_s4 }
 0x292   : > { %p7829_p5 = scmp.lt.u32.totalorder %s7820_s4, %s8711_s5 }
 0x293   : > { %p7823_p1 = pnand %p7822_p8, %p7821_p12  ;;  %p7828_p2 = por %p7827_p0, %p7826_p13 }
 0x295   : > { %p7824_p3 = pneg %p7823_p1  ;;  %p7830_p9 = por %p7829_p5, %p7828_p2 }
 0x297   : > { %p7831_p4 = pnand %p7830_p9, %p7824_p3 }
 0x299   : > { %7834 = shalt.err (!%p7831_p4)
}
 0x29a   : > { %s7835_s2 = scalar_lea.vmem %s8717_s30, 256  ;;  %s7993_s23 = smov [#allocation3]  }
 0x29b   : > { %p7836_p12 = scmp.ne.s32.totalorder %s8717_s30, %s7835_s2  ;;  %s7840_s6 = sshll.u32 %s7993_s23, 4  ;;  %s7841_s6 = int_to_ptr.vmem [resolvable:$false] %s7840_s6 }
 0x29c   : > { %s7842_s3 = scalar_lea.vmem %s7841_s6, 512  ;;  %p7843_p6 = scmp.lt.s32.totalorder %s8717_s30, %s7841_s6 }
 0x29d   : > { %p7838_p1 = pnand %p7836_p12, %p7822_p8  ;;  %p7844_p13 = scmp.lt.s32.totalorder %s7842_s3, %s7835_s2 }
 0x29f   : > { %p7839_p10 = pneg %p7838_p1  ;;  %p7845_p0 = por %p7844_p13, %p7843_p6 }
 0x2a1   : > { %p7846_p2 = pnand %p7845_p0, %p7839_p10 }
 0x2a3   : > { %7849 = shalt.err (!%p7846_p2)
}
 0x2a4   : > { %s7994_s4 = smov 128   ;;  %s7995_s9 = smov 8  }
 0x2a5   : > { %6844 = dma.hbm_to_vmem [thread:$0]  (!%p8713_p11), %s8711_s5, 256, %s8717_s30, %s8719_s8, %s7994_s4, %s7994_s4, %s7995_s9  }
 0x2a6   : > { %s10833_s28 = sld [smem:[#allocation61_spill]] }
 0x2ac   : > { %p10834_p8 = scmp.ne.s32.totalorder %s10833_s28, 0 }
 0x2ae   : > { %946 = sbr.rel (%p10834_p8) target bundleno = 6327 (0x18b7), region = 120 }
 0x2b5   : > { %s10835_s0 = sld [smem:[#allocation57_spill]] }
 0x2bb   : > { %s8750_s23 = sand.u32 1, %s10835_s0  }
 0x2bc   : > { %s6079_s2 = sshll.u32 %s8750_s23, 4  ;;  %s949_s6 = scalar_lea.sflag [#allocation4], %s8750_s23 }
 0x2bd   : > { %s8756_s3 = scalar_lea.vmem [#allocation3], %s6079_s2 }
 0x2be   : > { %7895 = dma.done.wait (%p8693_p7), %s949_s6, 256  }
 0x2bf   : > { %7897 = vsyncadd (%p8693_p7), %s949_s6, 4294967040  ;;  %s10836_s5 = sld [smem:[#allocation60_spill]] }
 0x2c5   : > { %p10837_p6 = scmp.eq.s32.totalorder %s10836_s5, 0 }
 0x2c7   : > { %7899 = dma.done.wait (%p10837_p6), [#allocation7], 272   ;;  %p10838_p10 = pmov %p10837_p6 }
 0x2c8   : > { %p10839_p11 = pmov %p10837_p6 }
 0x2c9   : > { %7901 = vsyncadd (%p10838_p10), [#allocation7], 4294967024 }
 0x2ca   : > { %7903 = dma.done.wait (%p10839_p11), [#allocation10], 1024   ;;  %p10840_p3 = pmov %p10837_p6 }
 0x2cc   : > { %7905 = vsyncadd (%p10840_p3), [#allocation10], 4294966272  ;;  %p10841_p5 = pmov %p10840_p3 }
 0x2cd   : > { %p10842_p9 = pmov %p10840_p3 }
 0x2ce   : > { %7907 = dma.done.wait (%p10841_p5), [#allocation13], 544  }
 0x2cf   : > { %7909 = vsyncadd (%p10842_p9), [#allocation13], 4294966752  ;;  %p10843_p7 = pmov %p10840_p3 }
 0x2d0   : > { %p10844_p4 = pmov %p10840_p3 }
 0x2d1   : > { %7911 = dma.done.wait (%p10843_p7), [#allocation16], 544  }
 0x2d2   : > { %7913 = vsyncadd (%p10844_p4), [#allocation16], 4294966752  ;;  %p10845_p12 = pmov %p10840_p3 }
 0x2d3   : > { %p10846_p1 = pmov %p10840_p3 }
 0x2d4   : > { %7915 = dma.done.wait (%p10845_p12), [#allocation19], 640  }
 0x2d5   : > { %7917 = vsyncadd (%p10846_p1), [#allocation19], 4294966656  ;;  %p10847_p13 = pmov %p10846_p1 }
 0x2d6   : > { %p10848_p0 = pmov %p10846_p1 }
 0x2d7   : > { %7919 = dma.done.wait (%p10847_p13), [#allocation22], 1056  }
 0x2d8   : > { %7921 = vsyncadd (%p10848_p0), [#allocation22], 4294966240  ;;  %p10849_p2 = pmov %p10848_p0 }
 0x2d9   : > { %p10850_p8 = pmov %p10848_p0 }
 0x2da   : > { %7923 = dma.done.wait (%p10849_p2), [#allocation25], 544  }
 0x2db   : > { %7925 = vsyncadd (%p10850_p8), [#allocation25], 4294966752  ;;  %p10851_p6 = pmov %p10848_p0 }
 0x2dc   : > { %p10852_p10 = pmov %p10848_p0 }
 0x2dd   : > { %7927 = dma.done.wait (%p10851_p6), [#allocation28], 1056  }
 0x2de   : > { %7929 = vsyncadd (%p10852_p10), [#allocation28], 4294966240  ;;  %p10853_p11 = pmov %p10848_p0 }
 0x2df   : > { %p10854_p3 = pmov %p10848_p0 }
 0x2e0   : > { %7931 = dma.done.wait (%p10853_p11), [#allocation31], 160  }
 0x2e1   : > { %7933 = vsyncadd (%p10854_p3), [#allocation31], 4294967136  ;;  %p10855_p5 = pmov %p10848_p0 }
 0x2e2   : > { %p10856_p9 = pmov %p10848_p0 }
 0x2e3   : > { %7935 = dma.done.wait (%p10855_p5), [#allocation34], 272  }
 0x2e4   : > { %7937 = vsyncadd (%p10856_p9), [#allocation34], 4294967024  ;;  %p10857_p7 = pmov %p10848_p0 }
 0x2e5   : > { %p10858_p4 = pmov %p10848_p0 }
 0x2e6   : > { %7939 = dma.done.wait (%p10857_p7), [#allocation37], 144  }
 0x2e7   : > { %7941 = vsyncadd (%p10858_p4), [#allocation37], 4294967152  ;;  %p10859_p12 = pmov %p10848_p0 }
 0x2e8   : > { %p10860_p1 = pmov %p10848_p0 }
 0x2e9   : > { %7943 = dma.done.wait (%p10859_p12), [#allocation40], 16  }
 0x2ea   : > { %7945 = vsyncadd (%p10860_p1), [#allocation40], 4294967280  ;;  %v10759_v1 = vmov 0.0   ;;  %vm7997_vm0 = vmmov 0   ;;  %v6967_v2 = vld [vmem:[#allocation6] sm:$0xff]   ;;  %v6968_v3 = vld [vmem:[#allocation6 + $0x8] sm:$0xff]   ;;  %v1191_v7 = vlaneseq }
 0x2eb   : > { %6405 = vmatprep.subr.bf16.mxu0 %v10759_v1  ;;  %6409 = vmatprep.mubr.msk.bf16.mxu0 %vm7997_vm0, %v10759_v1  ;;  %v1114_v4 = vld [vmem:[%s8756_s3] sm:$0xff]  ;;  %v1115_v5 = vld [vmem:[%s8756_s3 + $0x8] sm:$0xff]  ;;  %vm1140_vm1 = vcmask 261120   ;;  %v7998_v13 = vmov 1966171168   ;;  %s7999_s0 = smov 64  }
 0x2ec   : > { %6413 = vmatprep.subr.bf16.mxu1 %v10759_v1  ;;  %6417 = vmatprep.mubr.msk.bf16.mxu1 %vm7997_vm0, %v10759_v1  ;;  %v1120_v6 = vpack.c.bf16 %v1115_v5, %v1114_v4  ;;  %v1192_v8 = vshrl.u32 %v1191_v7, 7  ;;  %v2003_v9 = vand.u32 127, %v1191_v7  ;;  %v6969_v11 = vld [vmem:[#allocation9] sm:$0xff]   ;;  %v6970_v12 = vld [vmem:[#allocation9 + $0x8] sm:$0xff]   ;;  %v1189_v14 = vunpack.c.l.s4 %v7998_v13  ;;  %v6104_v16 = vld [vmem:[#allocation8] ss:$0 sm:$0xff] }
 0x2ed   : > { %6406 = vmatpush3.bf16.msra.mxu0 %v6967_v2  ;;  %6414 = vmatpush3.bf16.msra.mxu1 %v6969_v11  ;;  %v6971_v19 = vld [vmem:[#allocation11] sm:$0xff]   ;;  %v6972_v28 = vld [vmem:[#allocation11 + $0x8] sm:$0xff]   ;;  %s8000_s13 = smov 96   ;;  %vm2036_vm2 = vcmask 1041409   ;;  %vm2038_vm3 = vcmask 1042434   ;;  %vm2040_vm4 = vcmask 1043459  }
 0x2ee   : > { %6407 = vmatprep.subr.bf16.mxu0 %v10759_v1  ;;  %v8820_v10 = vsub.s32 %v2003_v9, %v1192_v8  ;;  %6415 = vmatprep.subr.bf16.mxu1 %v10759_v1  ;;  %v1190_v15 = vunpack.c.0.s8 %v1189_v14  ;;  %v8834_v27 = vsub.s32 0, %v1192_v8  ;;  %vm2058_vm5 = vcmask 1043456   ;;  %s6277_s30 = sshll.u32 %s10836_s5, 8  ;;  %s1110_s24 = scalar_lea.vmem [#allocation41], %s6079_s2 }
 0x2ef   : > { %vm2042_vm6 = vcmask 1044484   ;;  %vm2044_vm7 = vcmask 1045509   ;;  %vm2046_vm8 = vcmask 1046534   ;;  %vm2048_vm9 = vcmask 1047559   ;;  %s5757_s8 = sshll.u32 %s1110_s24, 4  ;;  %s10884_s28 = sld [smem:[#allocation88_spill]]  ;;  %s10647_s8 = int_to_ptr.vmem [resolvable:$true] %s5757_s8 }
 0x2f0   : > { %v8824_v17 = vsub.s32 %v1190_v15, %v1192_v8  ;;  %vm2054_vm10 = vcmask 64512   ;;  %vm3009_vm11 = vcmask 523264   ;;  %vm5410_vm12 = vcmask 130048   ;;  %s5744_s6 = scalar_lea.sflag [#allocation5], %s8750_s23  ;;  %s7850_s3 = scalar_lea.vmem %s10647_s8, 256 }
 0x2f1   : > { %6408 = vmatpush3.bf16.msra.mxu0 %v6968_v3  ;;  %6416 = vmatpush3.bf16.msra.mxu1 %v6970_v12  ;;  %p7851_p13 = scmp.ne.s32.totalorder %s10647_s8, %s7850_s3  ;;  %p10885_p0 = scmp.ne.s32.totalorder %s10829_s1, 0 }
 0x2f2   : > { %6441 = vmatprep.subr.bf16.mxu1 %v10759_v1  ;;  %10861 = vst [vmem:[#allocation62_spill] sm:$0xff] %v8824_v17  ;;  %6421 = vmatprep.subr.bf16.mxu0 %v6971_v19  ;;  %s8002_s5 = smov [#allocation41]  }
 0x2f3   : > { %p7852_p2 = pnand %p7851_p13, %p10885_p0 }
 0x2f4   : > { %6410 = vmatmul.mubr.msk.bf16.vlgmr.msra.gmra.mrb[0].mxu0 %vm1140_vm1, %v1120_v6 }
 0x2f5   : > { %6422 = vmatpush3.bf16.msra.mxu0 %v6971_v19  ;;  %s10645_s2 = scalar_lea.hbm %s10884_s28, %s6277_s30  ;;  %p7853_p8 = pneg %p7852_p2 }
 0x2f6   : > { %6423 = vmatprep.subr.bf16.mxu0 %v6972_v28 }
 0x2f9   : > { %6424 = vmatpush3.bf16.msra.mxu0 %v6972_v28 }
 0x2fa   : > { %6481 = vmatprep.subr.bf16.mxu0 %v10759_v1 }
 0x3c7   : > { %v1178_v18 = vpop.f32.mrb[0].mxu0 }
 0x3c8   : > { %v8826_v20 = vadd.f32 %v6104_v16, %v1178_v18  ;;  %v6411_v21 = vpop.f32.mrb[1].mxu0 }
 0x3c9   : > { %v1181_v22 = vpop.f32.mrb[2].mxu0 }
 0x3ca   : > { %10862 = vst [vmem:[#allocation63_spill] sm:$0xff] %v8826_v20  ;;  %v8828_v23 = vadd.f32 %v6104_v16, %v1181_v22  ;;  %v6412_v24 = vpop.f32.mrb[3].mxu0  ;;  %v1194_v25 = vrot.slane %v8826_v20, %v8824_v17  ;;  %v1187_v26 = vcombine.high %v8826_v20, %v8826_v20 }
 0x3cc   : > { %10863 = vst [vmem:[#allocation64_spill] sm:$0xff] %v8828_v23  ;;  %v1417_v29 = vpack.c.bf16 %v8828_v23, %v8826_v20  ;;  %v1202_v30 = vcombine.high %v1194_v25, %v1194_v25  ;;  %v1210_v31 = vrot.slane %v1194_v25, %v8824_v17  ;;  %v1201_v32 = vrot.slane %v1187_v26, %v8824_v17 }
 0x3cd   : > { %v1243_v39 = vrot.slane %v8828_v23, %v8824_v17  ;;  %v1236_v45 = vcombine.high %v8828_v23, %v8828_v23 }
 0x3ce   : > { %1419 = vrot.lane.b32.xlu0 %v1417_v29, %s7999_s0  ;;  %v1224_v33 = vrot.slane %v1202_v30, %v8824_v17  ;;  %v1288_v34 = vrot.slane %v1210_v31, %v8834_v27  ;;  %v1232_v37 = vcombine.high %v1210_v31, %v1210_v31  ;;  %v1203_v38 = vcombine.high %v1201_v32, %v1201_v32 }
 0x3cf   : > { %v1217_v42 = vrot.slane %v1201_v32, %v8824_v17  ;;  %v1251_v44 = vcombine.high %v1243_v39, %v1243_v39  ;;  %v1259_v50 = vrot.slane %v1243_v39, %v8824_v17  ;;  %v1250_v54 = vrot.slane %v1236_v45, %v8824_v17 }
 0x3d0   : > { %v1292_v35 = vrot.slane %v1224_v33, %v8834_v27  ;;  %v1234_v36 = vcombine.high %v1224_v33, %v1224_v33  ;;  %v1296_v40 = vrot.slane %v1232_v37, %v8834_v27  ;;  %v1231_v43 = vrot.slane %v1203_v38, %v8824_v17 }
 0x3d1   : > { %v1304_v46 = vrot.slane %v1217_v42, %v8834_v27  ;;  %v1233_v48 = vcombine.high %v1217_v42, %v1217_v42  ;;  %v1273_v53 = vrot.slane %v1251_v44, %v8824_v17  ;;  %v1320_v55 = vrot.slane %v1259_v50, %v8834_v27 }
 0x3d2   : > { %1351 = vrot.lane.b32.xlu1 %v1292_v35, %s8000_s13  ;;  %1349 = vrot.lane.b32.xlu0 %v1288_v34, %s8000_s13  ;;  %v1300_v41 = vrot.slane %v1234_v36, %v8834_v27  ;;  %v1308_v47 = vrot.slane %v1231_v43, %v8834_v27  ;;  %v1235_v49 = vcombine.high %v1231_v43, %v1231_v43 }
 0x3d3   : > { %v1312_v51 = vrot.slane %v1233_v48, %v8834_v27  ;;  %v1324_v56 = vrot.slane %v1273_v53, %v8834_v27  ;;  %v1281_v57 = vcombine.high %v1259_v50, %v1259_v50  ;;  %v1283_v58 = vcombine.high %v1273_v53, %v1273_v53 }
 0x3d4   : > { %v1316_v52 = vrot.slane %v1235_v49, %v8834_v27  ;;  %v1252_v59 = vcombine.high %v1250_v54, %v1250_v54  ;;  %v1266_v62 = vrot.slane %v1250_v54, %v8824_v17 }
 0x3d5   : > { %v1328_v60 = vrot.slane %v1281_v57, %v8834_v27  ;;  %v1332_v61 = vrot.slane %v1283_v58, %v8834_v27 }
 0x3d6   : > { %1353 = vrot.lane.b32.xlu1 %v1296_v40, %s8000_s13  ;;  %1355 = vrot.lane.b32.xlu0 %v1300_v41, %s8000_s13  ;;  %v1280_v63 = vrot.slane %v1252_v59, %v8824_v17  ;;  %v1336_v0 = vrot.slane %v1266_v62, %v8834_v27  ;;  %v1282_v3 = vcombine.high %v1266_v62, %v1266_v62 }
 0x3d8   : > { %v1340_v2 = vrot.slane %v1280_v63, %v8834_v27  ;;  %v1284_v4 = vcombine.high %v1280_v63, %v1280_v63  ;;  %v1344_v5 = vrot.slane %v1282_v3, %v8834_v27 }
 0x3da   : > { %1357 = vrot.lane.b32.xlu1 %v1304_v46, %s8000_s13  ;;  %1359 = vrot.lane.b32.xlu0 %v1308_v47, %s8000_s13  ;;  %v1348_v6 = vrot.slane %v1284_v4, %v8834_v27 }
 0x3de   : > { %1361 = vrot.lane.b32.xlu1 %v1312_v51, %s8000_s13  ;;  %1363 = vrot.lane.b32.xlu0 %v1316_v52, %s8000_s13 }
 0x3e2   : > { %1365 = vrot.lane.b32.xlu1 %v1320_v55, %s8000_s13  ;;  %1367 = vrot.lane.b32.xlu0 %v1324_v56, %s8000_s13 }
 0x3e6   : > { %1369 = vrot.lane.b32.xlu1 %v1328_v60, %s8000_s13  ;;  %1371 = vrot.lane.b32.xlu0 %v1332_v61, %s8000_s13 }
 0x3ea   : > { %1373 = vrot.lane.b32.xlu1 %v1336_v0, %s8000_s13  ;;  %1375 = vrot.lane.b32.xlu0 %v1340_v2, %s8000_s13 }
 0x3ee   : > { %1377 = vrot.lane.b32.xlu1 %v1344_v5, %s8000_s13  ;;  %1379 = vrot.lane.b32.xlu0 %v1348_v6, %s8000_s13 }
 0x440   : > { %v1420_v7 = vpop.permute.xlu0 %1419 }
 0x441   : > { %6418 = vmatmul.mubr.msk.bf16.vlgmr.msra.gmra.mrb[0].mxu1 %vm1140_vm1, %v1420_v7 }
 0x442   : > { %6443 = vmatprep.mubr.msk.bf16.mxu1 %vm7997_vm0, %v10759_v1 }
 0x444   : > { %v1352_v8 = vpop.permute.xlu1 %1351  ;;  %v1350_v9 = vpop.permute.xlu0 %1349 }
 0x445   : > { %v8890_v11 = vadd.f32 %v1352_v8, %v8826_v20  ;;  %v8893_v12 = vadd.f32 %v1350_v9, %v8826_v20 }
 0x447   : > { %10864 = vst [vmem:[#allocation65_spill] sm:$0xff] %v8893_v12  ;;  %v1481_v13 = vpack.c.bf16 %v8890_v11, %v8893_v12 }
 0x448   : > { %v1354_v14 = vpop.permute.xlu1 %1353  ;;  %v1356_v15 = vpop.permute.xlu0 %1355 }
 0x449   : > { %v8898_v16 = vadd.f32 %v1354_v14, %v8826_v20  ;;  %v8901_v18 = vadd.f32 %v1356_v15, %v8826_v20  ;;  %6425 = vmatprep.mubr.msk.bf16.mxu0 %vm1140_vm1, %v1481_v13 }
 0x44b   : > { %10865 = vst [vmem:[#allocation66_spill] sm:$0xff] %v8901_v18  ;;  %v1482_v19 = vpack.c.bf16 %v8901_v18, %v8898_v16 }
 0x44c   : > { %v1358_v21 = vpop.permute.xlu1 %1357  ;;  %v1360_v22 = vpop.permute.xlu0 %1359 }
 0x44d   : > { %v8907_v24 = vadd.f32 %v1358_v21, %v8826_v20  ;;  %v8910_v25 = vadd.f32 %v1360_v22, %v8826_v20  ;;  %6426 = vmatmul.mubr.msk.bf16.vlgmr.msra.gmra.mrb[4].mxu0 %vm1140_vm1, %v1482_v19 }
 0x44f   : > { %10866 = vst [vmem:[#allocation67_spill] sm:$0xff] %v8910_v25  ;;  %v1483_v26 = vpack.c.bf16 %v8910_v25, %v8907_v24 }
 0x450   : > { %v1362_v28 = vpop.permute.xlu1 %1361  ;;  %v1364_v29 = vpop.permute.xlu0 %1363 }
 0x451   : > { %v8916_v30 = vadd.f32 %v1362_v28, %v8826_v20  ;;  %v8919_v31 = vadd.f32 %v1364_v29, %v8826_v20  ;;  %6429 = vmatprep.mubr.msk.bf16.mxu0 %vm1140_vm1, %v1483_v26 }
 0x453   : > { %10867 = vst [vmem:[#allocation68_spill] sm:$0xff] %v8919_v31  ;;  %v1484_v32 = vpack.c.bf16 %v8919_v31, %v8916_v30 }
 0x454   : > { %v1366_v33 = vpop.permute.xlu1 %1365  ;;  %v1368_v34 = vpop.permute.xlu0 %1367 }
 0x455   : > { %v8925_v35 = vadd.f32 %v1366_v33, %v8828_v23  ;;  %v8928_v36 = vadd.f32 %v1368_v34, %v8828_v23  ;;  %6430 = vmatmul.mubr.msk.bf16.gmra.mrb[8].mxu0 %vm1140_vm1, %v1484_v32 }
 0x457   : > { %10868 = vst [vmem:[#allocation69_spill] sm:$0xff] %v8928_v36  ;;  %v1485_v37 = vpack.c.bf16 %v8928_v36, %v8925_v35 }
 0x458   : > { %v1370_v38 = vpop.permute.xlu1 %1369  ;;  %v1372_v39 = vpop.permute.xlu0 %1371 }
 0x459   : > { %v8934_v40 = vadd.f32 %v1370_v38, %v8828_v23  ;;  %v8937_v41 = vadd.f32 %v1372_v39, %v8828_v23  ;;  %6433 = vmatprep.mubr.msk.bf16.mxu0 %vm1140_vm1, %v1485_v37 }
 0x45b   : > { %10869 = vst [vmem:[#allocation70_spill] sm:$0xff] %v8937_v41  ;;  %v1486_v42 = vpack.c.bf16 %v8937_v41, %v8934_v40 }
 0x45c   : > { %v1374_v43 = vpop.permute.xlu1 %1373  ;;  %v1376_v44 = vpop.permute.xlu0 %1375 }
 0x45d   : > { %v8943_v45 = vadd.f32 %v1374_v43, %v8828_v23  ;;  %v8946_v46 = vadd.f32 %v1376_v44, %v8828_v23  ;;  %6434 = vmatmul.mubr.msk.bf16.gmra.mrb[12].mxu0 %vm1140_vm1, %v1486_v42 }
 0x45f   : > { %10870 = vst [vmem:[#allocation71_spill] sm:$0xff] %v8946_v46  ;;  %v1487_v47 = vpack.c.bf16 %v8946_v46, %v8943_v45 }
 0x460   : > { %v1378_v48 = vpop.permute.xlu1 %1377  ;;  %v1380_v49 = vpop.permute.xlu0 %1379 }
 0x461   : > { %v8952_v50 = vadd.f32 %v1378_v48, %v8828_v23  ;;  %v8955_v51 = vadd.f32 %v1380_v49, %v8828_v23  ;;  %6437 = vmatprep.mubr.msk.bf16.mxu0 %vm1140_vm1, %v1487_v47 }
 0x463   : > { %10871 = vst [vmem:[#allocation72_spill] sm:$0xff] %v8955_v51  ;;  %v1488_v52 = vpack.c.bf16 %v8955_v51, %v8952_v50 }
 0x465   : > { %6438 = vmatmul.mubr.msk.bf16.gmra.mrb[16].mxu0 %vm1140_vm1, %v1488_v52 }
 0x466   : > { %6485 = vmatprep.mubr.msk.bf16.mxu0 %vm7997_vm0, %v10759_v1 }
 0x514   : > { %v8963_v53 = vpop.f32.mrb[0].mxu1 }
 0x515   : > { %v6419_v54 = vpop.f32.mrb[1].mxu1  ;;  %1802 = vrot.lane.b32.xlu1 %v8963_v53, %s8000_s13  ;;  %v1624_v13 = vcombine.high %v8963_v53, %v8963_v53  ;;  %v1631_v14 = vrot.slane %v8963_v53, %v8824_v17 }
 0x516   : > { %v8967_v55 = vpop.f32.mrb[2].mxu1 }
 0x517   : > { %v6420_v56 = vpop.f32.mrb[3].mxu1  ;;  %1804 = vrot.lane.b32.xlu0 %v8967_v55, %s8000_s13  ;;  %v1638_v15 = vrot.slane %v1624_v13, %v8824_v17  ;;  %v1673_v19 = vcombine.high %v8967_v55, %v8967_v55  ;;  %v1639_v21 = vcombine.high %v1631_v14, %v1631_v14  ;;  %v1680_v26 = vrot.slane %v8967_v55, %v8824_v17 }
 0x518   : > { %v1647_v29 = vrot.slane %v1631_v14, %v8824_v17 }
 0x519   : > { %v1640_v22 = vcombine.high %v1638_v15, %v1638_v15  ;;  %v1687_v28 = vrot.slane %v1673_v19, %v8824_v17  ;;  %v1661_v32 = vrot.slane %v1639_v21, %v8824_v17  ;;  %v1654_v33 = vrot.slane %v1638_v15, %v8824_v17 }
 0x51a   : > { %v1688_v34 = vcombine.high %v1680_v26, %v1680_v26  ;;  %v1696_v37 = vrot.slane %v1680_v26, %v8824_v17  ;;  %v1669_v42 = vcombine.high %v1647_v29, %v1647_v29  ;;  %v1725_v56 = vrot.slane %v1647_v29, %v8834_v27 }
 0x51b   : > { %v1668_v38 = vrot.slane %v1640_v22, %v8824_v17  ;;  %v1689_v39 = vcombine.high %v1687_v28, %v1687_v28  ;;  %v1671_v43 = vcombine.high %v1661_v32, %v1661_v32  ;;  %v1670_v44 = vcombine.high %v1654_v33, %v1654_v33 }
 0x51c   : > { %v1710_v48 = vrot.slane %v1688_v34, %v8824_v17  ;;  %v1718_v49 = vcombine.high %v1696_v37, %v1696_v37  ;;  %v1703_v52 = vrot.slane %v1687_v28, %v8824_v17  ;;  %v1729_v13 = vrot.slane %v1661_v32, %v8834_v27 }
 0x51d   : > { %v1672_v47 = vcombine.high %v1668_v38, %v1668_v38  ;;  %v9021_v54 = vrot.slane %v1689_v39, %v8824_v17  ;;  %v1733_v14 = vrot.slane %v1669_v42, %v8834_v27  ;;  %v1741_v15 = vrot.slane %v1654_v33, %v8834_v27 }
 0x51e   : > { %v1737_v19 = vrot.slane %v1671_v43, %v8834_v27  ;;  %v1745_v21 = vrot.slane %v1668_v38, %v8834_v27  ;;  %v1749_v22 = vrot.slane %v1670_v44, %v8834_v27  ;;  %v1757_v26 = vrot.slane %v1696_v37, %v8834_v27 }
 0x51f   : > { %v1753_v28 = vrot.slane %v1672_v47, %v8834_v27  ;;  %v1761_v34 = vrot.slane %v1710_v48, %v8834_v27  ;;  %v1765_v29 = vrot.slane %v1718_v49, %v8834_v27  ;;  %v1720_v39 = vcombine.high %v1710_v48, %v1710_v48 }
 0x520   : > { %v8971_v57 = vpop.f32.mrb[4].mxu0  ;;  %v1773_v42 = vrot.slane %v1703_v52, %v8834_v27  ;;  %v1777_v33 = vrot.slane %v9021_v54, %v8834_v27  ;;  %v1719_v43 = vcombine.high %v1703_v52, %v1703_v52  ;;  %v1721_v38 = vcombine.high %v9021_v54, %v9021_v54 }
 0x521   : > { %v8973_v58 = vpop.f32.mrb[5].mxu0 }
 0x522   : > { %v8975_v59 = vpop.f32.mrb[6].mxu0 }
 0x523   : > { %v8977_v60 = vpop.f32.mrb[7].mxu0 }
 0x528   : > { %v8979_v61 = vpop.f32.mrb[8].mxu0 }
 0x529   : > { %v8981_v62 = vpop.f32.mrb[9].mxu0 }
 0x52a   : > { %v8983_v63 = vpop.f32.mrb[10].mxu0 }
 0x52b   : > { %v8985_v0 = vpop.f32.mrb[11].mxu0 }
 0x530   : > { %v8987_v2 = vpop.f32.mrb[12].mxu0 }
 0x531   : > { %v8989_v3 = vpop.f32.mrb[13].mxu0 }
 0x532   : > { %v8991_v4 = vpop.f32.mrb[14].mxu0 }
 0x533   : > { %v8993_v5 = vpop.f32.mrb[15].mxu0 }
 0x538   : > { %v8995_v6 = vpop.f32.mrb[16].mxu0 }
 0x539   : > { %v8997_v7 = vpop.f32.mrb[17].mxu0 }
 0x53a   : > { %v8999_v8 = vpop.f32.mrb[18].mxu0 }
 0x53b   : > { %v9001_v9 = vpop.f32.mrb[19].mxu0 }
 0x587   : > { %v1803_v32 = vpop.permute.xlu1 %1802 }
 0x588   : > { %v1808_v44 = vmul.f32 %v1803_v32, %v1725_v56  ;;  %v1809_v1 = vmul.f32 %v1803_v32, %v1729_v13  ;;  %v1811_v37 = vmul.f32 %v1803_v32, %v1737_v19  ;;  %v1810_v17 = vmul.f32 %v1803_v32, %v1733_v14 }
 0x589   : > { %v1805_v47 = vpop.permute.xlu0 %1804  ;;  %v1812_v51 = vmul.f32 %v1803_v32, %v1741_v15  ;;  %v1813_v46 = vmul.f32 %v1803_v32, %v1745_v21  ;;  %v1814_v41 = vmul.f32 %v1803_v32, %v1749_v22  ;;  %v1815_v49 = vmul.f32 %v1803_v32, %v1753_v28 }
 0x58a   : > { %v1824_v48 = vmul.f32 0.17677669, %v1808_v44  ;;  %v1825_v36 = vmul.f32 0.17677669, %v1809_v1  ;;  %v1827_v31 = vmul.f32 0.17677669, %v1811_v37  ;;  %v1816_v25 = vmul.f32 %v1805_v47, %v1757_v26 }
 0x58b   : > { %v1826_v18 = vmul.f32 0.17677669, %v1810_v17  ;;  %v1828_v12 = vmul.f32 0.17677669, %v1812_v51  ;;  %v1829_v23 = vmul.f32 0.17677669, %v1813_v46  ;;  %v1817_v52 = vmul.f32 %v1805_v47, %v1761_v34 }
 0x58c   : > { %v9040_v20 = vmul.f32 %v1824_v48, %v8973_v58  ;;  %v9043_v54 = vmul.f32 %v1825_v36, %v8977_v60  ;;  %v9046_v56 = vmul.f32 %v8975_v59, %v1827_v31  ;;  %v1830_v13 = vmul.f32 0.17677669, %v1814_v41 }
 0x58d   : > { %v9049_v14 = vmul.f32 %v8971_v57, %v1826_v18  ;;  %v9052_v1 = vmul.f32 %v1828_v12, %v8981_v62  ;;  %v9055_v17 = vmul.f32 %v1829_v23, %v8985_v0  ;;  %v1831_v46 = vmul.f32 0.17677669, %v1815_v49 }
 0x58e   : > { %v1856_v51 = vsel %vm1140_vm1, %v9040_v20, 0.0  ;;  %v1859_v36 = vsel %vm1140_vm1, %v9043_v54, 0.0  ;;  %v2466_v31 = vpack.c.bf16 %v9043_v54, %v9040_v20  ;;  %v1769_v41 = vrot.slane %v1720_v39, %v8834_v27 }
 0x58f   : > { %1857 = vadd.xlane.f32.xlu1 %v1856_v51  ;;  %1860 = vadd.xlane.f32.xlu0 %v1859_v36  ;;  %v2467_v12 = vpack.c.bf16 %v9046_v56, %v9049_v14  ;;  %v1781_v23 = vrot.slane %v1719_v43, %v8834_v27  ;;  %v1785_v18 = vrot.slane %v1721_v38, %v8834_v27  ;;  %v1832_v60 = vmul.f32 0.17677669, %v1816_v25 }
 0x590   : > { %v2468_v57 = vpack.c.bf16 %v9055_v17, %v9052_v1  ;;  %v9071_v58 = vmul.f32 %v8979_v61, %v1830_v13  ;;  %v9074_v59 = vmul.f32 %v8983_v63, %v1831_v46  ;;  %v1833_v62 = vmul.f32 0.17677669, %v1817_v52 }
 0x591   : > { %v1818_v0 = vmul.f32 %v1805_v47, %v1765_v29  ;;  %v1819_v15 = vmul.f32 %v1805_v47, %v1769_v41  ;;  %v1820_v19 = vmul.f32 %v1805_v47, %v1773_v42  ;;  %v1865_v21 = vsel %vm1140_vm1, %v9046_v56, 0.0 }
 0x592   : > { %v1862_v22 = vsel %vm1140_vm1, %v9049_v14, 0.0  ;;  %v2469_v26 = vpack.c.bf16 %v9074_v59, %v9071_v58  ;;  %v9083_v61 = vmul.f32 %v1832_v60, %v8989_v3  ;;  %v9086_v25 = vmul.f32 %v1833_v62, %v8993_v5 }
 0x593   : > { %1866 = vadd.xlane.f32.xlu1 %v1865_v21  ;;  %1863 = vadd.xlane.f32.xlu0 %v1862_v22  ;;  %v1834_v63 = vmul.f32 0.17677669, %v1818_v0  ;;  %v1835_v28 = vmul.f32 0.17677669, %v1819_v15  ;;  %v1836_v34 = vmul.f32 0.17677669, %v1820_v19  ;;  %v1821_v39 = vmul.f32 %v1805_v47, %v1777_v33 }
 0x594   : > { %v1868_v29 = vsel %vm1140_vm1, %v9052_v1, 0.0  ;;  %v1822_v32 = vmul.f32 %v1805_v47, %v1781_v23  ;;  %v1823_v42 = vmul.f32 %v1805_v47, %v1785_v18  ;;  %v1871_v43 = vsel %vm1140_vm1, %v9055_v17, 0.0  ;;  %v6142_v1 = vld [vmem:[#allocation14] ss:$0 sm:$0xff] }
 0x595   : > { %v2470_v3 = vpack.c.bf16 %v9086_v25, %v9083_v61  ;;  %v9095_v38 = vmul.f32 %v8987_v2, %v1834_v63  ;;  %v9098_v5 = vmul.f32 %v8991_v4, %v1835_v28  ;;  %v9101_v44 = vmul.f32 %v1836_v34, %v8997_v7 }
 0x596   : > { %v1837_v37 = vmul.f32 0.17677669, %v1821_v39  ;;  %v1838_v49 = vmul.f32 0.17677669, %v1822_v32  ;;  %v1839_v33 = vmul.f32 0.17677669, %v1823_v42  ;;  %v1985_v60 = vpack.c.bf16 %v8967_v55, %v8967_v55 }
 0x597   : > { %1869 = vadd.xlane.f32.xlu0 %v1868_v29  ;;  %1872 = vadd.xlane.f32.xlu1 %v1871_v43  ;;  %v2471_v47 = vpack.c.bf16 %v9098_v5, %v9095_v38  ;;  %v1874_v7 = vsel %vm1140_vm1, %v9071_v58, 0.0  ;;  %v1877_v52 = vsel %vm1140_vm1, %v9074_v59, 0.0  ;;  %v1886_v46 = vsel %vm1140_vm1, %v9095_v38, 0.0 }
 0x598   : > { %v9106_v48 = vmul.f32 %v1837_v37, %v9001_v9  ;;  %v9109_v2 = vmul.f32 %v8995_v6, %v1838_v49  ;;  %v9112_v4 = vmul.f32 %v8999_v8, %v1839_v33  ;;  %v1880_v6 = vsel %vm1140_vm1, %v9083_v61, 0.0 }
 0x599   : > { %v1883_v8 = vsel %vm1140_vm1, %v9086_v25, 0.0  ;;  %v1889_v51 = vsel %vm1140_vm1, %v9098_v5, 0.0  ;;  %v1892_v36 = vsel %vm1140_vm1, %v9101_v44, 0.0  ;;  %v1984_v62 = vpack.c.bf16 %v8963_v53, %v8963_v53 }
 0x59a   : > { %v2472_v13 = vpack.c.bf16 %v9106_v48, %v9101_v44  ;;  %v2473_v9 = vpack.c.bf16 %v9112_v4, %v9109_v2  ;;  %v1895_v41 = vsel %vm1140_vm1, %v9106_v48, 0.0  ;;  %v1898_v23 = vsel %vm1140_vm1, %v9109_v2, 0.0 }
 0x59b   : > { %1875 = vadd.xlane.f32.xlu0 %v1874_v7  ;;  %1878 = vadd.xlane.f32.xlu1 %v1877_v52  ;;  %v1901_v18 = vsel %vm1140_vm1, %v9112_v4, 0.0 }
 0x59f   : > { %1881 = vadd.xlane.f32.xlu0 %v1880_v6  ;;  %1884 = vadd.xlane.f32.xlu1 %v1883_v8 }
 0x5a3   : > { %1887 = vadd.xlane.f32.xlu0 %v1886_v46  ;;  %1890 = vadd.xlane.f32.xlu1 %v1889_v51 }
 0x5a7   : > { %1893 = vadd.xlane.f32.xlu0 %v1892_v36  ;;  %1896 = vadd.xlane.f32.xlu1 %v1895_v41 }
 0x5ab   : > { %1899 = vadd.xlane.f32.xlu0 %v1898_v23  ;;  %1902 = vadd.xlane.f32.xlu1 %v1901_v18 }
 0x5bc   : > { %2159 = vrot.lane.b32.xlu1 %v1985_v60, %s7999_s0 }
 0x5c1   : > { %2052 = vrot.lane.b32.xlu0 %v1984_v62, %s7999_s0 }
 0x61c   : > { %v1858_v0 = vpop.xlane.xlu1 %1857  ;;  %v1861_v15 = vpop.xlane.xlu0 %1860 }
 0x61d   : > { %v6121_v19 = vclamps-f32 %v1858_v0, 5.0  ;;  %v6122_v21 = vclamps-f32 %v1861_v15, 5.0 }
 0x61f   : > { %v1936_v22 = vmul.f32 1.442695, %v6121_v19  ;;  %v1938_v63 = vmul.f32 1.442695, %v6122_v21 }
 0x620   : > { %v1867_v28 = vpop.xlane.xlu1 %1866  ;;  %v1864_v34 = vpop.xlane.xlu0 %1863 }
 0x621   : > { %7004 = vpow2.f32 %v1936_v22  ;;  %v6124_v29 = vclamps-f32 %v1867_v28, 5.0  ;;  %v6123_v39 = vclamps-f32 %v1864_v34, 5.0 }
 0x622   : > { %7006 = vpow2.f32 %v1938_v63 }
 0x623   : > { %v1942_v55 = vmul.f32 1.442695, %v6124_v29  ;;  %v1940_v32 = vmul.f32 1.442695, %v6123_v39 }
 0x624   : > { %v1870_v42 = vpop.xlane.xlu0 %1869  ;;  %v1873_v43 = vpop.xlane.xlu1 %1872 }
 0x625   : > { %7008 = vpow2.f32 %v1942_v55  ;;  %v6125_v53 = vclamps-f32 %v1870_v42, 5.0  ;;  %v6126_v37 = vclamps-f32 %v1873_v43, 5.0 }
 0x626   : > { %7010 = vpow2.f32 %v1940_v32 }
 0x627   : > { %v1944_v49 = vmul.f32 1.442695, %v6125_v53  ;;  %v1946_v33 = vmul.f32 1.442695, %v6126_v37 }
 0x628   : > { %v1876_v7 = vpop.xlane.xlu0 %1875  ;;  %v1879_v52 = vpop.xlane.xlu1 %1878 }
 0x629   : > { %7012 = vpow2.f32 %v1944_v49  ;;  %v6127_v6 = vclamps-f32 %v1876_v7, 5.0  ;;  %v6128_v8 = vclamps-f32 %v1879_v52, 5.0 }
 0x62a   : > { %7014 = vpow2.f32 %v1946_v33 }
 0x62b   : > { %v7005_v46 = vpop.eup %7004  ;;  %v1948_v51 = vmul.f32 1.442695, %v6127_v6  ;;  %v1950_v36 = vmul.f32 1.442695, %v6128_v8 }
 0x62c   : > { %v7007_v41 = vpop.eup %7006  ;;  %v1968_v23 = vpack.c.bf16 %v7005_v46, %v7005_v46  ;;  %v1882_v18 = vpop.xlane.xlu0 %1881  ;;  %v2226_v22 = vrot.slane %v7005_v46, %v8820_v10 }
 0x62d   : > { %v1885_v60 = vpop.xlane.xlu1 %1884  ;;  %v1969_v62 = vpack.c.bf16 %v7007_v41, %v7007_v41  ;;  %7016 = vpow2.f32 %v1948_v51  ;;  %v6129_v0 = vclamps-f32 %v1882_v18, 5.0  ;;  %v2230_v28 = vrot.slane %v7007_v41, %v8820_v10 }
 0x62e   : > { %v1994_v15 = vunpack.c.l.b16 %v1968_v23  ;;  %7018 = vpow2.f32 %v1950_v36  ;;  %v6130_v19 = vclamps-f32 %v1885_v60, 5.0 }
 0x62f   : > { %v9144_v21 = vpop.eup %7008  ;;  %v1995_v63 = vunpack.c.l.b16 %v1969_v62  ;;  %v1952_v34 = vmul.f32 1.442695, %v6129_v0  ;;  %v2287_v51 = vsel %vm2036_vm2, %v2230_v28, %v2226_v22 }
 0x630   : > { %v7011_v29 = vpop.eup %7010  ;;  %v2007_v39 = vrot.slane %v1994_v15, %v8820_v10  ;;  %v1971_v55 = vpack.c.bf16 %v9144_v21, %v9144_v21  ;;  %v1954_v32 = vmul.f32 1.442695, %v6130_v19  ;;  %v1888_v42 = vpop.xlane.xlu0 %1887  ;;  %v2238_v8 = vrot.slane %v9144_v21, %v8820_v10 }
 0x631   : > { %v1891_v43 = vpop.xlane.xlu1 %1890  ;;  %v2011_v53 = vrot.slane %v1995_v63, %v8820_v10  ;;  %v1970_v37 = vpack.c.bf16 %v7011_v29, %v7011_v29  ;;  %v2234_v49 = vrot.slane %v7011_v29, %v8820_v10  ;;  %7020 = vpow2.f32 %v1952_v34 }
 0x632   : > { %v1997_v33 = vunpack.c.l.b16 %v1971_v55  ;;  %7022 = vpow2.f32 %v1954_v32  ;;  %v6131_v7 = vclamps-f32 %v1888_v42, 5.0  ;;  %v6132_v52 = vclamps-f32 %v1891_v43, 5.0 }
 0x633   : > { %v9153_v6 = vpop.eup %7012  ;;  %v1996_v46 = vunpack.c.l.b16 %v1970_v37  ;;  %v2037_v41 = vsel %vm2036_vm2, %v2011_v53, %v2007_v39  ;;  %v2288_v34 = vsel %vm2038_vm3, %v2234_v49, %v2287_v51 }
 0x634   : > { %v9158_v36 = vpop.eup %7014  ;;  %v1972_v23 = vpack.c.bf16 %v9153_v6, %v9153_v6  ;;  %v1956_v18 = vmul.f32 1.442695, %v6131_v7  ;;  %v1958_v60 = vmul.f32 1.442695, %v6132_v52  ;;  %v1894_v62 = vpop.xlane.xlu0 %1893  ;;  %v2019_v22 = vrot.slane %v1997_v33, %v8820_v10 }
 0x635   : > { %v1897_v0 = vpop.xlane.xlu1 %1896  ;;  %v2015_v15 = vrot.slane %v1996_v46, %v8820_v10  ;;  %v1973_v19 = vpack.c.bf16 %v9158_v36, %v9158_v36  ;;  %v6133_v21 = vclamps-f32 %v1894_v62, 5.0  ;;  %v2242_v32 = vrot.slane %v9153_v6, %v8820_v10 }
 0x636   : > { %v6134_v63 = vclamps-f32 %v1897_v0, 5.0  ;;  %v1998_v28 = vunpack.c.l.b16 %v1972_v23  ;;  %7024 = vpow2.f32 %v1956_v18  ;;  %v2246_v52 = vrot.slane %v9158_v36, %v8820_v10 }
 0x637   : > { %v7017_v29 = vpop.eup %7016  ;;  %v1999_v39 = vunpack.c.l.b16 %v1973_v19  ;;  %7026 = vpow2.f32 %v1958_v60  ;;  %v1960_v55 = vmul.f32 1.442695, %v6133_v21  ;;  %v2039_v43 = vsel %vm2038_vm3, %v2015_v15, %v2037_v41 }
 0x638   : > { %v7019_v42 = vpop.eup %7018  ;;  %v1974_v53 = vpack.c.bf16 %v7017_v29, %v7017_v29  ;;  %v1962_v37 = vmul.f32 1.442695, %v6134_v63  ;;  %v1900_v7 = vpop.xlane.xlu0 %1899  ;;  %v2023_v49 = vrot.slane %v1998_v28, %v8820_v10  ;;  %v2250_v6 = vrot.slane %v7017_v29, %v8820_v10 }
 0x639   : > { %v1903_v33 = vpop.xlane.xlu1 %1902  ;;  %v1975_v46 = vpack.c.bf16 %v7019_v42, %v7019_v42  ;;  %7028 = vpow2.f32 %v1960_v55  ;;  %v6135_v51 = vclamps-f32 %v1900_v7, 5.0  ;;  %v2027_v41 = vrot.slane %v1999_v39, %v8820_v10 }
 0x63a   : > { %v2000_v23 = vunpack.c.l.b16 %v1974_v53  ;;  %7030 = vpow2.f32 %v1962_v37  ;;  %v6136_v18 = vclamps-f32 %v1903_v33, 5.0  ;;  %v2254_v15 = vrot.slane %v7019_v42, %v8820_v10 }
 0x63b   : > { %v7021_v60 = vpop.eup %7020  ;;  %v2001_v62 = vunpack.c.l.b16 %v1975_v46  ;;  %v1964_v0 = vmul.f32 1.442695, %v6135_v51  ;;  %v2289_v28 = vsel %vm2040_vm4, %v2238_v8, %v2288_v34  ;;  %v2041_v55 = vsel %vm2040_vm4, %v2019_v22, %v2039_v43 }
 0x63c   : > { %v7023_v19 = vpop.eup %7022  ;;  %v1976_v21 = vpack.c.bf16 %v7021_v60, %v7021_v60  ;;  %v1966_v36 = vmul.f32 1.442695, %v6136_v18  ;;  %v2053_v63 = vpop.permute.xlu0 %2052  ;;  %v2031_v53 = vrot.slane %v2000_v23, %v8820_v10  ;;  %v2258_v37 = vrot.slane %v7021_v60, %v8820_v10 }
 0x63d   : > { %v1977_v29 = vpack.c.bf16 %v7023_v19, %v7023_v19  ;;  %7032 = vpow2.f32 %v1964_v0  ;;  %v2160_v7 = vpop.permute.xlu1 %2159  ;;  %v2035_v39 = vrot.slane %v2001_v62, %v8820_v10  ;;  %v2060_v42 = vsel %vm2058_vm5, %v2053_v63, 0 }
 0x63e   : > { %v2110_v33 = vunpack.c.l.b16 %v1976_v21  ;;  %7034 = vpow2.f32 %v1966_v36  ;;  %v2262_v51 = vrot.slane %v7023_v19, %v8820_v10  ;;  %v2290_v8 = vsel %vm2042_vm6, %v2242_v32, %v2289_v28  ;;  %6442 = vmatpush3.bf16.msra.mxu1 %v2060_v42 }
 0x63f   : > { %v2111_v46 = vunpack.c.l.b16 %v1977_v29  ;;  %v2043_v22 = vsel %vm2042_vm6, %v2023_v49, %v2041_v55  ;;  %v2165_v23 = vsel %vm2058_vm5, %v2160_v7, 0  ;;  %v2291_v18 = vsel %vm2044_vm7, %v2246_v52, %v2290_v8 }
 0x640   : > { %v7025_v34 = vpop.eup %7024  ;;  %v2121_v43 = vrot.slane %v2110_v33, %v8820_v10  ;;  %v10872_v60 = vmov 0.0   ;;  %v2045_v62 = vsel %vm2044_vm7, %v2027_v41, %v2043_v22  ;;  %v2292_v36 = vsel %vm2046_vm8, %v2250_v6, %v2291_v18 }
 0x641   : > { %6447 = vmatprep.subr.bf16.mxu1 %v10872_v60  ;;  %v7027_v0 = vpop.eup %7026  ;;  %v2125_v21 = vrot.slane %v2111_v46, %v8820_v10  ;;  %v1978_v19 = vpack.c.bf16 %v7025_v34, %v7025_v34  ;;  %v2266_v32 = vrot.slane %v7025_v34, %v8820_v10  ;;  %v2293_v28 = vsel %vm2048_vm9, %v2254_v15, %v2292_v36 }
 0x642   : > { %v1979_v49 = vpack.c.bf16 %v7027_v0, %v7027_v0  ;;  %v2270_v63 = vrot.slane %v7027_v0, %v8820_v10  ;;  %v2047_v55 = vsel %vm2046_vm8, %v2031_v53, %v2045_v62  ;;  %v2303_v7 = vsel %vm2054_vm10, %v2293_v28, 0.0 }
 0x643   : > { %v7029_v52 = vpop.eup %7028  ;;  %v2112_v29 = vunpack.c.l.b16 %v1978_v19  ;;  %v2049_v41 = vsel %vm2048_vm9, %v2035_v39, %v2047_v55  ;;  %v2294_v33 = vsel %vm2036_vm2, %v2262_v51, %v2258_v37  ;;  %2304 = vadd.xlane.f32.xlu1 %v2303_v7  ;;  %v2150_v62 = vsel %vm2036_vm2, %v2125_v21, %v2121_v43 }
 0x644   : > { %v7031_v42 = vpop.eup %7030  ;;  %v2113_v46 = vunpack.c.l.b16 %v1979_v49  ;;  %v1980_v8 = vpack.c.bf16 %v7029_v52, %v7029_v52  ;;  %v2050_v6 = vpack.c.b16 %v2049_v41, %v2049_v41  ;;  %v2274_v22 = vrot.slane %v7029_v52, %v8820_v10 }
 0x645   : > { %v2129_v34 = vrot.slane %v2112_v29, %v8820_v10  ;;  %v1981_v15 = vpack.c.bf16 %v7031_v42, %v7031_v42  ;;  %v2278_v53 = vrot.slane %v7031_v42, %v8820_v10  ;;  %v2295_v18 = vsel %vm2038_vm3, %v2266_v32, %v2294_v33 }
 0x646   : > { %v2133_v39 = vrot.slane %v2113_v46, %v8820_v10  ;;  %v2114_v0 = vunpack.c.l.b16 %v1980_v8  ;;  %6444 = vmatmul.mubr.msk.bf16.vlgmr.msra.gmra.mrb[4].mxu1 %vm2054_vm10, %v2050_v6  ;;  %v2296_v37 = vsel %vm2040_vm4, %v2270_v63, %v2295_v18 }
 0x647   : > { %v7033_v51 = vpop.eup %7032  ;;  %v2151_v19 = vsel %vm2038_vm3, %v2129_v34, %v2150_v62  ;;  %v2115_v36 = vunpack.c.l.b16 %v1981_v15  ;;  %6448 = vmatpush3.bf16.msra.mxu1 %v2165_v23  ;;  %v2297_v49 = vsel %vm2042_vm6, %v2274_v22, %v2296_v37  ;;  %6449 = vmatprep.mubr.msk.bf16.mxu1 %vm7997_vm0, %v10872_v60  ;;  %v6973_v62 = vld [vmem:[#allocation12] sm:$0xff]  }
 0x648   : > { %v7035_v32 = vpop.eup %7034  ;;  %v2137_v43 = vrot.slane %v2114_v0, %v8820_v10  ;;  %v1982_v21 = vpack.c.bf16 %v7033_v51, %v7033_v51  ;;  %v2282_v28 = vrot.slane %v7033_v51, %v8820_v10  ;;  %v2298_v55 = vsel %vm2044_vm7, %v2278_v53, %v2297_v49  ;;  %6453 = vmatprep.subr.bf16.mxu1 %v10872_v60  ;;  %v6975_v0 = vld [vmem:[#allocation15] sm:$0xff]  }
 0x649   : > { %v2141_v63 = vrot.slane %v2115_v36, %v8820_v10  ;;  %v1983_v52 = vpack.c.bf16 %v7035_v32, %v7035_v32  ;;  %v2286_v23 = vrot.slane %v7035_v32, %v8820_v10  ;;  %v2152_v29 = vsel %vm2040_vm4, %v2133_v39, %v2151_v19  ;;  %v6974_v39 = vld [vmem:[#allocation12 + $0x8] sm:$0xff]  }
 0x64a   : > { %v2116_v7 = vunpack.c.l.b16 %v1982_v21  ;;  %v2299_v41 = vsel %vm2046_vm8, %v2282_v28, %v2298_v55  ;;  %v2153_v33 = vsel %vm2042_vm6, %v2137_v43, %v2152_v29 }
 0x64b   : > { %v2117_v42 = vunpack.c.l.b16 %v1983_v52  ;;  %v2300_v46 = vsel %vm2048_vm9, %v2286_v23, %v2299_v41  ;;  %v2154_v34 = vsel %vm2044_vm7, %v2141_v63, %v2153_v33 }
 0x64c   : > { %v2145_v8 = vrot.slane %v2116_v7, %v8820_v10  ;;  %v2306_v6 = vsel %vm2054_vm10, %v2300_v46, 0.0 }
 0x64d   : > { %v2149_v22 = vrot.slane %v2117_v42, %v8820_v10  ;;  %2307 = vadd.xlane.f32.xlu0 %v2306_v6  ;;  %v6976_v42 = vld [vmem:[#allocation15 + $0x8] sm:$0xff]  }
 0x64e   : > { %v2155_v15 = vsel %vm2046_vm8, %v2145_v8, %v2154_v34 }
 0x64f   : > { %v2156_v53 = vsel %vm2048_vm9, %v2149_v22, %v2155_v15 }
 0x650   : > { %v2157_v18 = vpack.c.b16 %v2156_v53, %v2156_v53 }
 0x652   : > { %6450 = vmatmul.mubr.msk.bf16.vlgmr.msra.gmra.mrb[8].mxu1 %vm2054_vm10, %v2157_v18 }
 0x653   : > { %6457 = vmatprep.mubr.msk.bf16.mxu1 %vm7997_vm0, %v10872_v60  ;;  %6454 = vmatpush3.bf16.msra.mxu1 %v6973_v62 }
 0x654   : > { %6455 = vmatprep.subr.bf16.mxu1 %v10872_v60 }
 0x657   : > { %6456 = vmatpush3.bf16.msra.mxu1 %v6974_v39 }
 0x658   : > { %6461 = vmatprep.subr.bf16.mxu1 %v6975_v0 }
 0x6d0   : > { %v2305_v37 = vpop.xlane.xlu1 %2304 }
 0x6d1   : > { %v2309_v19 = vadd.f32 1e-06, %v2305_v37 }
 0x6d3   : > { %7036 = vrcp.f32 %v2309_v19 }
 0x6da   : > { %v2308_v51 = vpop.xlane.xlu0 %2307 }
 0x6db   : > { %v2310_v36 = vadd.f32 1e-06, %v2308_v51  ;;  %v10874_v51 = vld [vmem:[#allocation64_spill] sm:$0xff] }
 0x6dd   : > { %7038 = vrcp.f32 %v2310_v36  ;;  %v7037_v28 = vpop.eup %7036 }
 0x6e7   : > { %v7039_v55 = vpop.eup %7038 }
 0x719   : > { %v2096_v49 = vpop.f32.mrb[4].mxu1 }
 0x71a   : > { %v6445_v32 = vpop.f32.mrb[5].mxu1  ;;  %v2313_v52 = vmul.f32 %v7037_v28, %v2096_v49 }
 0x71b   : > { %v2099_v43 = vpop.f32.mrb[6].mxu1 }
 0x71c   : > { %v6446_v21 = vpop.f32.mrb[7].mxu1 }
 0x725   : > { %v2201_v63 = vpop.f32.mrb[8].mxu1 }
 0x726   : > { %v2314_v23 = vmul.f32 %v7039_v55, %v2201_v63  ;;  %v6451_v29 = vpop.f32.mrb[9].mxu1 }
 0x727   : > { %v2204_v7 = vpop.f32.mrb[10].mxu1 }
 0x728   : > { %v2319_v41 = vpack.c.bf16 %v2314_v23, %v2313_v52  ;;  %v6452_v33 = vpop.f32.mrb[11].mxu1 }
 0x72a   : > { %6458 = vmatmul.mubr.msk.bf16.vlgmr.msra.gmra.mrb[12].mxu1 %vm1140_vm1, %v2319_v41 }
 0x72b   : > { %6462 = vmatpush3.bf16.msra.mxu1 %v6975_v0  ;;  %6465 = vmatprep.mubr.msk.bf16.mxu1 %vm1140_vm1, %v2466_v31  ;;  %v9268_v31 = vld [vmem:[#allocation17] ss:$0 sm:$0xff] }
 0x72c   : > { %6463 = vmatprep.subr.bf16.mxu1 %v6976_v42  ;;  %v10873_v0 = vld [vmem:[#allocation63_spill] sm:$0xff] }
 0x72f   : > { %6464 = vmatpush3.bf16.msra.mxu1 %v6976_v42 }
 0x732   : > { %6466 = vmatmul.mubr.msk.bf16.vlgmr.msra.gmra.mrb[16].mxu1 %vm1140_vm1, %v2467_v12 }
 0x733   : > { %6469 = vmatprep.mubr.msk.bf16.mxu1 %vm1140_vm1, %v2468_v57 }
 0x73a   : > { %6470 = vmatmul.mubr.msk.bf16.gmra.mrb[20].mxu1 %vm1140_vm1, %v2469_v26 }
 0x73b   : > { %6473 = vmatprep.mubr.msk.bf16.mxu1 %vm1140_vm1, %v2470_v3 }
 0x742   : > { %6474 = vmatmul.mubr.msk.bf16.gmra.mrb[24].mxu1 %vm1140_vm1, %v2471_v47 }
 0x743   : > { %6477 = vmatprep.mubr.msk.bf16.mxu1 %vm1140_vm1, %v2472_v13 }
 0x74a   : > { %6478 = vmatmul.mubr.msk.bf16.gmra.mrb[28].mxu1 %vm1140_vm1, %v2473_v9 }
 0x7fd   : > { %v2369_v20 = vpop.f32.mrb[12].mxu1 }
 0x7fe   : > { %2378 = vrot.lane.b32.xlu0 %v2369_v20, %s7999_s0  ;;  %v6459_v54 = vpop.f32.mrb[13].mxu1 }
 0x7ff   : > { %v2372_v56 = vpop.f32.mrb[14].mxu1 }
 0x800   : > { %2380 = vrot.lane.b32.xlu1 %v2372_v56, %s7999_s0  ;;  %v6460_v14 = vpop.f32.mrb[15].mxu1  ;;  %v6144_v56 = vld [vmem:[#allocation18 + $0x1] ss:$0 sm:$0xff] }
 0x801   : > { %v6143_v14 = vld [vmem:[#allocation18] ss:$0 sm:$0xff] }
 0x804   : > { %2392 = vrot.lane.b32.xlu1 %v6142_v1, %s7999_s0  ;;  %v10875_v1 = vld [vmem:[#allocation65_spill] sm:$0xff] }
 0x805   : > { %v6467_v17 = vpop.f32.mrb[16].mxu1 }
 0x806   : > { %v2609_v12 = vadd.f32 %v6467_v17, %v8898_v16  ;;  %v9271_v57 = vpop.f32.mrb[17].mxu1 }
 0x807   : > { %v9273_v58 = vpop.f32.mrb[18].mxu1  ;;  %v2607_v17 = vadd.f32 %v9271_v57, %v10875_v1 }
 0x808   : > { %v2547_v59 = vpop.f32.mrb[19].mxu1  ;;  %v9276_v26 = vadd.f32 %v9268_v31, %v2609_v12  ;;  %v10876_v12 = vld [vmem:[#allocation66_spill] sm:$0xff] }
 0x809   : > { %v2608_v61 = vadd.f32 %v2547_v59, %v8890_v11  ;;  %v2610_v59 = vadd.f32 %v9273_v58, %v10876_v12  ;;  %v10879_v58 = vld [vmem:[#allocation69_spill] sm:$0xff] }
 0x80b   : > { %v9280_v25 = vadd.f32 %v9268_v31, %v2608_v61  ;;  %v9331_v61 = vadd.f32 %v9268_v31, %v2607_v17 }
 0x80d   : > { %v6471_v3 = vpop.f32.mrb[20].mxu1  ;;  %v2651_v1 = vsel %vm1140_vm1, %v9280_v25, 0.0 }
 0x80e   : > { %v2613_v38 = vadd.f32 %v6471_v3, %v8916_v30  ;;  %v2560_v5 = vpop.f32.mrb[21].mxu1  ;;  %v10877_v3 = vld [vmem:[#allocation67_spill] sm:$0xff] }
 0x80f   : > { %v2611_v44 = vadd.f32 %v2560_v5, %v8907_v24  ;;  %v6472_v16 = vpop.f32.mrb[22].mxu1  ;;  %v2648_v5 = vsel %vm1140_vm1, %v9331_v61, 0.0 }
 0x810   : > { %v2563_v47 = vpop.f32.mrb[23].mxu1  ;;  %v9285_v48 = vadd.f32 %v9268_v31, %v2613_v38 }
 0x811   : > { %v9288_v2 = vadd.f32 %v9268_v31, %v2611_v44  ;;  %v2612_v38 = vadd.f32 %v2563_v47, %v10877_v3  ;;  %v9337_v44 = vadd.f32 %v9268_v31, %v2610_v59 }
 0x812   : > { %v2666_v17 = vsel %vm1140_vm1, %v9285_v48, 0.0 }
 0x813   : > { %v2657_v57 = vsel %vm1140_vm1, %v9337_v44, 0.0 }
 0x815   : > { %v6475_v4 = vpop.f32.mrb[24].mxu1 }
 0x816   : > { %v2617_v11 = vadd.f32 %v6475_v4, %v8934_v40  ;;  %v2576_v13 = vpop.f32.mrb[25].mxu1  ;;  %v10878_v4 = vld [vmem:[#allocation68_spill] sm:$0xff] }
 0x817   : > { %v2615_v9 = vadd.f32 %v2576_v13, %v8925_v35  ;;  %v6476_v46 = vpop.f32.mrb[26].mxu1  ;;  %v9343_v13 = vadd.f32 %v9268_v31, %v2612_v38 }
 0x818   : > { %v2579_v8 = vpop.f32.mrb[27].mxu1  ;;  %v9293_v30 = vadd.f32 %v9268_v31, %v2617_v11  ;;  %v2614_v11 = vadd.f32 %v6472_v16, %v10878_v4 }
 0x819   : > { %v9296_v24 = vadd.f32 %v9268_v31, %v2615_v9  ;;  %v2616_v9 = vadd.f32 %v2579_v8, %v10879_v58  ;;  %v2663_v47 = vsel %vm1140_vm1, %v9343_v13, 0.0 }
 0x81a   : > { %v2678_v38 = vsel %vm1140_vm1, %v9293_v30, 0.0 }
 0x81b   : > { %v2672_v12 = vsel %vm1140_vm1, %v9296_v24, 0.0 }
 0x81d   : > { %v6479_v6 = vpop.f32.mrb[28].mxu1 }
 0x81e   : > { %v2621_v22 = vadd.f32 %v6479_v6, %v8952_v50  ;;  %v2592_v34 = vpop.f32.mrb[29].mxu1  ;;  %v9349_v6 = vadd.f32 %v9268_v31, %v2614_v11 }
 0x81f   : > { %v2619_v15 = vadd.f32 %v2592_v34, %v8943_v45  ;;  %v6480_v53 = vpop.f32.mrb[30].mxu1 }
 0x820   : > { %v2595_v18 = vpop.f32.mrb[31].mxu1  ;;  %v9301_v40 = vadd.f32 %v9268_v31, %v2621_v22  ;;  %v10880_v22 = vld [vmem:[#allocation70_spill] sm:$0xff]  ;;  %v2669_v16 = vsel %vm1140_vm1, %v9349_v6, 0.0 }
 0x821   : > { %v9304_v35 = vadd.f32 %v9268_v31, %v2619_v15  ;;  %v2618_v34 = vadd.f32 %v6476_v46, %v10880_v22  ;;  %v9355_v15 = vadd.f32 %v9268_v31, %v2616_v9  ;;  %v6979_v9 = vld [vmem:[#allocation23] sm:$0xff]  }
 0x822   : > { %v2690_v11 = vsel %vm1140_vm1, %v9301_v40, 0.0 }
 0x823   : > { %v2675_v8 = vsel %vm1140_vm1, %v9355_v15, 0.0  ;;  %v2684_v4 = vsel %vm1140_vm1, %v9304_v35, 0.0 }
 0x870   : > { %v2379_v62 = vpop.permute.xlu0 %2378 }
 0x871   : > { %v2384_v37 = vadd.f32 %v2379_v62, %v10873_v0  ;;  %v10881_v62 = vld [vmem:[#allocation71_spill] sm:$0xff]  ;;  %v9361_v0 = vadd.f32 %v9268_v31, %v2618_v34 }
 0x872   : > { %v2381_v39 = vpop.permute.xlu1 %2380 }
 0x873   : > { %v2385_v19 = vadd.f32 %v2381_v39, %v10874_v51  ;;  %v2620_v39 = vadd.f32 %v2595_v18, %v10881_v62  ;;  %v2681_v46 = vsel %vm1140_vm1, %v9361_v0, 0.0 }
 0x876   : > { %v2393_v36 = vpop.permute.xlu1 %2392 }
 0x877   : > { %v2395_v49 = vadd.f32 %v2393_v36, %v2384_v37  ;;  %v2396_v50 = vadd.f32 %v2393_v36, %v2385_v19  ;;  %v10882_v37 = vld [vmem:[#allocation72_spill] sm:$0xff]  ;;  %v9367_v19 = vadd.f32 %v9268_v31, %v2620_v39 }
 0x878   : > { %v2622_v51 = vadd.f32 %v6480_v53, %v10882_v37  ;;  %v6978_v53 = vld [vmem:[#allocation20 + $0x8] sm:$0xff]  }
 0x879   : > { %2403 = vrot.lane.b32.xlu1 %v2396_v50, %s7999_s0  ;;  %2401 = vrot.lane.b32.xlu0 %v2395_v49, %s7999_s0  ;;  %v2687_v36 = vsel %vm1140_vm1, %v9367_v19, 0.0 }
 0x87a   : > { %v9372_v18 = vadd.f32 %v9268_v31, %v2622_v51 }
 0x8eb   : > { %v2404_v45 = vpop.permute.xlu1 %2403  ;;  %v2402_v32 = vpop.permute.xlu0 %2401 }
 0x8ec   : > { %v2410_v43 = vsel %vm1140_vm1, %v2404_v45, 0.0  ;;  %v2407_v21 = vsel %vm1140_vm1, %v2402_v32, 0.0 }
 0x8ed   : > { %2411 = vadd.xlane.f32.xlu1 %v2410_v43  ;;  %2408 = vadd.xlane.f32.xlu0 %v2407_v21 }
 0x97a   : > { %v2412_v28 = vpop.xlane.xlu1 %2411  ;;  %v2409_v55 = vpop.xlane.xlu0 %2408 }
 0x97b   : > { %v2415_v63 = vmul.f32 0.03125, %v2412_v28  ;;  %v2414_v52 = vmul.f32 0.03125, %v2409_v55 }
 0x97d   : > { %v9312_v23 = vsub.f32 %v2396_v50, %v2415_v63  ;;  %v9314_v29 = vsub.f32 %v2395_v49, %v2414_v52  ;;  %v2693_v49 = vsel %vm1140_vm1, %v9372_v18, 0.0  ;;  %v6977_v50 = vld [vmem:[#allocation20] sm:$0xff]  }
 0x97e   : > { %6482 = vmatpush3.bf16.msra.mxu0 %v6977_v50 }
 0x97f   : > { %v2419_v7 = vmul.f32 %v9312_v23, %v9312_v23  ;;  %v2418_v41 = vmul.f32 %v9314_v29, %v9314_v29  ;;  %6483 = vmatprep.subr.bf16.mxu0 %v10872_v60 }
 0x981   : > { %2424 = vrot.lane.b32.xlu1 %v2419_v7, %s7999_s0  ;;  %2422 = vrot.lane.b32.xlu0 %v2418_v41, %s7999_s0 }
 0x982   : > { %6484 = vmatpush3.bf16.msra.mxu0 %v6978_v53 }
 0x983   : > { %6489 = vmatprep.subr.bf16.mxu0 %v10872_v60 }
 0x9f3   : > { %v2425_v33 = vpop.permute.xlu1 %2424  ;;  %v2423_v42 = vpop.permute.xlu0 %2422 }
 0x9f4   : > { %v2431_v20 = vsel %vm1140_vm1, %v2425_v33, 0.0  ;;  %v2428_v54 = vsel %vm1140_vm1, %v2423_v42, 0.0 }
 0x9f5   : > { %2432 = vadd.xlane.f32.xlu1 %v2431_v20  ;;  %2429 = vadd.xlane.f32.xlu0 %v2428_v54 }
 0xa06   : > { %2457 = vrot.lane.b32.xlu1 %v6144_v56, %s7999_s0 }
 0xa0b   : > { %2447 = vrot.lane.b32.xlu0 %v6143_v14, %s7999_s0 }
 0xa2a   : > { %2649 = vadd.xlane.f32.xlu1 %v2648_v5 }
 0xa2e   : > { %2658 = vadd.xlane.f32.xlu1 %v2657_v57 }
 0xa32   : > { %2664 = vadd.xlane.f32.xlu1 %v2663_v47 }
 0xa36   : > { %2670 = vadd.xlane.f32.xlu1 %v2669_v16 }
 0xa3a   : > { %2676 = vadd.xlane.f32.xlu1 %v2675_v8 }
 0xa3e   : > { %2682 = vadd.xlane.f32.xlu1 %v2681_v46 }
 0xa42   : > { %2688 = vadd.xlane.f32.xlu1 %v2687_v36 }
 0xa46   : > { %2694 = vadd.xlane.f32.xlu1 %v2693_v49 }
 0xa82   : > { %v2433_v45 = vpop.xlane.xlu1 %2432  ;;  %v2430_v32 = vpop.xlane.xlu0 %2429 }
 0xa83   : > { %v2435_v43 = vmul.f32 0.03125, %v2433_v45  ;;  %v2434_v21 = vmul.f32 0.03125, %v2430_v32 }
 0xa85   : > { %v2437_v28 = vadd.f32 1e-05, %v2435_v43  ;;  %v2436_v31 = vadd.f32 1e-05, %v2434_v21 }
 0xa86   : > { %v2448_v63 = vpop.permute.xlu0 %2447  ;;  %v2458_v33 = vpop.permute.xlu1 %2457 }
 0xa87   : > { %7040 = vrsqrt.f32 %v2437_v28 }
 0xa88   : > { %7042 = vrsqrt.f32 %v2436_v31 }
 0xa91   : > { %v7041_v55 = vpop.eup %7040 }
 0xa92   : > { %v7043_v52 = vpop.eup %7042  ;;  %v2441_v7 = vmul.f32 %v7041_v55, %v9312_v23  ;;  %v2654_v23 = vsel %vm1140_vm1, %v9276_v26, 0.0 }
 0xa93   : > { %v2440_v41 = vmul.f32 %v7043_v52, %v9314_v29  ;;  %v2660_v29 = vsel %vm1140_vm1, %v9288_v2, 0.0 }
 0xa94   : > { %v2451_v42 = vmul.f32 %v2448_v63, %v2441_v7 }
 0xa95   : > { %v2450_v20 = vmul.f32 %v2448_v63, %v2440_v41 }
 0xa96   : > { %v9380_v54 = vadd.f32 %v2458_v33, %v2451_v42 }
 0xa97   : > { %v9382_v56 = vadd.f32 %v2458_v33, %v2450_v20 }
 0xa99   : > { %v2900_v14 = vpack.c.bf16 %v9380_v54, %v9382_v56 }
 0xa9b   : > { %2909 = vrot.lane.b32.xlu0 %v2900_v14, %s7999_s0 }
 0xab7   : > { %v2650_v59 = vpop.xlane.xlu1 %2649 }
 0xab8   : > { %v2696_v3 = vmul.f32 0.03125, %v2650_v59 }
 0xaba   : > { %2652 = vadd.xlane.f32.xlu0 %v2651_v1  ;;  %v9400_v5 = vsub.f32 %v9331_v61, %v2696_v3 }
 0xabb   : > { %v2659_v61 = vpop.xlane.xlu1 %2658 }
 0xabc   : > { %v2728_v57 = vmul.f32 %v9400_v5, %v9400_v5  ;;  %v2699_v16 = vmul.f32 0.03125, %v2659_v61 }
 0xabe   : > { %2655 = vadd.xlane.f32.xlu0 %v2654_v23  ;;  %v2744_v58 = vsel %vm1140_vm1, %v2728_v57, 0.0  ;;  %v9414_v8 = vsub.f32 %v9337_v44, %v2699_v16 }
 0xabf   : > { %v2665_v22 = vpop.xlane.xlu1 %2664 }
 0xac0   : > { %v2701_v51 = vmul.f32 0.03125, %v2665_v22  ;;  %v2731_v53 = vmul.f32 %v9414_v8, %v9414_v8 }
 0xac2   : > { %2661 = vadd.xlane.f32.xlu0 %v2660_v29  ;;  %v9424_v45 = vsub.f32 %v9343_v13, %v2701_v51  ;;  %v2753_v63 = vsel %vm1140_vm1, %v2731_v53, 0.0 }
 0xac3   : > { %v2671_v34 = vpop.xlane.xlu1 %2670 }
 0xac4   : > { %v2703_v32 = vmul.f32 0.03125, %v2671_v34  ;;  %v2733_v7 = vmul.f32 %v9424_v45, %v9424_v45 }
 0xac6   : > { %2667 = vadd.xlane.f32.xlu0 %v2666_v17  ;;  %v9434_v52 = vsub.f32 %v9349_v6, %v2703_v32  ;;  %v2759_v23 = vsel %vm1140_vm1, %v2733_v7, 0.0 }
 0xac7   : > { %v2677_v37 = vpop.xlane.xlu1 %2676 }
 0xac8   : > { %v2705_v55 = vmul.f32 0.03125, %v2677_v37  ;;  %v2735_v29 = vmul.f32 %v9434_v52, %v9434_v52 }
 0xaca   : > { %2673 = vadd.xlane.f32.xlu0 %v2672_v12  ;;  %v9445_v20 = vsub.f32 %v9355_v15, %v2705_v55 }
 0xacb   : > { %v2683_v21 = vpop.xlane.xlu1 %2682 }
 0xacc   : > { %v2707_v6 = vmul.f32 0.03125, %v2683_v21 }
 0xace   : > { %2679 = vadd.xlane.f32.xlu0 %v2678_v38  ;;  %v9457_v59 = vsub.f32 %v9361_v0, %v2707_v6 }
 0xacf   : > { %v2689_v14 = vpop.xlane.xlu1 %2688 }
 0xad0   : > { %v2709_v3 = vmul.f32 0.03125, %v2689_v14  ;;  %v2739_v61 = vmul.f32 %v9457_v59, %v9457_v59 }
 0xad2   : > { %2685 = vadd.xlane.f32.xlu0 %v2684_v4  ;;  %v2777_v51 = vsel %vm1140_vm1, %v2739_v61, 0.0 }
 0xad3   : > { %v2695_v57 = vpop.xlane.xlu1 %2694 }
 0xad4   : > { %v2711_v22 = vmul.f32 0.03125, %v2695_v57 }
 0xad6   : > { %2691 = vadd.xlane.f32.xlu0 %v2690_v11  ;;  %v2765_v11 = vsel %vm1140_vm1, %v2735_v29, 0.0 }
 0xada   : > { %2745 = vadd.xlane.f32.xlu0 %v2744_v58 }
 0xb0d   : > { %v2910_v47 = vpop.permute.xlu0 %2909 }
 0xb0e   : > { %6486 = vmatmul.mubr.msk.bf16.vlgmr.msra.gmra.mrb[20].mxu0 %vm1140_vm1, %v2910_v47 }
 0xb0f   : > { %6490 = vmatpush3.bf16.msra.mxu0 %v6979_v9  ;;  %6497 = vmatprep.mubr.msk.bf16.mxu0 %vm7997_vm0, %v10872_v60 }
 0xb10   : > { %6491 = vmatprep.subr.bf16.mxu0 %v10872_v60 }
 0xb47   : > { %v2653_v62 = vpop.xlane.xlu0 %2652 }
 0xb48   : > { %v2697_v39 = vmul.f32 0.03125, %v2653_v62 }
 0xb4a   : > { %v9417_v46 = vsub.f32 %v9280_v25, %v2697_v39 }
 0xb4b   : > { %v2656_v36 = vpop.xlane.xlu0 %2655 }
 0xb4c   : > { %v2698_v49 = vmul.f32 0.03125, %v2656_v36  ;;  %v2729_v50 = vmul.f32 %v9417_v46, %v9417_v46  ;;  %v6980_v36 = vld [vmem:[#allocation23 + $0x8] sm:$0xff]  }
 0xb4d   : > { %6492 = vmatpush3.bf16.msra.mxu0 %v6980_v36 }
 0xb4e   : > { %v9427_v44 = vsub.f32 %v9276_v26, %v2698_v49  ;;  %v2747_v43 = vsel %vm1140_vm1, %v2729_v50, 0.0  ;;  %v9482_v49 = vsub.f32 %v9372_v18, %v2711_v22  ;;  %6493 = vmatprep.subr.bf16.mxu0 %v10872_v60 }
 0xb4f   : > { %v2662_v25 = vpop.xlane.xlu0 %2661  ;;  %2748 = vadd.xlane.f32.xlu1 %v2747_v43 }
 0xb50   : > { %v2700_v28 = vmul.f32 0.03125, %v2662_v25  ;;  %v2730_v31 = vmul.f32 %v9427_v44, %v9427_v44  ;;  %v2743_v25 = vmul.f32 %v9482_v49, %v9482_v49 }
 0xb52   : > { %v9437_v13 = vsub.f32 %v9288_v2, %v2700_v28  ;;  %v2750_v26 = vsel %vm1140_vm1, %v2730_v31, 0.0  ;;  %v2789_v55 = vsel %vm1140_vm1, %v2743_v25, 0.0 }
 0xb53   : > { %v2668_v41 = vpop.xlane.xlu0 %2667  ;;  %2751 = vadd.xlane.f32.xlu0 %v2750_v26  ;;  %2754 = vadd.xlane.f32.xlu1 %v2753_v63  ;;  %v6982_v63 = vld [vmem:[#allocation23 + $0x18] sm:$0xff]   ;;  %v6983_v26 = vld [vmem:[#allocation26] sm:$0xff]  }
 0xb54   : > { %v2702_v33 = vmul.f32 0.03125, %v2668_v41  ;;  %v2732_v42 = vmul.f32 %v9437_v13, %v9437_v13 }
 0xb56   : > { %v9448_v2 = vsub.f32 %v9285_v48, %v2702_v33  ;;  %v2756_v1 = vsel %vm1140_vm1, %v2732_v42, 0.0  ;;  %v2737_v48 = vmul.f32 %v9445_v20, %v9445_v20 }
 0xb57   : > { %v2674_v17 = vpop.xlane.xlu0 %2673  ;;  %2757 = vadd.xlane.f32.xlu0 %v2756_v1  ;;  %2760 = vadd.xlane.f32.xlu1 %v2759_v23  ;;  %v6158_v1 = vld [vmem:[#allocation21] ss:$0 sm:$0xff] }
 0xb58   : > { %v2704_v12 = vmul.f32 0.03125, %v2674_v17  ;;  %v2734_v15 = vmul.f32 %v9448_v2, %v9448_v2  ;;  %v2771_v47 = vsel %vm1140_vm1, %v2737_v48, 0.0 }
 0xb5a   : > { %v9462_v38 = vsub.f32 %v9296_v24, %v2704_v12  ;;  %v2762_v4 = vsel %vm1140_vm1, %v2734_v15, 0.0  ;;  %v9472_v24 = vsub.f32 %v9367_v19, %v2709_v3 }
 0xb5b   : > { %v2680_v58 = vpop.xlane.xlu0 %2679  ;;  %2763 = vadd.xlane.f32.xlu0 %v2762_v4  ;;  %2766 = vadd.xlane.f32.xlu1 %v2765_v11 }
 0xb5c   : > { %v2706_v9 = vmul.f32 0.03125, %v2680_v58  ;;  %v2736_v0 = vmul.f32 %v9462_v38, %v9462_v38  ;;  %v2741_v50 = vmul.f32 %v9472_v24, %v9472_v24 }
 0xb5e   : > { %v9475_v34 = vsub.f32 %v9293_v30, %v2706_v9  ;;  %v2768_v16 = vsel %vm1140_vm1, %v2736_v0, 0.0  ;;  %v2783_v21 = vsel %vm1140_vm1, %v2741_v50, 0.0  ;;  %v6984_v50 = vld [vmem:[#allocation26 + $0x8] sm:$0xff]  }
 0xb5f   : > { %2769 = vadd.xlane.f32.xlu0 %v2768_v16  ;;  %v2686_v62 = vpop.xlane.xlu0 %2685  ;;  %2772 = vadd.xlane.f32.xlu1 %v2771_v47 }
 0xb60   : > { %v2708_v39 = vmul.f32 0.03125, %v2686_v62  ;;  %v2738_v37 = vmul.f32 %v9475_v34, %v9475_v34 }
 0xb62   : > { %v9485_v19 = vsub.f32 %v9304_v35, %v2708_v39  ;;  %v2774_v30 = vsel %vm1140_vm1, %v2738_v37, 0.0 }
 0xb63   : > { %2775 = vadd.xlane.f32.xlu0 %v2774_v30  ;;  %v2692_v53 = vpop.xlane.xlu0 %2691  ;;  %2778 = vadd.xlane.f32.xlu1 %v2777_v51 }
 0xb64   : > { %v2710_v32 = vmul.f32 0.03125, %v2692_v53  ;;  %v2740_v43 = vmul.f32 %v9485_v19, %v9485_v19 }
 0xb66   : > { %v9494_v18 = vsub.f32 %v9301_v40, %v2710_v32  ;;  %v2780_v35 = vsel %vm1140_vm1, %v2740_v43, 0.0  ;;  %v6981_v40 = vld [vmem:[#allocation23 + $0x10] sm:$0xff]   ;;  %v9506_v32 = vld [vmem:[#allocation18 + $0x2] ss:$0 sm:$0xff] }
 0xb67   : > { %2781 = vadd.xlane.f32.xlu0 %v2780_v35  ;;  %2784 = vadd.xlane.f32.xlu1 %v2783_v21  ;;  %v2746_v7 = vpop.xlane.xlu0 %2745 }
 0xb68   : > { %v2742_v28 = vmul.f32 %v9494_v18, %v9494_v18  ;;  %6494 = vmatpush3.bf16.msra.mxu0 %v6981_v40  ;;  %v2792_v41 = vmul.f32 0.03125, %v2746_v7 }
 0xb69   : > { %6495 = vmatprep.subr.bf16.mxu0 %v10872_v60 }
 0xb6a   : > { %v2786_v31 = vsel %vm1140_vm1, %v2742_v28, 0.0  ;;  %v2808_v33 = vadd.f32 1e-05, %v2792_v41  ;;  %v9511_v41 = vld [vmem:[#allocation18 + $0x3] ss:$0 sm:$0xff] }
 0xb6b   : > { %2787 = vadd.xlane.f32.xlu0 %v2786_v31  ;;  %2790 = vadd.xlane.f32.xlu1 %v2789_v55 }
 0xb6c   : > { %6496 = vmatpush3.bf16.msra.mxu0 %v6982_v63  ;;  %7044 = vrsqrt.f32 %v2808_v33 }
 0xb6d   : > { %6501 = vmatprep.subr.bf16.mxu0 %v6983_v26 }
 0xb76   : > { %v7045_v47 = vpop.eup %7044 }
 0xb77   : > { %v2840_v53 = vmul.f32 %v7045_v47, %v9400_v5 }
 0xb79   : > { %v2860_v63 = vmul.f32 %v9506_v32, %v2840_v53 }
 0xbdc   : > { %v2749_v42 = vpop.xlane.xlu1 %2748 }
 0xbdd   : > { %v2793_v6 = vmul.f32 0.03125, %v2749_v42 }
 0xbdf   : > { %v2809_v14 = vadd.f32 1e-05, %v2793_v6 }
 0xbe0   : > { %v2752_v23 = vpop.xlane.xlu0 %2751  ;;  %v2755_v29 = vpop.xlane.xlu1 %2754 }
 0xbe1   : > { %7046 = vrsqrt.f32 %v2809_v14  ;;  %v2794_v17 = vmul.f32 0.03125, %v2752_v23  ;;  %v2795_v12 = vmul.f32 0.03125, %v2755_v29  ;;  %v2960_v15 = vpop.f32.mrb[20].mxu0 }
 0xbe2   : > { %v2961_v48 = vadd.f32 %v6158_v1, %v2960_v15  ;;  %v6487_v3 = vpop.f32.mrb[21].mxu0 }
 0xbe3   : > { %v2810_v4 = vadd.f32 1e-05, %v2794_v17  ;;  %v2811_v11 = vadd.f32 1e-05, %v2795_v12  ;;  %v2963_v57 = vpop.f32.mrb[22].mxu0 }
 0xbe4   : > { %v2964_v58 = vadd.f32 %v6158_v1, %v2963_v57  ;;  %v6488_v9 = vpop.f32.mrb[23].mxu0  ;;  %v2758_v0 = vpop.xlane.xlu0 %2757  ;;  %v2967_v16 = vmax.f32 %v2961_v48, 0.0 }
 0xbe5   : > { %7048 = vrsqrt.f32 %v2810_v4  ;;  %v2796_v61 = vmul.f32 0.03125, %v2758_v0  ;;  %v2761_v22 = vpop.xlane.xlu1 %2760 }
 0xbe6   : > { %7050 = vrsqrt.f32 %v2811_v11  ;;  %v2968_v62 = vmax.f32 %v2964_v58, 0.0  ;;  %v2797_v39 = vmul.f32 0.03125, %v2761_v22 }
 0xbe7   : > { %v2812_v37 = vadd.f32 1e-05, %v2796_v61 }
 0xbe8   : > { %v2977_v51 = vpack.c.bf16 %v2968_v62, %v2967_v16  ;;  %v2813_v36 = vadd.f32 1e-05, %v2797_v39  ;;  %v2764_v30 = vpop.xlane.xlu0 %2763 }
 0xbe9   : > { %7052 = vrsqrt.f32 %v2812_v37  ;;  %v2798_v43 = vmul.f32 0.03125, %v2764_v30  ;;  %v2767_v35 = vpop.xlane.xlu1 %2766 }
 0xbea   : > { %7054 = vrsqrt.f32 %v2813_v36  ;;  %v2799_v21 = vmul.f32 0.03125, %v2767_v35  ;;  %6498 = vmatmul.mubr.msk.bf16.vlgmr.msra.gmra.mrb[24].mxu0 %vm3009_vm11, %v2977_v51 }
 0xbeb   : > { %v7047_v25 = vpop.eup %7046  ;;  %v2814_v28 = vadd.f32 1e-05, %v2798_v43  ;;  %6502 = vmatpush3.bf16.msra.mxu0 %v6983_v26 }
 0xbec   : > { %v2815_v31 = vadd.f32 1e-05, %v2799_v21  ;;  %v2770_v55 = vpop.xlane.xlu0 %2769  ;;  %6503 = vmatprep.subr.bf16.mxu0 %v6984_v50  ;;  %v2841_v40 = vmul.f32 %v7047_v25, %v9417_v46  ;;  %v9516_v46 = vadd.f32 %v9511_v41, %v2860_v63 }
 0xbed   : > { %7056 = vrsqrt.f32 %v2814_v28  ;;  %v2800_v5 = vmul.f32 0.03125, %v2770_v55  ;;  %v2773_v7 = vpop.xlane.xlu1 %2772 }
 0xbee   : > { %7058 = vrsqrt.f32 %v2815_v31  ;;  %v2801_v33 = vmul.f32 0.03125, %v2773_v7  ;;  %v2861_v42 = vmul.f32 %v9506_v32, %v2841_v40 }
 0xbef   : > { %v7049_v6 = vpop.eup %7048  ;;  %v2816_v14 = vadd.f32 1e-05, %v2800_v5  ;;  %6504 = vmatpush3.bf16.msra.mxu0 %v6984_v50 }
 0xbf0   : > { %v7051_v26 = vpop.eup %7050  ;;  %v2842_v1 = vmul.f32 %v7049_v6, %v9427_v44  ;;  %v2817_v23 = vadd.f32 1e-05, %v2801_v33  ;;  %v2776_v29 = vpop.xlane.xlu0 %2775  ;;  %v9519_v17 = vadd.f32 %v9511_v41, %v2861_v42  ;;  %6545 = vmatprep.subr.bf16.mxu0 %v10872_v60 }
 0xbf1   : > { %v2843_v12 = vmul.f32 %v7051_v26, %v9414_v8  ;;  %7060 = vrsqrt.f32 %v2816_v14  ;;  %v2802_v15 = vmul.f32 0.03125, %v2776_v29  ;;  %v2779_v48 = vpop.xlane.xlu1 %2778 }
 0xbf2   : > { %v2862_v3 = vmul.f32 %v9506_v32, %v2842_v1  ;;  %7062 = vrsqrt.f32 %v2817_v23  ;;  %v2803_v4 = vmul.f32 0.03125, %v2779_v48  ;;  %v3132_v44 = vpack.c.bf16 %v9519_v17, %v9516_v46 }
 0xbf3   : > { %v7053_v11 = vpop.eup %7052  ;;  %v2863_v57 = vmul.f32 %v9506_v32, %v2843_v12  ;;  %v2818_v58 = vadd.f32 1e-05, %v2802_v15 }
 0xbf4   : > { %v7055_v9 = vpop.eup %7054  ;;  %v2819_v0 = vadd.f32 1e-05, %v2803_v4  ;;  %v2782_v47 = vpop.xlane.xlu0 %2781  ;;  %6505 = vmatprep.mubr.msk.bf16.mxu0 %vm1140_vm1, %v3132_v44  ;;  %v9529_v8 = vadd.f32 %v9511_v41, %v2862_v3  ;;  %v2844_v61 = vmul.f32 %v7053_v11, %v9437_v13 }
 0xbf5   : > { %7064 = vrsqrt.f32 %v2818_v58  ;;  %v2804_v22 = vmul.f32 0.03125, %v2782_v47  ;;  %v2785_v16 = vpop.xlane.xlu1 %2784  ;;  %v9533_v62 = vadd.f32 %v9511_v41, %v2863_v57  ;;  %v2845_v39 = vmul.f32 %v7055_v9, %v9424_v45 }
 0xbf6   : > { %7066 = vrsqrt.f32 %v2819_v0  ;;  %v2805_v37 = vmul.f32 0.03125, %v2785_v16  ;;  %v2864_v51 = vmul.f32 %v9506_v32, %v2844_v61 }
 0xbf7   : > { %v7057_v36 = vpop.eup %7056  ;;  %v2820_v30 = vadd.f32 1e-05, %v2804_v22  ;;  %v3133_v50 = vpack.c.bf16 %v9533_v62, %v9529_v8  ;;  %v2865_v53 = vmul.f32 %v9506_v32, %v2845_v39 }
 0xbf8   : > { %v7059_v13 = vpop.eup %7058  ;;  %v2821_v43 = vadd.f32 1e-05, %v2805_v37  ;;  %v2788_v35 = vpop.xlane.xlu0 %2787  ;;  %v9541_v21 = vadd.f32 %v9511_v41, %v2864_v51  ;;  %v2846_v25 = vmul.f32 %v7057_v36, %v9448_v2 }
 0xbf9   : > { %7068 = vrsqrt.f32 %v2820_v30  ;;  %v2806_v45 = vmul.f32 0.03125, %v2788_v35  ;;  %6506 = vmatmul.mubr.msk.bf16.vlgmr.msra.gmra.mrb[28].mxu0 %vm1140_vm1, %v3133_v50  ;;  %v2791_v28 = vpop.xlane.xlu1 %2790  ;;  %v9546_v31 = vadd.f32 %v9511_v41, %v2865_v53  ;;  %v2847_v55 = vmul.f32 %v7059_v13, %v9434_v52  ;;  %v6986_v35 = vld [vmem:[#allocation29 + $0x8] sm:$0xff]  }
 0xbfa   : > { %7070 = vrsqrt.f32 %v2821_v43  ;;  %v2807_v40 = vmul.f32 0.03125, %v2791_v28  ;;  %v2866_v63 = vmul.f32 %v9506_v32, %v2846_v25  ;;  %v6988_v25 = vld [vmem:[#allocation29 + $0x18] sm:$0xff]  }
 0xbfb   : > { %v7061_v5 = vpop.eup %7060  ;;  %v2822_v7 = vadd.f32 1e-05, %v2806_v45  ;;  %v3134_v33 = vpack.c.bf16 %v9546_v31, %v9541_v21  ;;  %v2867_v2 = vmul.f32 %v9506_v32, %v2847_v55 }
 0xbfc   : > { %v7063_v42 = vpop.eup %7062  ;;  %v2823_v6 = vadd.f32 1e-05, %v2807_v40  ;;  %v9554_v14 = vadd.f32 %v9511_v41, %v2866_v63  ;;  %v2848_v26 = vmul.f32 %v7061_v5, %v9462_v38 }
 0xbfd   : > { %7072 = vrsqrt.f32 %v2822_v7  ;;  %6509 = vmatprep.mubr.msk.bf16.mxu0 %vm1140_vm1, %v3134_v33  ;;  %v9559_v52 = vadd.f32 %v9511_v41, %v2867_v2  ;;  %v2849_v1 = vmul.f32 %v7063_v42, %v9445_v20  ;;  %v6170_v7 = vld [vmem:[#allocation27] ss:$0 sm:$0xff] }
 0xbfe   : > { %7074 = vrsqrt.f32 %v2823_v6  ;;  %v2868_v23 = vmul.f32 %v9506_v32, %v2848_v26 }
 0xbff   : > { %v7065_v29 = vpop.eup %7064  ;;  %v3135_v12 = vpack.c.bf16 %v9559_v52, %v9554_v14  ;;  %v2869_v15 = vmul.f32 %v9506_v32, %v2849_v1 }
 0xc00   : > { %v7067_v48 = vpop.eup %7066  ;;  %v9567_v38 = vadd.f32 %v9511_v41, %v2868_v23  ;;  %v2850_v3 = vmul.f32 %v7065_v29, %v9475_v34 }
 0xc01   : > { %6510 = vmatmul.mubr.msk.bf16.gmra.mrb[32].mxu0 %vm1140_vm1, %v3135_v12  ;;  %v9572_v4 = vadd.f32 %v9511_v41, %v2869_v15  ;;  %v2851_v20 = vmul.f32 %v7067_v48, %v9457_v59 }
 0xc02   : > { %v2870_v44 = vmul.f32 %v9506_v32, %v2850_v3 }
 0xc03   : > { %v7069_v11 = vpop.eup %7068  ;;  %v3136_v57 = vpack.c.bf16 %v9572_v4, %v9567_v38  ;;  %v2871_v58 = vmul.f32 %v9506_v32, %v2851_v20 }
 0xc04   : > { %v7071_v9 = vpop.eup %7070  ;;  %v9580_v0 = vadd.f32 %v9511_v41, %v2870_v44  ;;  %v2852_v34 = vmul.f32 %v7069_v11, %v9485_v19 }
 0xc05   : > { %6513 = vmatprep.mubr.msk.bf16.mxu0 %vm1140_vm1, %v3136_v57  ;;  %v9585_v47 = vadd.f32 %v9511_v41, %v2871_v58  ;;  %v2853_v59 = vmul.f32 %v7071_v9, %v9472_v24 }
 0xc06   : > { %v2872_v61 = vmul.f32 %v9506_v32, %v2852_v34 }
 0xc07   : > { %v7073_v22 = vpop.eup %7072  ;;  %v3137_v16 = vpack.c.bf16 %v9585_v47, %v9580_v0  ;;  %v2873_v39 = vmul.f32 %v9506_v32, %v2853_v59 }
 0xc08   : > { %v7075_v37 = vpop.eup %7074  ;;  %v9593_v51 = vadd.f32 %v9511_v41, %v2872_v61  ;;  %v2854_v19 = vmul.f32 %v7073_v22, %v9494_v18 }
 0xc09   : > { %6514 = vmatmul.mubr.msk.bf16.gmra.mrb[36].mxu0 %vm1140_vm1, %v3137_v16  ;;  %v9598_v36 = vadd.f32 %v9511_v41, %v2873_v39  ;;  %v2855_v24 = vmul.f32 %v7075_v37, %v9482_v49  ;;  %v6985_v49 = vld [vmem:[#allocation29] sm:$0xff]  }
 0xc0a   : > { %v2874_v30 = vmul.f32 %v9506_v32, %v2854_v19  ;;  %6521 = vmatprep.subr.bf16.mxu1 %v6985_v49 }
 0xc0b   : > { %v3138_v50 = vpack.c.bf16 %v9598_v36, %v9593_v51  ;;  %v2875_v53 = vmul.f32 %v9506_v32, %v2855_v24  ;;  %6522 = vmatpush3.bf16.msra.mxu1 %v6985_v49  ;;  %v6987_v32 = vld [vmem:[#allocation29 + $0x10] sm:$0xff]  }
 0xc0c   : > { %v9606_v13 = vadd.f32 %v9511_v41, %v2874_v30  ;;  %6523 = vmatprep.subr.bf16.mxu1 %v6986_v35 }
 0xc0d   : > { %6517 = vmatprep.mubr.msk.bf16.mxu0 %vm1140_vm1, %v3138_v50  ;;  %v9610_v18 = vadd.f32 %v9511_v41, %v2875_v53  ;;  %v6162_v41 = vld [vmem:[#allocation24] ss:$0 sm:$0xff] }
 0xc0f   : > { %v3139_v43 = vpack.c.bf16 %v9610_v18, %v9606_v13  ;;  %6524 = vmatpush3.bf16.msra.mxu1 %v6986_v35 }
 0xc10   : > { %6525 = vmatprep.subr.bf16.mxu1 %v6987_v32 }
 0xc11   : > { %6518 = vmatmul.mubr.msk.bf16.gmra.mrb[40].mxu0 %vm1140_vm1, %v3139_v43 }
 0xc12   : > { %6549 = vmatprep.mubr.msk.bf16.mxu0 %vm7997_vm0, %v10872_v60 }
 0xc13   : > { %6526 = vmatpush3.bf16.msra.mxu1 %v6987_v32 }
 0xc14   : > { %6527 = vmatprep.subr.bf16.mxu1 %v6988_v25 }
 0xc17   : > { %6528 = vmatpush3.bf16.msra.mxu1 %v6988_v25 }
 0xcbd   : > { %v3047_v45 = vpop.f32.mrb[24].mxu0 }
 0xcbe   : > { %v3048_v28 = vadd.f32 %v6162_v41, %v3047_v45  ;;  %v6499_v55 = vpop.f32.mrb[25].mxu0 }
 0xcbf   : > { %v3050_v40 = vpop.f32.mrb[26].mxu0 }
 0xcc0   : > { %v3051_v63 = vadd.f32 %v6162_v41, %v3050_v40  ;;  %v6500_v5 = vpop.f32.mrb[27].mxu0  ;;  %3056 = vrot.lane.b32.xlu0 %v3048_v28, %s7999_s0 }
 0xcc2   : > { %3058 = vrot.lane.b32.xlu1 %v3051_v63, %s7999_s0 }
 0xccc   : > { %v6507_v33 = vpop.f32.mrb[28].mxu0 }
 0xccd   : > { %v3226_v2 = vadd.f32 %v6507_v33, %v6170_v7  ;;  %v3217_v42 = vpop.f32.mrb[29].mxu0 }
 0xcce   : > { %v3218_v6 = vadd.f32 %v6170_v7, %v3217_v42  ;;  %v6508_v26 = vpop.f32.mrb[30].mxu0 }
 0xccf   : > { %v3229_v1 = vadd.f32 %v6508_v26, %v6170_v7  ;;  %v3220_v23 = vpop.f32.mrb[31].mxu0  ;;  %v3282_v12 = vmax.f32 %v3226_v2, 0.0 }
 0xcd0   : > { %v3221_v29 = vadd.f32 %v6170_v7, %v3220_v23  ;;  %v3280_v48 = vmax.f32 %v3218_v6, 0.0 }
 0xcd1   : > { %v3283_v15 = vmax.f32 %v3229_v1, 0.0 }
 0xcd2   : > { %v3281_v3 = vmax.f32 %v3221_v29, 0.0 }
 0xcd3   : > { %v3305_v20 = vpack.c.bf16 %v3283_v15, %v3282_v12 }
 0xcd4   : > { %v3304_v44 = vpack.c.bf16 %v3281_v3, %v3280_v48  ;;  %v6511_v11 = vpop.f32.mrb[32].mxu0 }
 0xcd5   : > { %v3242_v57 = vadd.f32 %v6511_v11, %v6170_v7  ;;  %v3233_v58 = vpop.f32.mrb[33].mxu0 }
 0xcd6   : > { %v3234_v9 = vadd.f32 %v6170_v7, %v3233_v58  ;;  %v6512_v34 = vpop.f32.mrb[34].mxu0  ;;  %6529 = vmatprep.mubr.msk.bf16.mxu1 %vm3009_vm11, %v3304_v44 }
 0xcd7   : > { %v3245_v59 = vadd.f32 %v6512_v34, %v6170_v7  ;;  %v3236_v61 = vpop.f32.mrb[35].mxu0  ;;  %6530 = vmatmul.mubr.msk.bf16.vlgmr.msra.gmra.mrb[32].mxu1 %vm3009_vm11, %v3305_v20  ;;  %v3286_v16 = vmax.f32 %v3242_v57, 0.0 }
 0xcd8   : > { %v3237_v22 = vadd.f32 %v6170_v7, %v3236_v61  ;;  %v3284_v37 = vmax.f32 %v3234_v9, 0.0 }
 0xcd9   : > { %v3287_v39 = vmax.f32 %v3245_v59, 0.0 }
 0xcda   : > { %v3285_v19 = vmax.f32 %v3237_v22, 0.0 }
 0xcdb   : > { %v3307_v24 = vpack.c.bf16 %v3287_v39, %v3286_v16 }
 0xcdc   : > { %v3306_v30 = vpack.c.bf16 %v3285_v19, %v3284_v37  ;;  %v6515_v50 = vpop.f32.mrb[36].mxu0 }
 0xcdd   : > { %v3258_v53 = vadd.f32 %v6515_v50, %v6170_v7  ;;  %v3249_v43 = vpop.f32.mrb[37].mxu0 }
 0xcde   : > { %v3250_v49 = vadd.f32 %v6170_v7, %v3249_v43  ;;  %v6516_v35 = vpop.f32.mrb[38].mxu0  ;;  %6533 = vmatprep.mubr.msk.bf16.mxu1 %vm3009_vm11, %v3306_v30 }
 0xcdf   : > { %v3261_v32 = vadd.f32 %v6516_v35, %v6170_v7  ;;  %v3252_v25 = vpop.f32.mrb[39].mxu0  ;;  %6534 = vmatmul.mubr.msk.bf16.gmra.mrb[36].mxu1 %vm3009_vm11, %v3307_v24  ;;  %v3290_v45 = vmax.f32 %v3258_v53, 0.0 }
 0xce0   : > { %v3253_v41 = vadd.f32 %v6170_v7, %v3252_v25  ;;  %v3288_v55 = vmax.f32 %v3250_v49, 0.0 }
 0xce1   : > { %v3291_v28 = vmax.f32 %v3261_v32, 0.0 }
 0xce2   : > { %v3289_v40 = vmax.f32 %v3253_v41, 0.0 }
 0xce3   : > { %v3309_v63 = vpack.c.bf16 %v3291_v28, %v3290_v45 }
 0xce4   : > { %v3308_v5 = vpack.c.bf16 %v3289_v40, %v3288_v55  ;;  %v6519_v33 = vpop.f32.mrb[40].mxu0 }
 0xce5   : > { %v3274_v2 = vadd.f32 %v6519_v33, %v6170_v7  ;;  %v3265_v42 = vpop.f32.mrb[41].mxu0 }
 0xce6   : > { %v3266_v6 = vadd.f32 %v6170_v7, %v3265_v42  ;;  %v6520_v26 = vpop.f32.mrb[42].mxu0  ;;  %6537 = vmatprep.mubr.msk.bf16.mxu1 %vm3009_vm11, %v3308_v5 }
 0xce7   : > { %v3277_v1 = vadd.f32 %v6520_v26, %v6170_v7  ;;  %v3268_v23 = vpop.f32.mrb[43].mxu0  ;;  %6538 = vmatmul.mubr.msk.bf16.gmra.mrb[40].mxu1 %vm3009_vm11, %v3309_v63  ;;  %v3294_v12 = vmax.f32 %v3274_v2, 0.0 }
 0xce8   : > { %v3269_v29 = vadd.f32 %v6170_v7, %v3268_v23  ;;  %v3292_v48 = vmax.f32 %v3266_v6, 0.0  ;;  %v6168_v23 = vld [vmem:[#allocation32] ss:$0 sm:$0xff] }
 0xce9   : > { %v3295_v15 = vmax.f32 %v3277_v1, 0.0  ;;  %v6169_v1 = vld [vmem:[#allocation32 + $0x1] ss:$0 sm:$0xff] }
 0xcea   : > { %v3293_v3 = vmax.f32 %v3269_v29, 0.0  ;;  %v6181_v29 = vld [vmem:[#allocation30] ss:$0 sm:$0xff] }
 0xceb   : > { %v3311_v20 = vpack.c.bf16 %v3295_v15, %v3294_v12 }
 0xcec   : > { %v3310_v44 = vpack.c.bf16 %v3293_v3, %v3292_v48 }
 0xcee   : > { %6541 = vmatprep.mubr.msk.bf16.mxu1 %vm3009_vm11, %v3310_v44 }
 0xcef   : > { %6542 = vmatmul.mubr.msk.bf16.gmra.mrb[44].mxu1 %vm3009_vm11, %v3311_v20 }
 0xd32   : > { %v3057_v11 = vpop.permute.xlu0 %3056 }
 0xd33   : > { %v3062_v57 = vadd.f32 %v3057_v11, %v9382_v56 }
 0xd34   : > { %v3059_v58 = vpop.permute.xlu1 %3058 }
 0xd35   : > { %v3063_v9 = vadd.f32 %v3059_v58, %v9380_v54  ;;  %3068 = vrot.lane.b32.xlu1 %v3062_v57, %s7999_s0 }
 0xd37   : > { %3070 = vrot.lane.b32.xlu0 %v3063_v9, %s7999_s0 }
 0xda7   : > { %v3069_v7 = vpop.permute.xlu1 %3068 }
 0xda8   : > { %v3074_v34 = vsel %vm1140_vm1, %v3069_v7, 0.0 }
 0xda9   : > { %v3071_v59 = vpop.permute.xlu0 %3070  ;;  %3075 = vadd.xlane.f32.xlu1 %v3074_v34 }
 0xdaa   : > { %v6531_v61 = vpop.f32.mrb[32].mxu1  ;;  %v3077_v22 = vsel %vm1140_vm1, %v3071_v59, 0.0 }
 0xdab   : > { %v3401_v16 = vpop.f32.mrb[33].mxu1  ;;  %3078 = vadd.xlane.f32.xlu0 %v3077_v22  ;;  %v3410_v20 = vadd.f32 %v6531_v61, %v6181_v29 }
 0xdac   : > { %v6532_v39 = vpop.f32.mrb[34].mxu1  ;;  %v3402_v12 = vadd.f32 %v6181_v29, %v3401_v16 }
 0xdad   : > { %v3404_v37 = vpop.f32.mrb[35].mxu1  ;;  %v3413_v48 = vadd.f32 %v6532_v39, %v6181_v29 }
 0xdae   : > { %v3405_v15 = vadd.f32 %v6181_v29, %v3404_v37  ;;  %v9656_v3 = vadd.f32 %v3402_v12, %v9516_v46 }
 0xdaf   : > { %v9662_v11 = vadd.f32 %v3413_v48, %v9533_v62 }
 0xdb0   : > { %v9659_v44 = vadd.f32 %v3405_v15, %v9519_v17  ;;  %v3482_v58 = vsel %vm1140_vm1, %v9656_v3, 0.0 }
 0xdb1   : > { %v3491_v62 = vsel %vm1140_vm1, %v9662_v11, 0.0 }
 0xdb2   : > { %v6535_v56 = vpop.f32.mrb[36].mxu1  ;;  %v3485_v46 = vsel %vm1140_vm1, %v9659_v44, 0.0 }
 0xdb3   : > { %v3417_v19 = vpop.f32.mrb[37].mxu1  ;;  %v3426_v59 = vadd.f32 %v6535_v56, %v6181_v29 }
 0xdb4   : > { %v6536_v24 = vpop.f32.mrb[38].mxu1  ;;  %v3418_v7 = vadd.f32 %v6181_v29, %v3417_v19 }
 0xdb5   : > { %v3420_v54 = vpop.f32.mrb[39].mxu1  ;;  %v3429_v34 = vadd.f32 %v6536_v24, %v6181_v29  ;;  %v9687_v39 = vadd.f32 %v3426_v59, %v9554_v14 }
 0xdb6   : > { %v9677_v61 = vadd.f32 %v3418_v7, %v9541_v21 }
 0xdb7   : > { %v9682_v22 = vadd.f32 %v3429_v34, %v9559_v52  ;;  %v3500_v14 = vsel %vm1140_vm1, %v9687_v39, 0.0 }
 0xdb8   : > { %v3494_v21 = vsel %vm1140_vm1, %v9677_v61, 0.0 }
 0xdb9   : > { %v3503_v52 = vsel %vm1140_vm1, %v9682_v22, 0.0 }
 0xdba   : > { %v9633_v30 = vpop.f32.mrb[40].mxu1 }
 0xdbb   : > { %v3433_v50 = vpop.f32.mrb[41].mxu1  ;;  %v3442_v24 = vadd.f32 %v9633_v30, %v6181_v29 }
 0xdbc   : > { %v6540_v53 = vpop.f32.mrb[42].mxu1  ;;  %v3434_v37 = vadd.f32 %v6181_v29, %v3433_v50 }
 0xdbd   : > { %v3436_v43 = vpop.f32.mrb[43].mxu1  ;;  %v3445_v56 = vadd.f32 %v6540_v53, %v6181_v29 }
 0xdbe   : > { %v3437_v16 = vadd.f32 %v6181_v29, %v3436_v43  ;;  %v9708_v43 = vadd.f32 %v3442_v24, %v9580_v0 }
 0xdbf   : > { %v9703_v50 = vadd.f32 %v3445_v56, %v9585_v47 }
 0xdc0   : > { %v9692_v19 = vadd.f32 %v3437_v16, %v9572_v4 }
 0xdc1   : > { %v3515_v47 = vsel %vm1140_vm1, %v9703_v50, 0.0 }
 0xdc2   : > { %v9635_v49 = vpop.f32.mrb[44].mxu1  ;;  %v3509_v4 = vsel %vm1140_vm1, %v9692_v19, 0.0 }
 0xdc3   : > { %v9637_v35 = vpop.f32.mrb[45].mxu1 }
 0xdc4   : > { %v9639_v32 = vpop.f32.mrb[46].mxu1  ;;  %v3450_v30 = vadd.f32 %v6181_v29, %v9637_v35  ;;  %v3512_v35 = vsel %vm1140_vm1, %v9708_v43, 0.0 }
 0xdc5   : > { %v3452_v25 = vpop.f32.mrb[47].mxu1 }
 0xdc6   : > { %v3453_v53 = vadd.f32 %v6181_v29, %v3452_v25  ;;  %v3458_v25 = vadd.f32 %v9635_v49, %v6181_v29  ;;  %v9721_v0 = vadd.f32 %v3450_v30, %v9593_v51 }
 0xdc8   : > { %v3518_v49 = vsel %vm1140_vm1, %v9721_v0, 0.0 }
 0xe36   : > { %v3076_v41 = vpop.xlane.xlu1 %3075 }
 0xe37   : > { %v3080_v45 = vmul.f32 0.03125, %v3076_v41  ;;  %v3461_v41 = vadd.f32 %v9639_v32, %v6181_v29  ;;  %v9731_v32 = vadd.f32 %v3458_v25, %v9606_v13 }
 0xe38   : > { %v3079_v28 = vpop.xlane.xlu0 %3078 }
 0xe39   : > { %v9641_v55 = vsub.f32 %v3062_v57, %v3080_v45  ;;  %v3081_v40 = vmul.f32 0.03125, %v3079_v28  ;;  %v3421_v57 = vadd.f32 %v6181_v29, %v3420_v54  ;;  %v9698_v54 = vadd.f32 %v3434_v37, %v9567_v38 }
 0xe3a   : > { %v9715_v45 = vadd.f32 %v3453_v53, %v9598_v36  ;;  %v9726_v28 = vadd.f32 %v3461_v41, %v9610_v18  ;;  %v6989_v18 = vld [vmem:[#allocation9 + $0x10] sm:$0xff]  }
 0xe3b   : > { %v9643_v63 = vsub.f32 %v3063_v9, %v3081_v40  ;;  %v3084_v5 = vmul.f32 %v9641_v55, %v9641_v55  ;;  %v9667_v9 = vadd.f32 %v3410_v20, %v9529_v8  ;;  %v9672_v17 = vadd.f32 %v3421_v57, %v9546_v31  ;;  %6546 = vmatpush3.bf16.msra.mxu0 %v6989_v18 }
 0xe3c   : > { %v3506_v38 = vsel %vm1140_vm1, %v9698_v54, 0.0  ;;  %v3521_v36 = vsel %vm1140_vm1, %v9715_v45, 0.0  ;;  %v3527_v51 = vsel %vm1140_vm1, %v9726_v28, 0.0  ;;  %v3524_v40 = vsel %vm1140_vm1, %v9731_v32, 0.0  ;;  %6547 = vmatprep.subr.bf16.mxu0 %v10872_v60 }
 0xe3d   : > { %3088 = vrot.lane.b32.xlu0 %v3084_v5, %s7999_s0  ;;  %v3085_v33 = vmul.f32 %v9643_v63, %v9643_v63  ;;  %v3488_v8 = vsel %vm1140_vm1, %v9667_v9, 0.0  ;;  %v3497_v31 = vsel %vm1140_vm1, %v9672_v17, 0.0  ;;  %v6990_v5 = vld [vmem:[#allocation9 + $0x18] sm:$0xff]  }
 0xe3f   : > { %3090 = vrot.lane.b32.xlu1 %v3085_v33, %s7999_s0  ;;  %6548 = vmatpush3.bf16.msra.mxu0 %v6990_v5 }
 0xeaf   : > { %v3089_v2 = vpop.permute.xlu0 %3088 }
 0xeb0   : > { %v3094_v42 = vsel %vm1140_vm1, %v3089_v2, 0.0 }
 0xeb1   : > { %3095 = vadd.xlane.f32.xlu1 %v3094_v42  ;;  %v3091_v6 = vpop.permute.xlu1 %3090 }
 0xeb2   : > { %v3097_v26 = vsel %vm1140_vm1, %v3091_v6, 0.0 }
 0xeb3   : > { %3098 = vadd.xlane.f32.xlu0 %v3097_v26 }
 0xec2   : > { %3123 = vrot.lane.b32.xlu1 %v6169_v1, %s7999_s0 }
 0xec9   : > { %3113 = vrot.lane.b32.xlu0 %v6168_v23, %s7999_s0 }
 0xee6   : > { %3483 = vadd.xlane.f32.xlu1 %v3482_v58 }
 0xee8   : > { %3486 = vadd.xlane.f32.xlu0 %v3485_v46 }
 0xeea   : > { %3492 = vadd.xlane.f32.xlu1 %v3491_v62 }
 0xeec   : > { %3489 = vadd.xlane.f32.xlu0 %v3488_v8 }
 0xeee   : > { %3498 = vadd.xlane.f32.xlu1 %v3497_v31 }
 0xef0   : > { %3495 = vadd.xlane.f32.xlu0 %v3494_v21 }
 0xef2   : > { %3504 = vadd.xlane.f32.xlu1 %v3503_v52 }
 0xef4   : > { %3501 = vadd.xlane.f32.xlu0 %v3500_v14 }
 0xef6   : > { %3510 = vadd.xlane.f32.xlu1 %v3509_v4 }
 0xef8   : > { %3507 = vadd.xlane.f32.xlu0 %v3506_v38 }
 0xefa   : > { %3516 = vadd.xlane.f32.xlu1 %v3515_v47 }
 0xefc   : > { %3513 = vadd.xlane.f32.xlu0 %v3512_v35 }
 0xefe   : > { %3522 = vadd.xlane.f32.xlu1 %v3521_v36 }
 0xf00   : > { %3519 = vadd.xlane.f32.xlu0 %v3518_v49 }
 0xf02   : > { %3528 = vadd.xlane.f32.xlu1 %v3527_v51 }
 0xf04   : > { %3525 = vadd.xlane.f32.xlu0 %v3524_v40 }
 0xf3e   : > { %v3096_v13 = vpop.xlane.xlu1 %3095 }
 0xf3f   : > { %v3100_v33 = vmul.f32 0.03125, %v3096_v13 }
 0xf40   : > { %v3099_v2 = vpop.xlane.xlu0 %3098 }
 0xf41   : > { %v3102_v42 = vadd.f32 1e-05, %v3100_v33  ;;  %v3101_v6 = vmul.f32 0.03125, %v3099_v2 }
 0xf42   : > { %v3124_v60 = vpop.permute.xlu1 %3123 }
 0xf43   : > { %7076 = vrsqrt.f32 %v3102_v42  ;;  %v3103_v26 = vadd.f32 1e-05, %v3101_v6 }
 0xf44   : > { %v3114_v12 = vpop.permute.xlu0 %3113 }
 0xf45   : > { %7078 = vrsqrt.f32 %v3103_v26 }
 0xf4d   : > { %v7077_v1 = vpop.eup %7076 }
 0xf4e   : > { %v3106_v23 = vmul.f32 %v7077_v1, %v9641_v55 }
 0xf4f   : > { %v7079_v29 = vpop.eup %7078 }
 0xf50   : > { %v3107_v15 = vmul.f32 %v7079_v29, %v9643_v63  ;;  %v3116_v48 = vmul.f32 %v3114_v12, %v3106_v23 }
 0xf52   : > { %v3117_v20 = vmul.f32 %v3114_v12, %v3107_v15  ;;  %v3126_v57 = vadd.f32 %v3124_v60, %v3116_v48 }
 0xf54   : > { %v3127_v58 = vadd.f32 %v3124_v60, %v3117_v20 }
 0xf56   : > { %v3735_v7 = vpack.c.bf16 %v3127_v58, %v3126_v57 }
 0xf58   : > { %3737 = vrot.lane.b32.xlu0 %v3735_v7, %s7999_s0  ;;  %s7854_s0 = sshll.u32 %s8002_s5, 4  ;;  %s7855_s0 = int_to_ptr.vmem [resolvable:$false] %s7854_s0 }
 0xf59   : > { %p7857_p6 = scmp.lt.s32.totalorder %s10647_s8, %s7855_s0 }
 0xf73   : > { %v3484_v46 = vpop.xlane.xlu1 %3483 }
 0xf74   : > { %v3530_v34 = vmul.f32 0.03125, %v3484_v46 }
 0xf75   : > { %v3487_v62 = vpop.xlane.xlu0 %3486 }
 0xf76   : > { %v9744_v59 = vsub.f32 %v9656_v3, %v3530_v34  ;;  %v3531_v8 = vmul.f32 0.03125, %v3487_v62 }
 0xf77   : > { %v3493_v55 = vpop.xlane.xlu1 %3492 }
 0xf78   : > { %v9747_v16 = vsub.f32 %v9659_v44, %v3531_v8  ;;  %v3562_v63 = vmul.f32 %v9744_v59, %v9744_v59  ;;  %v3533_v37 = vmul.f32 0.03125, %v3493_v55 }
 0xf79   : > { %v3490_v31 = vpop.xlane.xlu0 %3489 }
 0xf7a   : > { %v3532_v21 = vmul.f32 0.03125, %v3490_v31  ;;  %v3578_v56 = vsel %vm1140_vm1, %v3562_v63, 0.0  ;;  %v3563_v52 = vmul.f32 %v9747_v16, %v9747_v16  ;;  %v9758_v44 = vsub.f32 %v9662_v11, %v3533_v37 }
 0xf7b   : > { %3579 = vadd.xlane.f32.xlu1 %v3578_v56  ;;  %v3499_v24 = vpop.xlane.xlu1 %3498 }
 0xf7c   : > { %v9755_v3 = vsub.f32 %v9667_v9, %v3532_v21  ;;  %v3581_v4 = vsel %vm1140_vm1, %v3563_v52, 0.0  ;;  %v3535_v38 = vmul.f32 0.03125, %v3499_v24  ;;  %v3565_v35 = vmul.f32 %v9758_v44, %v9758_v44 }
 0xf7d   : > { %v3496_v14 = vpop.xlane.xlu0 %3495 }
 0xf7e   : > { %v3534_v53 = vmul.f32 0.03125, %v3496_v14  ;;  %v3564_v30 = vmul.f32 %v9755_v3, %v9755_v3  ;;  %v9773_v49 = vsub.f32 %v9672_v17, %v3535_v38  ;;  %v3587_v18 = vsel %vm1140_vm1, %v3565_v35, 0.0 }
 0xf7f   : > { %3582 = vadd.xlane.f32.xlu1 %v3581_v4  ;;  %v3505_v11 = vpop.xlane.xlu1 %3504 }
 0xf80   : > { %v9764_v47 = vsub.f32 %v9677_v61, %v3534_v53  ;;  %v3584_v9 = vsel %vm1140_vm1, %v3564_v30, 0.0  ;;  %v3537_v40 = vmul.f32 0.03125, %v3505_v11  ;;  %v3567_v6 = vmul.f32 %v9773_v49, %v9773_v49 }
 0xf81   : > { %v3502_v41 = vpop.xlane.xlu0 %3501 }
 0xf82   : > { %v3536_v25 = vmul.f32 0.03125, %v3502_v41  ;;  %v3566_v5 = vmul.f32 %v9764_v47, %v9764_v47  ;;  %v3593_v29 = vsel %vm1140_vm1, %v3567_v6, 0.0  ;;  %v6991_v41 = vld [vmem:[#allocation11 + $0x10] sm:$0xff]  }
 0xf83   : > { %3585 = vadd.xlane.f32.xlu1 %v3584_v9  ;;  %v3511_v17 = vpop.xlane.xlu1 %3510  ;;  %6553 = vmatprep.subr.bf16.mxu1 %v6991_v41 }
 0xf84   : > { %v9770_v36 = vsub.f32 %v9687_v39, %v3536_v25  ;;  %v9782_v39 = vsub.f32 %v9682_v22, %v3537_v40  ;;  %v3590_v42 = vsel %vm1140_vm1, %v3566_v5, 0.0  ;;  %v3539_v26 = vmul.f32 0.03125, %v3511_v17  ;;  %6554 = vmatpush3.bf16.msra.mxu1 %v6991_v41 }
 0xf85   : > { %v3508_v51 = vpop.xlane.xlu0 %3507 }
 0xf86   : > { %v3568_v61 = vmul.f32 %v9770_v36, %v9770_v36  ;;  %v3538_v2 = vmul.f32 0.03125, %v3508_v51  ;;  %v3569_v12 = vmul.f32 %v9782_v39, %v9782_v39  ;;  %v9794_v22 = vsub.f32 %v9692_v19, %v3539_v26 }
 0xf87   : > { %3588 = vadd.xlane.f32.xlu1 %v3587_v18  ;;  %v3517_v48 = vpop.xlane.xlu1 %3516 }
 0xf88   : > { %v3596_v13 = vsel %vm1140_vm1, %v3568_v61, 0.0  ;;  %v9788_v23 = vsub.f32 %v9698_v54, %v3538_v2  ;;  %v3599_v57 = vsel %vm1140_vm1, %v3569_v12, 0.0  ;;  %v3541_v7 = vmul.f32 0.03125, %v3517_v48  ;;  %v9841_v48 = vld [vmem:[#allocation32 + $0x2] ss:$0 sm:$0xff] }
 0xf89   : > { %v3514_v33 = vpop.xlane.xlu0 %3513  ;;  %3597 = vadd.xlane.f32.xlu0 %v3596_v13  ;;  %v3571_v62 = vmul.f32 %v9794_v22, %v9794_v22 }
 0xf8a   : > { %v3540_v20 = vmul.f32 0.03125, %v3514_v33  ;;  %v3570_v58 = vmul.f32 %v9788_v23, %v9788_v23 }
 0xf8b   : > { %3591 = vadd.xlane.f32.xlu1 %v3590_v42  ;;  %v3523_v55 = vpop.xlane.xlu1 %3522 }
 0xf8c   : > { %v9803_v46 = vsub.f32 %v9708_v43, %v3540_v20  ;;  %v3602_v19 = vsel %vm1140_vm1, %v3570_v58, 0.0  ;;  %v3605_v43 = vsel %vm1140_vm1, %v3571_v62, 0.0  ;;  %v3543_v37 = vmul.f32 0.03125, %v3523_v55  ;;  %v9845_v62 = vld [vmem:[#allocation32 + $0x3] ss:$0 sm:$0xff] }
 0xf8d   : > { %v3520_v1 = vpop.xlane.xlu0 %3519 }
 0xf8e   : > { %v3542_v63 = vmul.f32 0.03125, %v3520_v1  ;;  %v3572_v31 = vmul.f32 %v9803_v46, %v9803_v46 }
 0xf8f   : > { %3594 = vadd.xlane.f32.xlu1 %v3593_v29  ;;  %v3529_v24 = vpop.xlane.xlu1 %3528 }
 0xf90   : > { %v9818_v21 = vsub.f32 %v9721_v0, %v3542_v63  ;;  %v3608_v56 = vsel %vm1140_vm1, %v3572_v31, 0.0  ;;  %v3545_v14 = vmul.f32 0.03125, %v3529_v24 }
 0xf91   : > { %v3526_v15 = vpop.xlane.xlu0 %3525 }
 0xf92   : > { %v3544_v60 = vmul.f32 0.03125, %v3526_v15  ;;  %v3574_v4 = vmul.f32 %v9818_v21, %v9818_v21  ;;  %v9830_v0 = vsub.f32 %v9726_v28, %v3545_v14  ;;  %v6992_v28 = vld [vmem:[#allocation11 + $0x18] sm:$0xff]  }
 0xf93   : > { %3600 = vadd.xlane.f32.xlu1 %v3599_v57  ;;  %6555 = vmatprep.subr.bf16.mxu1 %v6992_v28 }
 0xf94   : > { %v9800_v54 = vsub.f32 %v9731_v32, %v3544_v60  ;;  %v9812_v32 = vsub.f32 %v9703_v50, %v3541_v7  ;;  %v9824_v50 = vsub.f32 %v9715_v45, %v3543_v37  ;;  %v3614_v30 = vsel %vm1140_vm1, %v3574_v4, 0.0  ;;  %6556 = vmatpush3.bf16.msra.mxu1 %v6992_v28 }
 0xf95   : > { %v3577_v25 = vmul.f32 %v9830_v0, %v9830_v0 }
 0xf96   : > { %v3576_v34 = vmul.f32 %v9800_v54, %v9800_v54  ;;  %v3573_v52 = vmul.f32 %v9812_v32, %v9812_v32  ;;  %v3575_v38 = vmul.f32 %v9824_v50, %v9824_v50 }
 0xf97   : > { %3603 = vadd.xlane.f32.xlu1 %v3602_v19  ;;  %v3623_v9 = vsel %vm1140_vm1, %v3577_v25, 0.0 }
 0xf98   : > { %v3620_v8 = vsel %vm1140_vm1, %v3576_v34, 0.0  ;;  %v3611_v53 = vsel %vm1140_vm1, %v3573_v52, 0.0  ;;  %v3617_v45 = vsel %vm1140_vm1, %v3575_v38, 0.0 }
 0xf99   : > { %3621 = vadd.xlane.f32.xlu0 %v3620_v8 }
 0xf9b   : > { %3606 = vadd.xlane.f32.xlu1 %v3605_v43 }
 0xf9f   : > { %3609 = vadd.xlane.f32.xlu1 %v3608_v56 }
 0xfa3   : > { %3612 = vadd.xlane.f32.xlu1 %v3611_v53 }
 0xfa7   : > { %3615 = vadd.xlane.f32.xlu1 %v3614_v30 }
 0xfab   : > { %3618 = vadd.xlane.f32.xlu1 %v3617_v45 }
 0xfaf   : > { %3624 = vadd.xlane.f32.xlu1 %v3623_v9 }
 0xfca   : > { %v3738_v35 = vpop.permute.xlu0 %3737 }
 0xfcb   : > { %6550 = vmatmul.mubr.msk.bf16.vlgmr.msra.gmra.mrb[44].mxu0 %vm1140_vm1, %v3738_v35 }
0x1008   : > { %v3580_v11 = vpop.xlane.xlu1 %3579 }
0x1009   : > { %v3626_v51 = vmul.f32 0.03125, %v3580_v11 }
0x100b   : > { %v3642_v40 = vadd.f32 1e-05, %v3626_v51 }
0x100c   : > { %v3583_v18 = vpop.xlane.xlu1 %3582 }
0x100d   : > { %7080 = vrsqrt.f32 %v3642_v40  ;;  %v3627_v61 = vmul.f32 0.03125, %v3583_v18 }
0x100f   : > { %v3643_v5 = vadd.f32 1e-05, %v3627_v61 }
0x1010   : > { %v3586_v13 = vpop.xlane.xlu1 %3585 }
0x1011   : > { %7082 = vrsqrt.f32 %v3643_v5  ;;  %v3628_v33 = vmul.f32 0.03125, %v3586_v13 }
0x1013   : > { %v3644_v17 = vadd.f32 1e-05, %v3628_v33 }
0x1014   : > { %v3589_v2 = vpop.xlane.xlu1 %3588 }
0x1015   : > { %7084 = vrsqrt.f32 %v3644_v17  ;;  %v3629_v42 = vmul.f32 0.03125, %v3589_v2 }
0x1016   : > { %v3598_v6 = vpop.xlane.xlu0 %3597 }
0x1017   : > { %v7081_v26 = vpop.eup %7080  ;;  %v3645_v1 = vadd.f32 1e-05, %v3629_v42  ;;  %v3632_v29 = vmul.f32 0.03125, %v3598_v6 }
0x1018   : > { %v3592_v12 = vpop.xlane.xlu1 %3591  ;;  %v3674_v15 = vmul.f32 %v7081_v26, %v9744_v59 }
0x1019   : > { %7086 = vrsqrt.f32 %v3645_v1  ;;  %v3630_v20 = vmul.f32 0.03125, %v3592_v12  ;;  %v3648_v57 = vadd.f32 1e-05, %v3632_v29 }
0x101a   : > { %v3694_v34 = vmul.f32 %v9841_v48, %v3674_v15 }
0x101b   : > { %v7083_v60 = vpop.eup %7082  ;;  %v3646_v58 = vadd.f32 1e-05, %v3630_v20 }
0x101c   : > { %v3595_v7 = vpop.xlane.xlu1 %3594  ;;  %v3675_v19 = vmul.f32 %v7083_v60, %v9747_v16  ;;  %v9850_v37 = vadd.f32 %v9845_v62, %v3694_v34 }
0x101d   : > { %7088 = vrsqrt.f32 %v3646_v58  ;;  %v3631_v8 = vmul.f32 0.03125, %v3595_v7 }
0x101e   : > { %v3695_v55 = vmul.f32 %v9841_v48, %v3675_v19  ;;  %7090 = vrsqrt.f32 %v3648_v57 }
0x101f   : > { %v7085_v63 = vpop.eup %7084  ;;  %v3647_v59 = vadd.f32 1e-05, %v3631_v8 }
0x1020   : > { %v3676_v43 = vmul.f32 %v7085_v63, %v9755_v3  ;;  %v3601_v31 = vpop.xlane.xlu1 %3600  ;;  %v9853_v56 = vadd.f32 %v9845_v62, %v3695_v55 }
0x1021   : > { %7092 = vrsqrt.f32 %v3647_v59  ;;  %v3633_v16 = vmul.f32 0.03125, %v3601_v31 }
0x1022   : > { %v3800_v52 = vpack.c.bf16 %v9853_v56, %v9850_v37  ;;  %v3696_v53 = vmul.f32 %v9841_v48, %v3676_v43 }
0x1023   : > { %v7087_v24 = vpop.eup %7086  ;;  %v3649_v14 = vadd.f32 1e-05, %v3633_v16 }
0x1024   : > { %v3677_v4 = vmul.f32 %v7087_v24, %v9758_v44  ;;  %6557 = vmatprep.mubr.msk.bf16.mxu1 %vm1140_vm1, %v3800_v52  ;;  %v3604_v3 = vpop.xlane.xlu1 %3603  ;;  %v9862_v25 = vadd.f32 %v9845_v62, %v3696_v53 }
0x1025   : > { %7094 = vrsqrt.f32 %v3649_v14  ;;  %v3634_v30 = vmul.f32 0.03125, %v3604_v3 }
0x1026   : > { %v3697_v38 = vmul.f32 %v9841_v48, %v3677_v4  ;;  %v3622_v26 = vpop.xlane.xlu0 %3621 }
0x1027   : > { %v7089_v41 = vpop.eup %7088  ;;  %v3650_v45 = vadd.f32 1e-05, %v3634_v30  ;;  %v3640_v57 = vmul.f32 0.03125, %v3622_v26 }
0x1028   : > { %v9865_v9 = vadd.f32 %v9845_v62, %v3697_v38  ;;  %v3607_v28 = vpop.xlane.xlu1 %3606  ;;  %v3678_v35 = vmul.f32 %v7089_v41, %v9764_v47  ;;  %v7091_v11 = vpop.eup %7090 }
0x1029   : > { %7096 = vrsqrt.f32 %v3650_v45  ;;  %v3635_v44 = vmul.f32 0.03125, %v3607_v28  ;;  %v3680_v61 = vmul.f32 %v7091_v11, %v9770_v36  ;;  %v3656_v59 = vadd.f32 1e-05, %v3640_v57 }
0x102a   : > { %v3801_v51 = vpack.c.bf16 %v9865_v9, %v9862_v25  ;;  %v3698_v33 = vmul.f32 %v9841_v48, %v3678_v35 }
0x102b   : > { %v7093_v40 = vpop.eup %7092  ;;  %v3651_v18 = vadd.f32 1e-05, %v3635_v44 }
0x102c   : > { %6558 = vmatmul.mubr.msk.bf16.vlgmr.msra.gmra.mrb[48].mxu1 %vm1140_vm1, %v3801_v51  ;;  %v3610_v5 = vpop.xlane.xlu1 %3609  ;;  %v3679_v13 = vmul.f32 %v7093_v40, %v9773_v49  ;;  %v9877_v29 = vadd.f32 %v9845_v62, %v3698_v33  ;;  %v3700_v49 = vmul.f32 %v9841_v48, %v3680_v61 }
0x102d   : > { %7098 = vrsqrt.f32 %v3651_v18  ;;  %v3636_v17 = vmul.f32 0.03125, %v3610_v5 }
0x102e   : > { %v3699_v47 = vmul.f32 %v9841_v48, %v3679_v13  ;;  %v9889_v19 = vadd.f32 %v9845_v62, %v3700_v49 }
0x102f   : > { %v7095_v2 = vpop.eup %7094  ;;  %v3652_v42 = vadd.f32 1e-05, %v3636_v17 }
0x1030   : > { %v3681_v6 = vmul.f32 %v7095_v2, %v9782_v39  ;;  %v3613_v1 = vpop.xlane.xlu1 %3612  ;;  %v9880_v36 = vadd.f32 %v9845_v62, %v3699_v47 }
0x1031   : > { %7100 = vrsqrt.f32 %v3652_v42  ;;  %v3637_v12 = vmul.f32 0.03125, %v3613_v1 }
0x1032   : > { %v3802_v15 = vpack.c.bf16 %v9880_v36, %v9877_v29  ;;  %v3701_v20 = vmul.f32 %v9841_v48, %v3681_v6 }
0x1033   : > { %v7097_v60 = vpop.eup %7096  ;;  %v3653_v39 = vadd.f32 1e-05, %v3637_v12  ;;  %v6993_v12 = vld [vmem:[#allocation15 + $0x10] sm:$0xff]  }
0x1034   : > { %v3682_v58 = vmul.f32 %v7097_v60, %v9788_v23  ;;  %6561 = vmatprep.mubr.msk.bf16.mxu1 %vm1140_vm1, %v3802_v15  ;;  %v3616_v7 = vpop.xlane.xlu1 %3615  ;;  %v9892_v34 = vadd.f32 %v9845_v62, %v3701_v20  ;;  %6573 = vmatprep.subr.bf16.mxu0 %v6993_v12  ;;  %v6994_v15 = vld [vmem:[#allocation15 + $0x18] sm:$0xff]  }
0x1035   : > { %7102 = vrsqrt.f32 %v3653_v39  ;;  %v3638_v8 = vmul.f32 0.03125, %v3616_v7  ;;  %6574 = vmatpush3.bf16.msra.mxu0 %v6993_v12 }
0x1036   : > { %v3803_v55 = vpack.c.bf16 %v9892_v34, %v9889_v19  ;;  %v3702_v16 = vmul.f32 %v9841_v48, %v3682_v58  ;;  %6575 = vmatprep.subr.bf16.mxu0 %v6994_v15  ;;  %v10883_v58 = vld [vmem:[#allocation62_spill] sm:$0xff] }
0x1037   : > { %v7099_v63 = vpop.eup %7098  ;;  %v3654_v43 = vadd.f32 1e-05, %v3638_v8 }
0x1038   : > { %v3683_v31 = vmul.f32 %v7099_v63, %v9794_v22  ;;  %6562 = vmatmul.mubr.msk.bf16.gmra.mrb[52].mxu1 %vm1140_vm1, %v3803_v55  ;;  %v3619_v23 = vpop.xlane.xlu1 %3618  ;;  %v9902_v30 = vadd.f32 %v9845_v62, %v3702_v16 }
0x1039   : > { %7104 = vrsqrt.f32 %v3654_v43  ;;  %v3639_v52 = vmul.f32 0.03125, %v3619_v23  ;;  %6576 = vmatpush3.bf16.msra.mxu0 %v6994_v15 }
0x103a   : > { %v3703_v24 = vmul.f32 %v9841_v48, %v3683_v31  ;;  %7106 = vrsqrt.f32 %v3656_v59 }
0x103b   : > { %v7101_v14 = vpop.eup %7100  ;;  %v3655_v53 = vadd.f32 1e-05, %v3639_v52 }
0x103c   : > { %v3684_v4 = vmul.f32 %v7101_v14, %v9803_v46  ;;  %v3625_v3 = vpop.xlane.xlu1 %3624  ;;  %v9905_v22 = vadd.f32 %v9845_v62, %v3703_v24 }
0x103d   : > { %7108 = vrsqrt.f32 %v3655_v53  ;;  %v3641_v38 = vmul.f32 0.03125, %v3625_v3 }
0x103e   : > { %v3804_v41 = vpack.c.bf16 %v9905_v22, %v9902_v30  ;;  %v3704_v46 = vmul.f32 %v9841_v48, %v3684_v4 }
0x103f   : > { %v7103_v45 = vpop.eup %7102  ;;  %v3657_v28 = vadd.f32 1e-05, %v3641_v38 }
0x1040   : > { %v3685_v35 = vmul.f32 %v7103_v45, %v9812_v32  ;;  %6565 = vmatprep.mubr.msk.bf16.mxu1 %vm1140_vm1, %v3804_v41  ;;  %v9915_v40 = vadd.f32 %v9845_v62, %v3704_v46 }
0x1041   : > { %7110 = vrsqrt.f32 %v3657_v28 }
0x1042   : > { %v3705_v11 = vmul.f32 %v9841_v48, %v3685_v35 }
0x1043   : > { %v7105_v44 = vpop.eup %7104 }
0x1044   : > { %v3686_v51 = vmul.f32 %v7105_v44, %v9818_v21  ;;  %v9918_v18 = vadd.f32 %v9845_v62, %v3705_v11  ;;  %v7107_v61 = vpop.eup %7106 }
0x1045   : > { %v3688_v13 = vmul.f32 %v7107_v61, %v9800_v54 }
0x1046   : > { %v3805_v32 = vpack.c.bf16 %v9918_v18, %v9915_v40  ;;  %v3706_v17 = vmul.f32 %v9841_v48, %v3686_v51 }
0x1047   : > { %v7109_v5 = vpop.eup %7108  ;;  %v3708_v26 = vmul.f32 %v9841_v48, %v3688_v13 }
0x1048   : > { %v3687_v33 = vmul.f32 %v7109_v5, %v9824_v50  ;;  %6566 = vmatmul.mubr.msk.bf16.gmra.mrb[56].mxu1 %vm1140_vm1, %v3805_v32  ;;  %v9929_v42 = vadd.f32 %v9845_v62, %v3706_v17 }
0x1049   : > { %v9940_v1 = vadd.f32 %v9845_v62, %v3708_v26 }
0x104a   : > { %v3707_v21 = vmul.f32 %v9841_v48, %v3687_v33 }
0x104b   : > { %v7111_v47 = vpop.eup %7110 }
0x104c   : > { %v3689_v2 = vmul.f32 %v7111_v47, %v9830_v0  ;;  %v9932_v6 = vadd.f32 %v9845_v62, %v3707_v21 }
0x104e   : > { %v3806_v54 = vpack.c.bf16 %v9932_v6, %v9929_v42  ;;  %v3709_v50 = vmul.f32 %v9841_v48, %v3689_v2 }
0x1050   : > { %6569 = vmatprep.mubr.msk.bf16.mxu1 %vm1140_vm1, %v3806_v54  ;;  %v9943_v0 = vadd.f32 %v9845_v62, %v3709_v50 }
0x1052   : > { %v3807_v49 = vpack.c.bf16 %v9943_v0, %v9940_v1 }
0x1054   : > { %6570 = vmatmul.mubr.msk.bf16.gmra.mrb[60].mxu1 %vm1140_vm1, %v3807_v49 }
0x109e   : > { %v3788_v48 = vpop.f32.mrb[44].mxu0 }
0x109f   : > { %4121 = vrot.lane.b32.xlu0 %v3788_v48, %s8000_s13  ;;  %v6551_v20 = vpop.f32.mrb[45].mxu0  ;;  %v3943_v62 = vcombine.high %v3788_v48, %v3788_v48  ;;  %v3950_v7 = vrot.slane %v3788_v48, %v10883_v58 }
0x10a0   : > { %v3791_v60 = vpop.f32.mrb[46].mxu0 }
0x10a1   : > { %v6552_v57 = vpop.f32.mrb[47].mxu0  ;;  %4123 = vrot.lane.b32.xlu1 %v3791_v60, %s8000_s13  ;;  %v3957_v55 = vrot.slane %v3943_v62, %v10883_v58  ;;  %v3999_v43 = vrot.slane %v3791_v60, %v10883_v58  ;;  %v3958_v31 = vcombine.high %v3950_v7, %v3950_v7  ;;  %v3966_v16 = vrot.slane %v3950_v7, %v10883_v58  ;;  %s7856_s13 = scalar_lea.vmem %s7855_s0, 512 }
0x10a2   : > { %v3992_v14 = vcombine.high %v3791_v60, %v3791_v60  ;;  %p7858_p10 = scmp.lt.s32.totalorder %s7856_s13, %s7850_s3 }
0x10a3   : > { %v3959_v23 = vcombine.high %v3957_v55, %v3957_v55  ;;  %v4007_v52 = vcombine.high %v3999_v43, %v3999_v43  ;;  %v3980_v24 = vrot.slane %v3958_v31, %v10883_v58  ;;  %v3973_v53 = vrot.slane %v3957_v55, %v10883_v58 }
0x10a4   : > { %v4015_v3 = vrot.slane %v3999_v43, %v10883_v58  ;;  %v3988_v38 = vcombine.high %v3966_v16, %v3966_v16  ;;  %v4006_v35 = vrot.slane %v3992_v14, %v10883_v58  ;;  %v4044_v5 = vrot.slane %v3966_v16, %v8834_v27  ;;  %p7859_p11 = por %p7858_p10, %p7857_p6 }
0x10a5   : > { %v3987_v4 = vrot.slane %v3959_v23, %v10883_v58  ;;  %v4029_v41 = vrot.slane %v4007_v52, %v10883_v58  ;;  %v3990_v28 = vcombine.high %v3980_v24, %v3980_v24  ;;  %v3989_v11 = vcombine.high %v3973_v53, %v3973_v53 }
0x10a6   : > { %v4037_v61 = vcombine.high %v4015_v3, %v4015_v3  ;;  %v4048_v13 = vrot.slane %v3980_v24, %v8834_v27  ;;  %v4052_v33 = vrot.slane %v3988_v38, %v8834_v27  ;;  %v4060_v47 = vrot.slane %v3973_v53, %v8834_v27  ;;  %p7860_p3 = pnand %p7859_p11, %p7853_p8 }
0x10a7   : > { %v3991_v44 = vcombine.high %v3987_v4, %v3987_v4  ;;  %v4039_v17 = vcombine.high %v4029_v41, %v4029_v41  ;;  %v4056_v21 = vrot.slane %v3990_v28, %v8834_v27  ;;  %v4064_v2 = vrot.slane %v3987_v4, %v8834_v27 }
0x10a8   : > { %v4008_v26 = vcombine.high %v4006_v35, %v4006_v35  ;;  %v4068_v54 = vrot.slane %v3989_v11, %v8834_v27  ;;  %v4084_v12 = vrot.slane %v4037_v61, %v8834_v27  ;;  %v4076_v15 = vrot.slane %v4015_v3, %v8834_v27 }
0x10a9   : > { %v4072_v50 = vrot.slane %v3991_v44, %v8834_v27  ;;  %v4088_v43 = vrot.slane %v4039_v17, %v8834_v27  ;;  %v4080_v31 = vrot.slane %v4029_v41, %v8834_v27  ;;  %v4022_v17 = vrot.slane %v4006_v35, %v10883_v58 }
0x10ff   : > { %v6559_v39 = vpop.f32.mrb[48].mxu1 }
0x1100   : > { %v3878_v8 = vpop.f32.mrb[49].mxu1 }
0x1101   : > { %v6560_v63 = vpop.f32.mrb[50].mxu1 }
0x1102   : > { %v3881_v59 = vpop.f32.mrb[51].mxu1 }
0x110b   : > { %v6563_v45 = vpop.f32.mrb[52].mxu1 }
0x110c   : > { %v3894_v46 = vpop.f32.mrb[53].mxu1 }
0x110d   : > { %v6564_v51 = vpop.f32.mrb[54].mxu1 }
0x110e   : > { %v3897_v32 = vpop.f32.mrb[55].mxu1 }
0x1111   : > { %v4122_v49 = vpop.permute.xlu0 %4121 }
0x1112   : > { %v4127_v48 = vmul.f32 %v4122_v49, %v4044_v5  ;;  %v4128_v20 = vmul.f32 %v4122_v49, %v4048_v13  ;;  %v4129_v60 = vmul.f32 %v4122_v49, %v4052_v33  ;;  %v4130_v57 = vmul.f32 %v4122_v49, %v4056_v21 }
0x1113   : > { %v4124_v62 = vpop.permute.xlu1 %4123  ;;  %v4131_v7 = vmul.f32 %v4122_v49, %v4060_v47  ;;  %v4132_v55 = vmul.f32 %v4122_v49, %v4064_v2  ;;  %v4133_v24 = vmul.f32 %v4122_v49, %v4068_v54  ;;  %v4134_v38 = vmul.f32 %v4122_v49, %v4072_v50 }
0x1114   : > { %v4143_v23 = vmul.f32 0.17677669, %v4127_v48  ;;  %v4144_v16 = vmul.f32 0.17677669, %v4128_v20  ;;  %v4145_v52 = vmul.f32 0.17677669, %v4129_v60  ;;  %v4137_v11 = vmul.f32 %v4124_v62, %v4084_v12 }
0x1115   : > { %v4146_v14 = vmul.f32 0.17677669, %v4130_v57  ;;  %v4147_v53 = vmul.f32 0.17677669, %v4131_v7  ;;  %v4148_v4 = vmul.f32 0.17677669, %v4132_v55  ;;  %v4135_v5 = vmul.f32 %v4124_v62, %v4076_v15 }
0x1116   : > { %v4159_v3 = vmul.f32 %v4143_v23, %v3878_v8  ;;  %v4160_v28 = vmul.f32 %v4144_v16, %v3881_v59  ;;  %v4161_v44 = vmul.f32 %v6559_v39, %v4145_v52  ;;  %v4138_v41 = vmul.f32 %v4124_v62, %v4088_v43 }
0x1117   : > { %v4162_v61 = vmul.f32 %v6560_v63, %v4146_v14  ;;  %v4163_v13 = vmul.f32 %v4147_v53, %v3894_v46  ;;  %v4164_v33 = vmul.f32 %v4148_v4, %v3897_v32  ;;  %v4149_v47 = vmul.f32 0.17677669, %v4133_v24 }
0x1118   : > { %v4180_v21 = vpack.c.bf16 %v4160_v28, %v4159_v3  ;;  %v4136_v54 = vmul.f32 %v4124_v62, %v4080_v31  ;;  %v4150_v20 = vmul.f32 0.17677669, %v4134_v38  ;;  %v4153_v50 = vmul.f32 0.17677669, %v4137_v11 }
0x1119   : > { %v4181_v2 = vpack.c.bf16 %v4162_v61, %v4161_v44  ;;  %v4182_v48 = vpack.c.bf16 %v4164_v33, %v4163_v13  ;;  %v4165_v8 = vmul.f32 %v6563_v45, %v4149_v47  ;;  %v4036_v59 = vrot.slane %v4008_v26, %v10883_v58 }
0x111a   : > { %6577 = vmatprep.mubr.msk.bf16.mxu0 %vm1140_vm1, %v4180_v21  ;;  %v4151_v63 = vmul.f32 0.17677669, %v4135_v5  ;;  %v4166_v46 = vmul.f32 %v6564_v51, %v4150_v20  ;;  %v4154_v49 = vmul.f32 0.17677669, %v4138_v41  ;;  %v4038_v12 = vcombine.high %v4022_v17, %v4022_v17 }
0x111b   : > { %v6567_v39 = vpop.f32.mrb[56].mxu1  ;;  %6578 = vmatmul.mubr.msk.bf16.vlgmr.msra.gmra.mrb[48].mxu0 %vm1140_vm1, %v4181_v2  ;;  %v4152_v57 = vmul.f32 0.17677669, %v4136_v54  ;;  %v4040_v45 = vcombine.high %v4036_v59, %v4036_v59  ;;  %v4092_v51 = vrot.slane %v4022_v17, %v8834_v27  ;;  %v4096_v14 = vrot.slane %v4036_v59, %v8834_v27  ;;  %v9986_v2 = vld [vmem:[#allocation17 + $0x1] ss:$0 sm:$0xff] }
0x111c   : > { %v4169_v32 = vmul.f32 %v6567_v39, %v4153_v50  ;;  %v3910_v35 = vpop.f32.mrb[57].mxu1  ;;  %6581 = vmatprep.mubr.msk.bf16.mxu0 %vm1140_vm1, %v4182_v48  ;;  %v4183_v7 = vpack.c.bf16 %v4166_v46, %v4165_v8  ;;  %v4100_v26 = vrot.slane %v4038_v12, %v8834_v27 }
0x111d   : > { %v4167_v15 = vmul.f32 %v4151_v63, %v3910_v35  ;;  %v6568_v60 = vpop.f32.mrb[58].mxu1  ;;  %v4104_v52 = vrot.slane %v4040_v45, %v8834_v27  ;;  %v4139_v24 = vmul.f32 %v4124_v62, %v4092_v51  ;;  %v4140_v4 = vmul.f32 %v4124_v62, %v4096_v14 }
0x111e   : > { %v4170_v55 = vmul.f32 %v6568_v60, %v4154_v49  ;;  %v3913_v43 = vpop.f32.mrb[59].mxu1  ;;  %v4141_v16 = vmul.f32 %v4124_v62, %v4100_v26 }
0x111f   : > { %v4168_v31 = vmul.f32 %v4152_v57, %v3913_v43  ;;  %v4142_v53 = vmul.f32 %v4124_v62, %v4104_v52  ;;  %v4155_v28 = vmul.f32 0.17677669, %v4139_v24  ;;  %v4156_v33 = vmul.f32 0.17677669, %v4140_v4 }
0x1120   : > { %v4185_v58 = vpack.c.bf16 %v4170_v55, %v4169_v32  ;;  %v4157_v38 = vmul.f32 0.17677669, %v4141_v16 }
0x1121   : > { %v4184_v23 = vpack.c.bf16 %v4168_v31, %v4167_v15  ;;  %v4158_v61 = vmul.f32 0.17677669, %v4142_v53 }
0x1123   : > { %6582 = vmatmul.mubr.msk.bf16.gmra.mrb[52].mxu0 %vm1140_vm1, %v4183_v7 }
0x1124   : > { %6585 = vmatprep.mubr.msk.bf16.mxu0 %vm1140_vm1, %v4184_v23 }
0x1127   : > { %v6571_v3 = vpop.f32.mrb[60].mxu1 }
0x1128   : > { %v4173_v11 = vmul.f32 %v6571_v3, %v4157_v38  ;;  %v3926_v44 = vpop.f32.mrb[61].mxu1 }
0x1129   : > { %v4171_v5 = vmul.f32 %v4155_v28, %v3926_v44  ;;  %v6572_v13 = vpop.f32.mrb[62].mxu1 }
0x112a   : > { %v4174_v17 = vmul.f32 %v6572_v13, %v4158_v61  ;;  %v3929_v21 = vpop.f32.mrb[63].mxu1 }
0x112b   : > { %v4172_v41 = vmul.f32 %v4156_v33, %v3929_v21  ;;  %6586 = vmatmul.mubr.msk.bf16.gmra.mrb[56].mxu0 %vm1140_vm1, %v4185_v58 }
0x112c   : > { %v4187_v47 = vpack.c.bf16 %v4174_v17, %v4173_v11 }
0x112d   : > { %v4186_v27 = vpack.c.bf16 %v4172_v41, %v4171_v5 }
0x112f   : > { %6589 = vmatprep.mubr.msk.bf16.mxu0 %vm1140_vm1, %v4186_v27 }
0x1133   : > { %6590 = vmatmul.mubr.msk.bf16.gmra.mrb[60].mxu0 %vm1140_vm1, %v4187_v47 }
0x11ee   : > { %v6579_v62 = vpop.f32.mrb[48].mxu0 }
0x11ef   : > { %v4258_v48 = vpop.f32.mrb[49].mxu0  ;;  %v4323_v50 = vadd.f32 %v6579_v62, %v9862_v25 }
0x11f0   : > { %v4321_v54 = vadd.f32 %v4258_v48, %v9850_v37  ;;  %v6580_v20 = vpop.f32.mrb[50].mxu0 }
0x11f1   : > { %v4324_v8 = vadd.f32 %v6580_v20, %v9865_v9  ;;  %v4261_v59 = vpop.f32.mrb[51].mxu0  ;;  %v10004_v35 = vadd.f32 %v9986_v2, %v4323_v50 }
0x11f2   : > { %v9992_v39 = vadd.f32 %v9986_v2, %v4321_v54  ;;  %v4322_v63 = vadd.f32 %v4261_v59, %v9853_v56  ;;  %v6995_v54 = vld [vmem:[#allocation26 + $0x10] sm:$0xff]  }
0x11f3   : > { %v9996_v46 = vadd.f32 %v9986_v2, %v4324_v8  ;;  %v4370_v57 = vsel %vm1140_vm1, %v10004_v35, 0.0  ;;  %6593 = vmatprep.subr.bf16.mxu1 %v6995_v54 }
0x11f4   : > { %v9999_v32 = vadd.f32 %v9986_v2, %v4322_v63  ;;  %v4364_v37 = vsel %vm1140_vm1, %v9992_v39, 0.0  ;;  %6594 = vmatpush3.bf16.msra.mxu1 %v6995_v54 }
0x11f5   : > { %4365 = vadd.xlane.f32.xlu1 %v4364_v37  ;;  %v4373_v15 = vsel %vm1140_vm1, %v9996_v46, 0.0 }
0x11f6   : > { %v6583_v25 = vpop.f32.mrb[52].mxu0  ;;  %v4367_v9 = vsel %vm1140_vm1, %v9999_v32, 0.0 }
0x11f7   : > { %4368 = vadd.xlane.f32.xlu0 %v4367_v9  ;;  %v4274_v49 = vpop.f32.mrb[53].mxu0  ;;  %v4327_v7 = vadd.f32 %v6583_v25, %v9889_v19 }
0x11f8   : > { %v4325_v56 = vadd.f32 %v4274_v49, %v9877_v29  ;;  %v6584_v12 = vpop.f32.mrb[54].mxu0 }
0x11f9   : > { %4374 = vadd.xlane.f32.xlu1 %v4373_v15  ;;  %v4277_v60 = vpop.f32.mrb[55].mxu0  ;;  %v4328_v43 = vadd.f32 %v6584_v12, %v9892_v34  ;;  %v10023_v31 = vadd.f32 %v9986_v2, %v4327_v7 }
0x11fa   : > { %v10015_v55 = vadd.f32 %v9986_v2, %v4325_v56  ;;  %v4326_v45 = vadd.f32 %v4277_v60, %v9880_v36 }
0x11fb   : > { %4371 = vadd.xlane.f32.xlu0 %v4370_v57  ;;  %v10026_v58 = vadd.f32 %v9986_v2, %v4328_v43  ;;  %v4382_v4 = vsel %vm1140_vm1, %v10023_v31, 0.0 }
0x11fc   : > { %v10020_v29 = vadd.f32 %v9986_v2, %v4326_v45  ;;  %v4376_v19 = vsel %vm1140_vm1, %v10015_v55, 0.0 }
0x11fd   : > { %v4385_v38 = vsel %vm1140_vm1, %v10026_v58, 0.0 }
0x11fe   : > { %v6587_v26 = vpop.f32.mrb[56].mxu0  ;;  %v4379_v23 = vsel %vm1140_vm1, %v10020_v29, 0.0 }
0x11ff   : > { %4377 = vadd.xlane.f32.xlu0 %v4376_v19  ;;  %4380 = vadd.xlane.f32.xlu1 %v4379_v23  ;;  %v4290_v36 = vpop.f32.mrb[57].mxu0  ;;  %v4331_v16 = vadd.f32 %v6587_v26, %v9915_v40 }
0x1200   : > { %v4329_v34 = vadd.f32 %v4290_v36, %v9902_v30  ;;  %v6588_v51 = vpop.f32.mrb[58].mxu0 }
0x1201   : > { %v4332_v52 = vadd.f32 %v6588_v51, %v9918_v18  ;;  %v4293_v24 = vpop.f32.mrb[59].mxu0  ;;  %v10047_v40 = vadd.f32 %v9986_v2, %v4331_v16 }
0x1202   : > { %v10036_v14 = vadd.f32 %v9986_v2, %v4329_v34  ;;  %v4330_v53 = vadd.f32 %v4293_v24, %v9905_v22 }
0x1203   : > { %4383 = vadd.xlane.f32.xlu0 %v4382_v4  ;;  %4386 = vadd.xlane.f32.xlu1 %v4385_v38  ;;  %v10050_v18 = vadd.f32 %v9986_v2, %v4332_v52  ;;  %v4394_v13 = vsel %vm1140_vm1, %v10047_v40, 0.0 }
0x1204   : > { %v10044_v30 = vadd.f32 %v9986_v2, %v4330_v53  ;;  %v4388_v22 = vsel %vm1140_vm1, %v10036_v14, 0.0 }
0x1205   : > { %v4397_v33 = vsel %vm1140_vm1, %v10050_v18, 0.0 }
0x1206   : > { %v6591_v3 = vpop.f32.mrb[60].mxu0  ;;  %v4391_v28 = vsel %vm1140_vm1, %v10044_v30, 0.0 }
0x1207   : > { %4389 = vadd.xlane.f32.xlu0 %v4388_v22  ;;  %4392 = vadd.xlane.f32.xlu1 %v4391_v28  ;;  %v4306_v11 = vpop.f32.mrb[61].mxu0  ;;  %v4335_v17 = vadd.f32 %v6591_v3, %v9940_v1 }
0x1208   : > { %v4333_v44 = vadd.f32 %v4306_v11, %v9929_v42  ;;  %v6592_v61 = vpop.f32.mrb[62].mxu0 }
0x1209   : > { %v4309_v5 = vpop.f32.mrb[63].mxu0  ;;  %v4336_v41 = vadd.f32 %v6592_v61, %v9943_v0  ;;  %v10071_v27 = vadd.f32 %v9986_v2, %v4335_v17 }
0x120a   : > { %v10063_v21 = vadd.f32 %v9986_v2, %v4333_v44  ;;  %v4334_v47 = vadd.f32 %v4309_v5, %v9932_v6 }
0x120b   : > { %4395 = vadd.xlane.f32.xlu0 %v4394_v13  ;;  %4398 = vadd.xlane.f32.xlu1 %v4397_v33  ;;  %v10074_v62 = vadd.f32 %v9986_v2, %v4336_v41  ;;  %v4406_v6 = vsel %vm1140_vm1, %v10071_v27, 0.0 }
0x120c   : > { %v10068_v42 = vadd.f32 %v9986_v2, %v4334_v47  ;;  %v4400_v1 = vsel %vm1140_vm1, %v10063_v21, 0.0 }
0x120d   : > { %v4409_v0 = vsel %vm1140_vm1, %v10074_v62, 0.0 }
0x120e   : > { %v4403_v48 = vsel %vm1140_vm1, %v10068_v42, 0.0 }
0x120f   : > { %4401 = vadd.xlane.f32.xlu0 %v4400_v1  ;;  %4404 = vadd.xlane.f32.xlu1 %v4403_v48 }
0x1213   : > { %4407 = vadd.xlane.f32.xlu0 %v4406_v6  ;;  %4410 = vadd.xlane.f32.xlu1 %v4409_v0 }
0x1282   : > { %v4366_v2 = vpop.xlane.xlu1 %4365 }
0x1283   : > { %v4412_v20 = vmul.f32 0.03125, %v4366_v2 }
0x1284   : > { %v4369_v50 = vpop.xlane.xlu0 %4368 }
0x1285   : > { %v10085_v8 = vsub.f32 %v9992_v39, %v4412_v20  ;;  %v4413_v59 = vmul.f32 0.03125, %v4369_v50 }
0x1286   : > { %v4375_v63 = vpop.xlane.xlu1 %4374 }
0x1287   : > { %v10088_v37 = vsub.f32 %v9999_v32, %v4413_v59  ;;  %v4415_v25 = vmul.f32 0.03125, %v4375_v63  ;;  %v4444_v9 = vmul.f32 %v10085_v8, %v10085_v8 }
0x1288   : > { %v4372_v49 = vpop.xlane.xlu0 %4371 }
0x1289   : > { %v10093_v56 = vsub.f32 %v9996_v46, %v4415_v25  ;;  %v4414_v12 = vmul.f32 0.03125, %v4372_v49  ;;  %v4460_v15 = vsel %vm1140_vm1, %v4444_v9, 0.0  ;;  %v4445_v39 = vmul.f32 %v10088_v37, %v10088_v37 }
0x128a   : > { %4461 = vadd.xlane.f32.xlu0 %v4460_v15 }
0x128b   : > { %v10099_v60 = vsub.f32 %v10004_v35, %v4414_v12  ;;  %v4463_v32 = vsel %vm1140_vm1, %v4445_v39, 0.0  ;;  %v4447_v57 = vmul.f32 %v10093_v56, %v10093_v56 }
0x128c   : > { %v4378_v7 = vpop.xlane.xlu0 %4377  ;;  %4464 = vadd.xlane.f32.xlu1 %v4463_v32  ;;  %v4381_v43 = vpop.xlane.xlu1 %4380 }
0x128d   : > { %v4416_v46 = vmul.f32 0.03125, %v4378_v7  ;;  %v4417_v45 = vmul.f32 0.03125, %v4381_v43  ;;  %v4446_v26 = vmul.f32 %v10099_v60, %v10099_v60  ;;  %v4469_v36 = vsel %vm1140_vm1, %v4447_v57, 0.0 }
0x128f   : > { %v10107_v19 = vsub.f32 %v10015_v55, %v4416_v46  ;;  %v10110_v23 = vsub.f32 %v10020_v29, %v4417_v45  ;;  %v4466_v35 = vsel %vm1140_vm1, %v4446_v26, 0.0 }
0x1290   : > { %v4384_v34 = vpop.xlane.xlu0 %4383  ;;  %4467 = vadd.xlane.f32.xlu0 %v4466_v35  ;;  %4470 = vadd.xlane.f32.xlu1 %v4469_v36  ;;  %v4387_v51 = vpop.xlane.xlu1 %4386  ;;  %v6997_v35 = vld [vmem:[#allocation29 + $0x20] sm:$0xff]   ;;  %v6998_v36 = vld [vmem:[#allocation29 + $0x28] sm:$0xff]  }
0x1291   : > { %v4418_v16 = vmul.f32 0.03125, %v4384_v34  ;;  %v4419_v52 = vmul.f32 0.03125, %v4387_v51  ;;  %v4448_v24 = vmul.f32 %v10107_v19, %v10107_v19  ;;  %v4449_v55 = vmul.f32 %v10110_v23, %v10110_v23  ;;  %6613 = vmatprep.subr.bf16.mxu0 %v6997_v35  ;;  %v6999_v34 = vld [vmem:[#allocation29 + $0x30] sm:$0xff]  }
0x1292   : > { %6614 = vmatpush3.bf16.msra.mxu0 %v6997_v35 }
0x1293   : > { %v10119_v53 = vsub.f32 %v10023_v31, %v4418_v16  ;;  %v10122_v29 = vsub.f32 %v10026_v58, %v4419_v52  ;;  %v4472_v4 = vsel %vm1140_vm1, %v4448_v24, 0.0  ;;  %v4475_v38 = vsel %vm1140_vm1, %v4449_v55, 0.0  ;;  %6615 = vmatprep.subr.bf16.mxu0 %v6998_v36 }
0x1294   : > { %v4390_v3 = vpop.xlane.xlu0 %4389  ;;  %4473 = vadd.xlane.f32.xlu0 %v4472_v4  ;;  %4476 = vadd.xlane.f32.xlu1 %v4475_v38  ;;  %v4393_v22 = vpop.xlane.xlu1 %4392 }
0x1295   : > { %v4420_v28 = vmul.f32 0.03125, %v4390_v3  ;;  %v4421_v11 = vmul.f32 0.03125, %v4393_v22  ;;  %v4450_v44 = vmul.f32 %v10119_v53, %v10119_v53  ;;  %v4451_v31 = vmul.f32 %v10122_v29, %v10122_v29 }
0x1296   : > { %6616 = vmatpush3.bf16.msra.mxu0 %v6998_v36 }
0x1297   : > { %v10131_v61 = vsub.f32 %v10036_v14, %v4420_v28  ;;  %v10134_v58 = vsub.f32 %v10044_v30, %v4421_v11  ;;  %v4478_v5 = vsel %vm1140_vm1, %v4450_v44, 0.0  ;;  %v4481_v13 = vsel %vm1140_vm1, %v4451_v31, 0.0  ;;  %6617 = vmatprep.subr.bf16.mxu0 %v6999_v34 }
0x1298   : > { %v4396_v33 = vpop.xlane.xlu0 %4395  ;;  %4479 = vadd.xlane.f32.xlu0 %v4478_v5  ;;  %4482 = vadd.xlane.f32.xlu1 %v4481_v13  ;;  %v4399_v17 = vpop.xlane.xlu1 %4398 }
0x1299   : > { %v4422_v41 = vmul.f32 0.03125, %v4396_v33  ;;  %v4423_v47 = vmul.f32 0.03125, %v4399_v17  ;;  %v4452_v1 = vmul.f32 %v10131_v61, %v10131_v61  ;;  %v4453_v14 = vmul.f32 %v10134_v58, %v10134_v58 }
0x129a   : > { %6618 = vmatpush3.bf16.msra.mxu0 %v6999_v34 }
0x129b   : > { %v10143_v48 = vsub.f32 %v10047_v40, %v4422_v41  ;;  %v10146_v30 = vsub.f32 %v10050_v18, %v4423_v47  ;;  %v4484_v6 = vsel %vm1140_vm1, %v4452_v1, 0.0  ;;  %v4487_v0 = vsel %vm1140_vm1, %v4453_v14, 0.0 }
0x129c   : > { %v4402_v54 = vpop.xlane.xlu0 %4401  ;;  %4485 = vadd.xlane.f32.xlu0 %v4484_v6  ;;  %4488 = vadd.xlane.f32.xlu1 %v4487_v0  ;;  %v4405_v2 = vpop.xlane.xlu1 %4404  ;;  %v10180_v6 = vld [vmem:[#allocation18 + $0x6] ss:$0 sm:$0xff] }
0x129d   : > { %v4424_v20 = vmul.f32 0.03125, %v4402_v54  ;;  %v4425_v50 = vmul.f32 0.03125, %v4405_v2  ;;  %v4454_v59 = vmul.f32 %v10143_v48, %v10143_v48  ;;  %v4455_v40 = vmul.f32 %v10146_v30, %v10146_v30 }
0x129f   : > { %v10155_v63 = vsub.f32 %v10063_v21, %v4424_v20  ;;  %v10158_v18 = vsub.f32 %v10068_v42, %v4425_v50  ;;  %v4490_v25 = vsel %vm1140_vm1, %v4454_v59, 0.0  ;;  %v4493_v9 = vsel %vm1140_vm1, %v4455_v40, 0.0 }
0x12a0   : > { %v4408_v49 = vpop.xlane.xlu0 %4407  ;;  %4491 = vadd.xlane.f32.xlu0 %v4490_v25  ;;  %4494 = vadd.xlane.f32.xlu1 %v4493_v9  ;;  %v4411_v12 = vpop.xlane.xlu1 %4410 }
0x12a1   : > { %v4426_v15 = vmul.f32 0.03125, %v4408_v49  ;;  %v4427_v39 = vmul.f32 0.03125, %v4411_v12  ;;  %v4456_v32 = vmul.f32 %v10155_v63, %v10155_v63  ;;  %v4457_v21 = vmul.f32 %v10158_v18, %v10158_v18  ;;  %v10185_v12 = vld [vmem:[#allocation18 + $0x7] ss:$0 sm:$0xff] }
0x12a3   : > { %v10167_v57 = vsub.f32 %v10071_v27, %v4426_v15  ;;  %v10170_v42 = vsub.f32 %v10074_v62, %v4427_v39  ;;  %v4496_v7 = vsel %vm1140_vm1, %v4456_v32, 0.0  ;;  %v4499_v43 = vsel %vm1140_vm1, %v4457_v21, 0.0  ;;  %v6996_v62 = vld [vmem:[#allocation26 + $0x18] sm:$0xff]  }
0x12a4   : > { %4497 = vadd.xlane.f32.xlu0 %v4496_v7  ;;  %4500 = vadd.xlane.f32.xlu1 %v4499_v43 }
0x12a5   : > { %v4458_v46 = vmul.f32 %v10167_v57, %v10167_v57  ;;  %v4459_v45 = vmul.f32 %v10170_v42, %v10170_v42  ;;  %6595 = vmatprep.subr.bf16.mxu1 %v6996_v62 }
0x12a6   : > { %6596 = vmatpush3.bf16.msra.mxu1 %v6996_v62 }
0x12a7   : > { %v4502_v26 = vsel %vm1140_vm1, %v4458_v46, 0.0  ;;  %v4505_v27 = vsel %vm1140_vm1, %v4459_v45, 0.0 }
0x12a8   : > { %4503 = vadd.xlane.f32.xlu0 %v4502_v26  ;;  %4506 = vadd.xlane.f32.xlu1 %v4505_v27 }
0x1317   : > { %v4462_v51 = vpop.xlane.xlu0 %4461 }
0x1318   : > { %v4508_v16 = vmul.f32 0.03125, %v4462_v51 }
0x1319   : > { %v4465_v52 = vpop.xlane.xlu1 %4464 }
0x131a   : > { %v4524_v24 = vadd.f32 1e-05, %v4508_v16  ;;  %v4509_v55 = vmul.f32 0.03125, %v4465_v52 }
0x131c   : > { %7112 = vrsqrt.f32 %v4524_v24  ;;  %v4525_v4 = vadd.f32 1e-05, %v4509_v55 }
0x131d   : > { %v4468_v38 = vpop.xlane.xlu0 %4467  ;;  %v4471_v3 = vpop.xlane.xlu1 %4470 }
0x131e   : > { %7114 = vrsqrt.f32 %v4525_v4  ;;  %v4510_v22 = vmul.f32 0.03125, %v4468_v38  ;;  %v4511_v28 = vmul.f32 0.03125, %v4471_v3 }
0x1320   : > { %v4526_v11 = vadd.f32 1e-05, %v4510_v22  ;;  %v4527_v44 = vadd.f32 1e-05, %v4511_v28 }
0x1321   : > { %v4474_v31 = vpop.xlane.xlu0 %4473  ;;  %v4477_v5 = vpop.xlane.xlu1 %4476 }
0x1322   : > { %7116 = vrsqrt.f32 %v4526_v11  ;;  %v4512_v13 = vmul.f32 0.03125, %v4474_v31  ;;  %v4513_v33 = vmul.f32 0.03125, %v4477_v5 }
0x1323   : > { %7118 = vrsqrt.f32 %v4527_v44 }
0x1324   : > { %v4528_v17 = vadd.f32 1e-05, %v4512_v13  ;;  %v4529_v41 = vadd.f32 1e-05, %v4513_v33 }
0x1325   : > { %v4480_v47 = vpop.xlane.xlu0 %4479  ;;  %v4483_v1 = vpop.xlane.xlu1 %4482 }
0x1326   : > { %v7113_v14 = vpop.eup %7112  ;;  %7120 = vrsqrt.f32 %v4528_v17  ;;  %v4514_v0 = vmul.f32 0.03125, %v4480_v47  ;;  %v4515_v54 = vmul.f32 0.03125, %v4483_v1 }
0x1327   : > { %v4556_v2 = vmul.f32 %v7113_v14, %v10085_v8  ;;  %7122 = vrsqrt.f32 %v4529_v41 }
0x1328   : > { %v7115_v20 = vpop.eup %7114  ;;  %v4530_v50 = vadd.f32 1e-05, %v4514_v0  ;;  %v4531_v59 = vadd.f32 1e-05, %v4515_v54 }
0x1329   : > { %v4557_v40 = vmul.f32 %v7115_v20, %v10088_v37  ;;  %v4486_v25 = vpop.xlane.xlu0 %4485  ;;  %v4489_v9 = vpop.xlane.xlu1 %4488  ;;  %v4576_v49 = vmul.f32 %v10180_v6, %v4556_v2 }
0x132a   : > { %7124 = vrsqrt.f32 %v4530_v50  ;;  %v4516_v15 = vmul.f32 0.03125, %v4486_v25  ;;  %v4517_v39 = vmul.f32 0.03125, %v4489_v9 }
0x132b   : > { %7126 = vrsqrt.f32 %v4531_v59  ;;  %v4577_v32 = vmul.f32 %v10180_v6, %v4557_v40  ;;  %v10190_v26 = vadd.f32 %v10185_v12, %v4576_v49 }
0x132c   : > { %v7117_v21 = vpop.eup %7116  ;;  %v4532_v8 = vadd.f32 1e-05, %v4516_v15  ;;  %v4533_v7 = vadd.f32 1e-05, %v4517_v39 }
0x132d   : > { %v7119_v43 = vpop.eup %7118  ;;  %v4558_v46 = vmul.f32 %v7117_v21, %v10099_v60  ;;  %v4492_v45 = vpop.xlane.xlu0 %4491  ;;  %v10193_v27 = vadd.f32 %v10185_v12, %v4577_v32 }
0x132e   : > { %v4495_v37 = vpop.xlane.xlu1 %4494  ;;  %v4559_v62 = vmul.f32 %v7119_v43, %v10093_v56  ;;  %7128 = vrsqrt.f32 %v4532_v8  ;;  %v4518_v35 = vmul.f32 0.03125, %v4492_v45 }
0x132f   : > { %v4519_v36 = vmul.f32 0.03125, %v4495_v37  ;;  %v4578_v34 = vmul.f32 %v10180_v6, %v4558_v46  ;;  %7130 = vrsqrt.f32 %v4533_v7  ;;  %v4617_v51 = vpack.c.bf16 %v10193_v27, %v10190_v26 }
0x1330   : > { %v7121_v60 = vpop.eup %7120  ;;  %v4579_v16 = vmul.f32 %v10180_v6, %v4559_v62  ;;  %v4534_v52 = vadd.f32 1e-05, %v4518_v35 }
0x1331   : > { %v4535_v24 = vadd.f32 1e-05, %v4519_v36  ;;  %v7123_v55 = vpop.eup %7122  ;;  %v10201_v4 = vadd.f32 %v10185_v12, %v4578_v34  ;;  %v4560_v56 = vmul.f32 %v7121_v60, %v10107_v19  ;;  %v4498_v38 = vpop.xlane.xlu0 %4497  ;;  %6597 = vmatprep.mubr.msk.bf16.mxu1 %vm1140_vm1, %v4617_v51 }
0x1332   : > { %v4501_v3 = vpop.xlane.xlu1 %4500  ;;  %v10206_v22 = vadd.f32 %v10185_v12, %v4579_v16  ;;  %v4561_v28 = vmul.f32 %v7123_v55, %v10110_v23  ;;  %7132 = vrsqrt.f32 %v4534_v52  ;;  %v4520_v11 = vmul.f32 0.03125, %v4498_v38 }
0x1333   : > { %7134 = vrsqrt.f32 %v4535_v24  ;;  %v4521_v44 = vmul.f32 0.03125, %v4501_v3  ;;  %v4580_v31 = vmul.f32 %v10180_v6, %v4560_v56 }
0x1334   : > { %v7125_v5 = vpop.eup %7124  ;;  %v4536_v13 = vadd.f32 1e-05, %v4520_v11  ;;  %v4618_v19 = vpack.c.bf16 %v10206_v22, %v10201_v4  ;;  %v4581_v33 = vmul.f32 %v10180_v6, %v4561_v28 }
0x1335   : > { %v7127_v17 = vpop.eup %7126  ;;  %v4562_v41 = vmul.f32 %v7125_v5, %v10119_v53  ;;  %v4537_v47 = vadd.f32 1e-05, %v4521_v44  ;;  %v4504_v1 = vpop.xlane.xlu0 %4503  ;;  %v10215_v23 = vadd.f32 %v10185_v12, %v4580_v31 }
0x1336   : > { %v4507_v14 = vpop.xlane.xlu1 %4506  ;;  %v4563_v0 = vmul.f32 %v7127_v17, %v10122_v29  ;;  %7136 = vrsqrt.f32 %v4536_v13  ;;  %v4522_v54 = vmul.f32 0.03125, %v4504_v1  ;;  %6598 = vmatmul.mubr.msk.bf16.vlgmr.msra.gmra.mrb[64].mxu1 %vm1140_vm1, %v4618_v19  ;;  %v10220_v20 = vadd.f32 %v10185_v12, %v4581_v33  ;;  %v7000_v13 = vld [vmem:[#allocation29 + $0x38] sm:$0xff]  }
0x1337   : > { %v4523_v2 = vmul.f32 0.03125, %v4507_v14  ;;  %7138 = vrsqrt.f32 %v4537_v47  ;;  %v4582_v50 = vmul.f32 %v10180_v6, %v4562_v41  ;;  %6619 = vmatprep.subr.bf16.mxu0 %v7000_v13  ;;  %v6222_v19 = vld [vmem:[#allocation27 + $0x1] ss:$0 sm:$0xff] }
0x1338   : > { %v7129_v53 = vpop.eup %7128  ;;  %v4538_v59 = vadd.f32 1e-05, %v4522_v54  ;;  %v4583_v25 = vmul.f32 %v10180_v6, %v4563_v0  ;;  %v4619_v29 = vpack.c.bf16 %v10220_v20, %v10215_v23  ;;  %6620 = vmatpush3.bf16.msra.mxu0 %v7000_v13 }
0x1339   : > { %v4539_v40 = vadd.f32 1e-05, %v4523_v2  ;;  %v7131_v9 = vpop.eup %7130  ;;  %v4564_v49 = vmul.f32 %v7129_v53, %v10131_v61  ;;  %v10228_v15 = vadd.f32 %v10185_v12, %v4582_v50 }
0x133a   : > { %v4565_v39 = vmul.f32 %v7131_v9, %v10134_v58  ;;  %7140 = vrsqrt.f32 %v4538_v59  ;;  %v10232_v32 = vadd.f32 %v10185_v12, %v4583_v25  ;;  %6601 = vmatprep.mubr.msk.bf16.mxu1 %vm1140_vm1, %v4619_v29 }
0x133b   : > { %7142 = vrsqrt.f32 %v4539_v40  ;;  %v4584_v21 = vmul.f32 %v10180_v6, %v4564_v49 }
0x133c   : > { %v7133_v8 = vpop.eup %7132  ;;  %v4620_v61 = vpack.c.bf16 %v10232_v32, %v10228_v15  ;;  %v4585_v7 = vmul.f32 %v10180_v6, %v4565_v39 }
0x133d   : > { %v7135_v43 = vpop.eup %7134  ;;  %v4566_v46 = vmul.f32 %v7133_v8, %v10143_v48  ;;  %v10241_v58 = vadd.f32 %v10185_v12, %v4584_v21 }
0x133e   : > { %v4567_v45 = vmul.f32 %v7135_v43, %v10146_v30  ;;  %6602 = vmatmul.mubr.msk.bf16.gmra.mrb[68].mxu1 %vm1140_vm1, %v4620_v61  ;;  %v10246_v37 = vadd.f32 %v10185_v12, %v4585_v7 }
0x133f   : > { %v4586_v62 = vmul.f32 %v10180_v6, %v4566_v46 }
0x1340   : > { %v7137_v35 = vpop.eup %7136  ;;  %v4621_v36 = vpack.c.bf16 %v10246_v37, %v10241_v58  ;;  %v4587_v34 = vmul.f32 %v10180_v6, %v4567_v45 }
0x1341   : > { %v7139_v51 = vpop.eup %7138  ;;  %v4568_v48 = vmul.f32 %v7137_v35, %v10155_v63  ;;  %v10254_v60 = vadd.f32 %v10185_v12, %v4586_v62 }
0x1342   : > { %v4569_v30 = vmul.f32 %v7139_v51, %v10158_v18  ;;  %6605 = vmatprep.mubr.msk.bf16.mxu1 %vm1140_vm1, %v4621_v36  ;;  %v10259_v16 = vadd.f32 %v10185_v12, %v4587_v34 }
0x1343   : > { %v4588_v52 = vmul.f32 %v10180_v6, %v4568_v48 }
0x1344   : > { %v7141_v24 = vpop.eup %7140  ;;  %v4622_v55 = vpack.c.bf16 %v10259_v16, %v10254_v60  ;;  %v4589_v56 = vmul.f32 %v10180_v6, %v4569_v30 }
0x1345   : > { %v7143_v38 = vpop.eup %7142  ;;  %v4570_v63 = vmul.f32 %v7141_v24, %v10167_v57  ;;  %v10267_v3 = vadd.f32 %v10185_v12, %v4588_v52 }
0x1346   : > { %v4571_v18 = vmul.f32 %v7143_v38, %v10170_v42  ;;  %6606 = vmatmul.mubr.msk.bf16.gmra.mrb[72].mxu1 %vm1140_vm1, %v4622_v55  ;;  %v10272_v28 = vadd.f32 %v10185_v12, %v4589_v56 }
0x1347   : > { %v4590_v11 = vmul.f32 %v10180_v6, %v4570_v63 }
0x1348   : > { %v4623_v44 = vpack.c.bf16 %v10272_v28, %v10267_v3  ;;  %v4591_v31 = vmul.f32 %v10180_v6, %v4571_v18 }
0x1349   : > { %v10279_v5 = vadd.f32 %v10185_v12, %v4590_v11 }
0x134a   : > { %6609 = vmatprep.mubr.msk.bf16.mxu1 %vm1140_vm1, %v4623_v44  ;;  %v10283_v57 = vadd.f32 %v10185_v12, %v4591_v31 }
0x134c   : > { %v4624_v42 = vpack.c.bf16 %v10283_v57, %v10279_v5 }
0x134e   : > { %6610 = vmatmul.mubr.msk.bf16.gmra.mrb[76].mxu1 %vm1140_vm1, %v4624_v42 }
0x1409   : > { %v6599_v33 = vpop.f32.mrb[64].mxu1 }
0x140a   : > { %v4712_v17 = vadd.f32 %v6599_v33, %v6222_v19  ;;  %v4703_v6 = vpop.f32.mrb[65].mxu1 }
0x140b   : > { %v4704_v41 = vadd.f32 %v6222_v19, %v4703_v6  ;;  %v6600_v47 = vpop.f32.mrb[66].mxu1 }
0x140c   : > { %v4715_v1 = vadd.f32 %v6600_v47, %v6222_v19  ;;  %v4706_v14 = vpop.f32.mrb[67].mxu1  ;;  %v4768_v54 = vmax.f32 %v4712_v17, 0.0 }
0x140d   : > { %v4707_v0 = vadd.f32 %v6222_v19, %v4706_v14  ;;  %v4766_v2 = vmax.f32 %v4704_v41, 0.0 }
0x140e   : > { %v4769_v12 = vmax.f32 %v4715_v1, 0.0 }
0x140f   : > { %v4767_v50 = vmax.f32 %v4707_v0, 0.0 }
0x1410   : > { %v4792_v53 = vpack.c.bf16 %v4769_v12, %v4768_v54 }
0x1411   : > { %v4791_v59 = vpack.c.bf16 %v4767_v50, %v4766_v2  ;;  %v6603_v40 = vpop.f32.mrb[68].mxu1  ;;  %v10296_v2 = vld [vmem:[#allocation30 + $0x1] ss:$0 sm:$0xff] }
0x1412   : > { %v4728_v25 = vadd.f32 %v6603_v40, %v6222_v19  ;;  %v4719_v9 = vpop.f32.mrb[69].mxu1 }
0x1413   : > { %v4720_v49 = vadd.f32 %v6222_v19, %v4719_v9  ;;  %v6604_v29 = vpop.f32.mrb[70].mxu1  ;;  %6621 = vmatprep.mubr.msk.bf16.mxu0 %vm3009_vm11, %v4791_v59 }
0x1414   : > { %v4731_v39 = vadd.f32 %v6604_v29, %v6222_v19  ;;  %v4722_v21 = vpop.f32.mrb[71].mxu1  ;;  %6622 = vmatmul.mubr.msk.bf16.vlgmr.msra.gmra.mrb[64].mxu0 %vm3009_vm11, %v4792_v53  ;;  %v4772_v61 = vmax.f32 %v4728_v25, 0.0 }
0x1415   : > { %v4723_v8 = vadd.f32 %v6222_v19, %v4722_v21  ;;  %v4770_v43 = vmax.f32 %v4720_v49, 0.0 }
0x1416   : > { %v4773_v7 = vmax.f32 %v4731_v39, 0.0 }
0x1417   : > { %v4771_v46 = vmax.f32 %v4723_v8, 0.0 }
0x1418   : > { %v4794_v45 = vpack.c.bf16 %v4773_v7, %v4772_v61 }
0x1419   : > { %v4793_v62 = vpack.c.bf16 %v4771_v46, %v4770_v43  ;;  %v6607_v35 = vpop.f32.mrb[72].mxu1 }
0x141a   : > { %v4744_v36 = vadd.f32 %v6607_v35, %v6222_v19  ;;  %v4735_v34 = vpop.f32.mrb[73].mxu1 }
0x141b   : > { %v4736_v51 = vadd.f32 %v6222_v19, %v4735_v34  ;;  %v6608_v48 = vpop.f32.mrb[74].mxu1  ;;  %6625 = vmatprep.mubr.msk.bf16.mxu0 %vm3009_vm11, %v4793_v62 }
0x141c   : > { %v4747_v30 = vadd.f32 %v6608_v48, %v6222_v19  ;;  %v4738_v52 = vpop.f32.mrb[75].mxu1  ;;  %6626 = vmatmul.mubr.msk.bf16.gmra.mrb[68].mxu0 %vm3009_vm11, %v4794_v45  ;;  %v4776_v55 = vmax.f32 %v4744_v36, 0.0 }
0x141d   : > { %v4739_v24 = vadd.f32 %v6222_v19, %v4738_v52  ;;  %v4774_v38 = vmax.f32 %v4736_v51, 0.0 }
0x141e   : > { %v4777_v56 = vmax.f32 %v4747_v30, 0.0 }
0x141f   : > { %v4775_v63 = vmax.f32 %v4739_v24, 0.0 }
0x1420   : > { %v4796_v18 = vpack.c.bf16 %v4777_v56, %v4776_v55 }
0x1421   : > { %v4795_v11 = vpack.c.bf16 %v4775_v63, %v4774_v38  ;;  %v6611_v44 = vpop.f32.mrb[76].mxu1 }
0x1422   : > { %v4760_v31 = vadd.f32 %v6611_v44, %v6222_v19  ;;  %v4751_v42 = vpop.f32.mrb[77].mxu1 }
0x1423   : > { %v4752_v13 = vadd.f32 %v6222_v19, %v4751_v42  ;;  %v6612_v33 = vpop.f32.mrb[78].mxu1  ;;  %6629 = vmatprep.mubr.msk.bf16.mxu0 %vm3009_vm11, %v4795_v11 }
0x1424   : > { %v4763_v17 = vadd.f32 %v6612_v33, %v6222_v19  ;;  %v4754_v6 = vpop.f32.mrb[79].mxu1  ;;  %6630 = vmatmul.mubr.msk.bf16.gmra.mrb[72].mxu0 %vm3009_vm11, %v4796_v18  ;;  %v4780_v47 = vmax.f32 %v4760_v31, 0.0 }
0x1425   : > { %v4755_v41 = vadd.f32 %v6222_v19, %v4754_v6  ;;  %v4778_v14 = vmax.f32 %v4752_v13, 0.0 }
0x1426   : > { %v4781_v1 = vmax.f32 %v4763_v17, 0.0 }
0x1427   : > { %v4779_v0 = vmax.f32 %v4755_v41, 0.0 }
0x1428   : > { %v4798_v54 = vpack.c.bf16 %v4781_v1, %v4780_v47 }
0x1429   : > { %v4797_v12 = vpack.c.bf16 %v4779_v0, %v4778_v14 }
0x142b   : > { %6633 = vmatprep.mubr.msk.bf16.mxu0 %vm3009_vm11, %v4797_v12 }
0x142c   : > { %6634 = vmatmul.mubr.msk.bf16.gmra.mrb[76].mxu0 %vm3009_vm11, %v4798_v54 }
0x14e7   : > { %v6623_v50 = vpop.f32.mrb[64].mxu0 }
0x14e8   : > { %v4889_v53 = vpop.f32.mrb[65].mxu0  ;;  %v4898_v59 = vadd.f32 %v6623_v50, %v10296_v2 }
0x14e9   : > { %v4890_v40 = vadd.f32 %v10296_v2, %v4889_v53  ;;  %v6624_v25 = vpop.f32.mrb[66].mxu0 }
0x14ea   : > { %v4892_v19 = vpop.f32.mrb[67].mxu0  ;;  %v4901_v49 = vadd.f32 %v6624_v25, %v10296_v2  ;;  %v10306_v39 = vadd.f32 %v4898_v59, %v10201_v4 }
0x14eb   : > { %v10301_v9 = vadd.f32 %v4890_v40, %v10190_v26  ;;  %v4893_v29 = vadd.f32 %v10296_v2, %v4892_v19 }
0x14ec   : > { %v10314_v61 = vadd.f32 %v4901_v49, %v10206_v22 }
0x14ed   : > { %v10309_v21 = vadd.f32 %v4893_v29, %v10193_v27  ;;  %v4971_v8 = vsel %vm1140_vm1, %v10301_v9, 0.0  ;;  %v4977_v27 = vsel %vm1140_vm1, %v10306_v39, 0.0 }
0x14ee   : > { %4972 = vadd.xlane.f32.xlu0 %v4971_v8  ;;  %v4980_v34 = vsel %vm1140_vm1, %v10314_v61, 0.0 }
0x14ef   : > { %v6627_v7 = vpop.f32.mrb[68].mxu0  ;;  %v4974_v26 = vsel %vm1140_vm1, %v10309_v21, 0.0 }
0x14f0   : > { %4975 = vadd.xlane.f32.xlu1 %v4974_v26  ;;  %v4905_v43 = vpop.f32.mrb[69].mxu0  ;;  %v4914_v46 = vadd.f32 %v6627_v7, %v10296_v2 }
0x14f1   : > { %v4906_v4 = vadd.f32 %v10296_v2, %v4905_v43  ;;  %v6628_v45 = vpop.f32.mrb[70].mxu0 }
0x14f2   : > { %4978 = vadd.xlane.f32.xlu0 %v4977_v27  ;;  %v4908_v62 = vpop.f32.mrb[71].mxu0  ;;  %v4917_v22 = vadd.f32 %v6628_v45, %v10296_v2  ;;  %v10330_v51 = vadd.f32 %v4914_v46, %v10228_v15 }
0x14f3   : > { %v10323_v35 = vadd.f32 %v4906_v4, %v10215_v23  ;;  %v4909_v36 = vadd.f32 %v10296_v2, %v4908_v62 }
0x14f4   : > { %4981 = vadd.xlane.f32.xlu1 %v4980_v34  ;;  %v10338_v23 = vadd.f32 %v4917_v22, %v10232_v32 }
0x14f5   : > { %v10333_v48 = vadd.f32 %v4909_v36, %v10220_v20  ;;  %v4983_v30 = vsel %vm1140_vm1, %v10323_v35, 0.0  ;;  %v4989_v20 = vsel %vm1140_vm1, %v10330_v51, 0.0 }
0x14f6   : > { %4984 = vadd.xlane.f32.xlu0 %v4983_v30  ;;  %v4992_v44 = vsel %vm1140_vm1, %v10338_v23, 0.0 }
0x14f7   : > { %v6631_v52 = vpop.f32.mrb[72].mxu0  ;;  %v4986_v24 = vsel %vm1140_vm1, %v10333_v48, 0.0 }
0x14f8   : > { %4987 = vadd.xlane.f32.xlu1 %v4986_v24  ;;  %v4921_v55 = vpop.f32.mrb[73].mxu0  ;;  %v4930_v56 = vadd.f32 %v6631_v52, %v10296_v2 }
0x14f9   : > { %v4922_v15 = vadd.f32 %v10296_v2, %v4921_v55  ;;  %v6632_v38 = vpop.f32.mrb[74].mxu0 }
0x14fa   : > { %4990 = vadd.xlane.f32.xlu0 %v4989_v20  ;;  %v4924_v63 = vpop.f32.mrb[75].mxu0  ;;  %v4933_v32 = vadd.f32 %v6632_v38, %v10296_v2  ;;  %v10354_v31 = vadd.f32 %v4930_v56, %v10254_v60 }
0x14fb   : > { %v10347_v18 = vadd.f32 %v4922_v15, %v10241_v58  ;;  %v4925_v11 = vadd.f32 %v10296_v2, %v4924_v63 }
0x14fc   : > { %4993 = vadd.xlane.f32.xlu1 %v4992_v44  ;;  %v10362_v58 = vadd.f32 %v4933_v32, %v10259_v16 }
0x14fd   : > { %v10357_v42 = vadd.f32 %v4925_v11, %v10246_v37  ;;  %v4995_v13 = vsel %vm1140_vm1, %v10347_v18, 0.0  ;;  %v5001_v37 = vsel %vm1140_vm1, %v10354_v31, 0.0 }
0x14fe   : > { %4996 = vadd.xlane.f32.xlu0 %v4995_v13  ;;  %v5004_v54 = vsel %vm1140_vm1, %v10362_v58, 0.0 }
0x14ff   : > { %v6635_v33 = vpop.f32.mrb[76].mxu0  ;;  %v4998_v17 = vsel %vm1140_vm1, %v10357_v42, 0.0 }
0x1500   : > { %4999 = vadd.xlane.f32.xlu1 %v4998_v17  ;;  %v4937_v6 = vpop.f32.mrb[77].mxu0  ;;  %v4946_v41 = vadd.f32 %v6635_v33, %v10296_v2 }
0x1501   : > { %v4938_v60 = vadd.f32 %v10296_v2, %v4937_v6  ;;  %v6636_v47 = vpop.f32.mrb[78].mxu0 }
0x1502   : > { %5002 = vadd.xlane.f32.xlu0 %v5001_v37  ;;  %v4940_v1 = vpop.f32.mrb[79].mxu0  ;;  %v4949_v16 = vadd.f32 %v6636_v47, %v10296_v2  ;;  %v10378_v12 = vadd.f32 %v4946_v41, %v10279_v5 }
0x1503   : > { %v10371_v14 = vadd.f32 %v4938_v60, %v10267_v3  ;;  %v4941_v0 = vadd.f32 %v10296_v2, %v4940_v1 }
0x1504   : > { %5005 = vadd.xlane.f32.xlu1 %v5004_v54  ;;  %v10386_v3 = vadd.f32 %v4949_v16, %v10283_v57  ;;  %v5013_v59 = vsel %vm1140_vm1, %v10378_v12, 0.0 }
0x1505   : > { %v10381_v50 = vadd.f32 %v4941_v0, %v10272_v28  ;;  %v5007_v53 = vsel %vm1140_vm1, %v10371_v14, 0.0  ;;  %v7001_v28 = vld [vmem:[#allocation33] sm:$0xff]  }
0x1506   : > { %5008 = vadd.xlane.f32.xlu0 %v5007_v53  ;;  %v5016_v5 = vsel %vm1140_vm1, %v10386_v3, 0.0  ;;  %6637 = vmatprep.subr.bf16.mxu1 %v7001_v28 }
0x1507   : > { %v5010_v2 = vsel %vm1140_vm1, %v10381_v50, 0.0  ;;  %6638 = vmatpush3.bf16.msra.mxu1 %v7001_v28 }
0x1508   : > { %5011 = vadd.xlane.f32.xlu1 %v5010_v2 }
0x150a   : > { %5014 = vadd.xlane.f32.xlu0 %v5013_v59 }
0x150c   : > { %5017 = vadd.xlane.f32.xlu1 %v5016_v5 }
0x157b   : > { %v4973_v40 = vpop.xlane.xlu0 %4972 }
0x157c   : > { %v5019_v25 = vmul.f32 0.03125, %v4973_v40 }
0x157d   : > { %v4976_v19 = vpop.xlane.xlu1 %4975 }
0x157e   : > { %v10395_v57 = vsub.f32 %v10301_v9, %v5019_v25  ;;  %v5020_v49 = vmul.f32 0.03125, %v4976_v19 }
0x157f   : > { %v4979_v29 = vpop.xlane.xlu0 %4978 }
0x1580   : > { %v10398_v8 = vsub.f32 %v10309_v21, %v5020_v49  ;;  %v5021_v7 = vmul.f32 0.03125, %v4979_v29  ;;  %v5051_v26 = vmul.f32 %v10395_v57, %v10395_v57 }
0x1581   : > { %v4982_v43 = vpop.xlane.xlu1 %4981 }
0x1582   : > { %v10403_v46 = vsub.f32 %v10306_v39, %v5021_v7  ;;  %v5022_v4 = vmul.f32 0.03125, %v4982_v43  ;;  %v5067_v45 = vsel %vm1140_vm1, %v5051_v26, 0.0  ;;  %v5052_v9 = vmul.f32 %v10398_v8, %v10398_v8 }
0x1583   : > { %v4985_v27 = vpop.xlane.xlu0 %4984  ;;  %5068 = vadd.xlane.f32.xlu0 %v5067_v45 }
0x1584   : > { %v10409_v62 = vsub.f32 %v10314_v61, %v5022_v4  ;;  %v5023_v21 = vmul.f32 0.03125, %v4985_v27  ;;  %v5070_v22 = vsel %vm1140_vm1, %v5052_v9, 0.0  ;;  %v5053_v36 = vmul.f32 %v10403_v46, %v10403_v46 }
0x1585   : > { %5071 = vadd.xlane.f32.xlu1 %v5070_v22  ;;  %v4988_v39 = vpop.xlane.xlu1 %4987 }
0x1586   : > { %v10415_v34 = vsub.f32 %v10323_v35, %v5023_v21  ;;  %v5024_v30 = vmul.f32 0.03125, %v4988_v39  ;;  %v5073_v52 = vsel %vm1140_vm1, %v5053_v36, 0.0  ;;  %v5054_v24 = vmul.f32 %v10409_v62, %v10409_v62 }
0x1587   : > { %v4991_v55 = vpop.xlane.xlu0 %4990  ;;  %5074 = vadd.xlane.f32.xlu0 %v5073_v52 }
0x1588   : > { %v10421_v61 = vsub.f32 %v10333_v48, %v5024_v30  ;;  %v5025_v56 = vmul.f32 0.03125, %v4991_v55  ;;  %v5076_v15 = vsel %vm1140_vm1, %v5054_v24, 0.0  ;;  %v5055_v38 = vmul.f32 %v10415_v34, %v10415_v34  ;;  %v7002_v24 = vld [vmem:[#allocation33 + $0x8] sm:$0xff]  }
0x1589   : > { %5077 = vadd.xlane.f32.xlu1 %v5076_v15  ;;  %v4994_v35 = vpop.xlane.xlu1 %4993  ;;  %6639 = vmatprep.subr.bf16.mxu1 %v7002_v24 }
0x158a   : > { %v10427_v20 = vsub.f32 %v10330_v51, %v5025_v56  ;;  %v5026_v63 = vmul.f32 0.03125, %v4994_v35  ;;  %v5079_v32 = vsel %vm1140_vm1, %v5055_v38, 0.0  ;;  %v5056_v11 = vmul.f32 %v10421_v61, %v10421_v61  ;;  %6640 = vmatpush3.bf16.msra.mxu1 %v7002_v24 }
0x158b   : > { %v4997_v44 = vpop.xlane.xlu0 %4996  ;;  %5080 = vadd.xlane.f32.xlu0 %v5079_v32 }
0x158c   : > { %v10433_v48 = vsub.f32 %v10338_v23, %v5026_v63  ;;  %v5027_v13 = vmul.f32 0.03125, %v4997_v44  ;;  %v5082_v33 = vsel %vm1140_vm1, %v5056_v11, 0.0  ;;  %v5057_v17 = vmul.f32 %v10427_v20, %v10427_v20 }
0x158d   : > { %5083 = vadd.xlane.f32.xlu1 %v5082_v33  ;;  %v5000_v51 = vpop.xlane.xlu1 %4999 }
0x158e   : > { %v10439_v6 = vsub.f32 %v10347_v18, %v5027_v13  ;;  %v5028_v41 = vmul.f32 0.03125, %v5000_v51  ;;  %v5085_v60 = vsel %vm1140_vm1, %v5057_v17, 0.0  ;;  %v5058_v47 = vmul.f32 %v10433_v48, %v10433_v48 }
0x158f   : > { %v5003_v37 = vpop.xlane.xlu0 %5002  ;;  %5086 = vadd.xlane.f32.xlu0 %v5085_v60 }
0x1590   : > { %v10445_v23 = vsub.f32 %v10357_v42, %v5028_v41  ;;  %v5029_v1 = vmul.f32 0.03125, %v5003_v37  ;;  %v5088_v16 = vsel %vm1140_vm1, %v5058_v47, 0.0  ;;  %v5059_v0 = vmul.f32 %v10439_v6, %v10439_v6 }
0x1591   : > { %5089 = vadd.xlane.f32.xlu1 %v5088_v16  ;;  %v5006_v18 = vpop.xlane.xlu1 %5005 }
0x1592   : > { %v10451_v54 = vsub.f32 %v10354_v31, %v5029_v1  ;;  %v5030_v53 = vmul.f32 0.03125, %v5006_v18  ;;  %v5091_v2 = vsel %vm1140_vm1, %v5059_v0, 0.0  ;;  %v5060_v59 = vmul.f32 %v10445_v23, %v10445_v23 }
0x1593   : > { %5092 = vadd.xlane.f32.xlu0 %v5091_v2  ;;  %v5009_v42 = vpop.xlane.xlu0 %5008  ;;  %v10490_v2 = vld [vmem:[#allocation32 + $0x6] ss:$0 sm:$0xff] }
0x1594   : > { %v10457_v5 = vsub.f32 %v10362_v58, %v5030_v53  ;;  %v5031_v28 = vmul.f32 0.03125, %v5009_v42  ;;  %v5094_v40 = vsel %vm1140_vm1, %v5060_v59, 0.0  ;;  %v5061_v25 = vmul.f32 %v10451_v54, %v10451_v54 }
0x1595   : > { %5095 = vadd.xlane.f32.xlu1 %v5094_v40  ;;  %v5012_v31 = vpop.xlane.xlu1 %5011 }
0x1596   : > { %v10463_v19 = vsub.f32 %v10371_v14, %v5031_v28  ;;  %v5032_v49 = vmul.f32 0.03125, %v5012_v31  ;;  %v5097_v29 = vsel %vm1140_vm1, %v5061_v25, 0.0  ;;  %v5062_v7 = vmul.f32 %v10457_v5, %v10457_v5 }
0x1597   : > { %5098 = vadd.xlane.f32.xlu0 %v5097_v29  ;;  %v5015_v58 = vpop.xlane.xlu0 %5014 }
0x1598   : > { %v10469_v26 = vsub.f32 %v10381_v50, %v5032_v49  ;;  %v5033_v43 = vmul.f32 0.03125, %v5015_v58  ;;  %v5100_v4 = vsel %vm1140_vm1, %v5062_v7, 0.0  ;;  %v5063_v45 = vmul.f32 %v10463_v19, %v10463_v19 }
0x1599   : > { %5101 = vadd.xlane.f32.xlu1 %v5100_v4  ;;  %v5018_v14 = vpop.xlane.xlu1 %5017  ;;  %v10495_v4 = vld [vmem:[#allocation32 + $0x7] ss:$0 sm:$0xff] }
0x159a   : > { %v10475_v9 = vsub.f32 %v10378_v12, %v5033_v43  ;;  %v5034_v27 = vmul.f32 0.03125, %v5018_v14  ;;  %v5103_v21 = vsel %vm1140_vm1, %v5063_v45, 0.0  ;;  %v5064_v22 = vmul.f32 %v10469_v26, %v10469_v26 }
0x159b   : > { %5104 = vadd.xlane.f32.xlu0 %v5103_v21 }
0x159c   : > { %v10481_v50 = vsub.f32 %v10386_v3, %v5034_v27  ;;  %v5106_v36 = vsel %vm1140_vm1, %v5064_v22, 0.0  ;;  %v5065_v39 = vmul.f32 %v10475_v9, %v10475_v9  ;;  %v7003_v3 = vld [vmem:[#allocation36] sm:$0xff]  }
0x159d   : > { %5107 = vadd.xlane.f32.xlu1 %v5106_v36  ;;  %6657 = vmatprep.subr.bf16.mxu0 %v7003_v3 }
0x159e   : > { %v5109_v30 = vsel %vm1140_vm1, %v5065_v39, 0.0  ;;  %v5066_v12 = vmul.f32 %v10481_v50, %v10481_v50  ;;  %6658 = vmatpush3.bf16.msra.mxu0 %v7003_v3 }
0x159f   : > { %5110 = vadd.xlane.f32.xlu0 %v5109_v30 }
0x15a0   : > { %v5112_v52 = vsel %vm1140_vm1, %v5066_v12, 0.0 }
0x15a1   : > { %5113 = vadd.xlane.f32.xlu1 %v5112_v52 }
0x1610   : > { %v5069_v55 = vpop.xlane.xlu0 %5068 }
0x1611   : > { %v5115_v56 = vmul.f32 0.03125, %v5069_v55 }
0x1612   : > { %v5072_v15 = vpop.xlane.xlu1 %5071 }
0x1613   : > { %v5131_v38 = vadd.f32 1e-05, %v5115_v56  ;;  %v5116_v35 = vmul.f32 0.03125, %v5072_v15 }
0x1614   : > { %v5075_v63 = vpop.xlane.xlu0 %5074 }
0x1615   : > { %7144 = vrsqrt.f32 %v5131_v38  ;;  %v5132_v32 = vadd.f32 1e-05, %v5116_v35  ;;  %v5117_v11 = vmul.f32 0.03125, %v5075_v63 }
0x1616   : > { %v5078_v44 = vpop.xlane.xlu1 %5077 }
0x1617   : > { %7146 = vrsqrt.f32 %v5132_v32  ;;  %v5133_v13 = vadd.f32 1e-05, %v5117_v11  ;;  %v5118_v33 = vmul.f32 0.03125, %v5078_v44 }
0x1618   : > { %v5081_v17 = vpop.xlane.xlu0 %5080 }
0x1619   : > { %7148 = vrsqrt.f32 %v5133_v13  ;;  %v5134_v51 = vadd.f32 1e-05, %v5118_v33  ;;  %v5119_v41 = vmul.f32 0.03125, %v5081_v17 }
0x161a   : > { %v5084_v60 = vpop.xlane.xlu1 %5083 }
0x161b   : > { %7150 = vrsqrt.f32 %v5134_v51  ;;  %v5135_v47 = vadd.f32 1e-05, %v5119_v41  ;;  %v5120_v37 = vmul.f32 0.03125, %v5084_v60 }
0x161c   : > { %v5087_v1 = vpop.xlane.xlu0 %5086 }
0x161d   : > { %7152 = vrsqrt.f32 %v5135_v47  ;;  %v5136_v16 = vadd.f32 1e-05, %v5120_v37  ;;  %v5121_v0 = vmul.f32 0.03125, %v5087_v1 }
0x161e   : > { %v5090_v18 = vpop.xlane.xlu1 %5089 }
0x161f   : > { %v7145_v53 = vpop.eup %7144  ;;  %7154 = vrsqrt.f32 %v5136_v16  ;;  %v5137_v59 = vadd.f32 1e-05, %v5121_v0  ;;  %v5122_v42 = vmul.f32 0.03125, %v5090_v18 }
0x1620   : > { %v5163_v28 = vmul.f32 %v7145_v53, %v10395_v57  ;;  %v5093_v40 = vpop.xlane.xlu0 %5092 }
0x1621   : > { %v7147_v25 = vpop.eup %7146  ;;  %7156 = vrsqrt.f32 %v5137_v59  ;;  %v5138_v31 = vadd.f32 1e-05, %v5122_v42  ;;  %v5123_v49 = vmul.f32 0.03125, %v5093_v40 }
0x1622   : > { %v5164_v29 = vmul.f32 %v7147_v25, %v10398_v8  ;;  %v5096_v7 = vpop.xlane.xlu1 %5095  ;;  %v5183_v58 = vmul.f32 %v10490_v2, %v5163_v28 }
0x1623   : > { %v7149_v43 = vpop.eup %7148  ;;  %7158 = vrsqrt.f32 %v5138_v31  ;;  %v5139_v45 = vadd.f32 1e-05, %v5123_v49  ;;  %v5124_v14 = vmul.f32 0.03125, %v5096_v7 }
0x1624   : > { %v5165_v27 = vmul.f32 %v7149_v43, %v10403_v46  ;;  %v5099_v21 = vpop.xlane.xlu0 %5098  ;;  %v5184_v57 = vmul.f32 %v10490_v2, %v5164_v29  ;;  %v5203_v52 = vadd.f32 %v10495_v4, %v5183_v58 }
0x1625   : > { %v7151_v22 = vpop.eup %7150  ;;  %7160 = vrsqrt.f32 %v5139_v45  ;;  %v5140_v36 = vadd.f32 1e-05, %v5124_v14  ;;  %v5125_v39 = vmul.f32 0.03125, %v5099_v21 }
0x1626   : > { %v5185_v8 = vmul.f32 %v10490_v2, %v5165_v27  ;;  %v5166_v30 = vmul.f32 %v7151_v22, %v10409_v62  ;;  %v5102_v12 = vpop.xlane.xlu1 %5101  ;;  %v5204_v24 = vadd.f32 %v10495_v4, %v5184_v57 }
0x1627   : > { %v7153_v3 = vpop.eup %7152  ;;  %7162 = vrsqrt.f32 %v5140_v36  ;;  %v5141_v55 = vadd.f32 1e-05, %v5125_v39  ;;  %v5126_v46 = vmul.f32 0.03125, %v5102_v12 }
0x1628   : > { %v5186_v56 = vmul.f32 %v10490_v2, %v5166_v30  ;;  %v5167_v15 = vmul.f32 %v7153_v3, %v10415_v34  ;;  %v5105_v38 = vpop.xlane.xlu0 %5104  ;;  %v5223_v35 = vpack.c.bf16 %v5204_v24, %v5203_v52  ;;  %v5205_v62 = vadd.f32 %v10495_v4, %v5185_v8 }
0x1629   : > { %v7155_v63 = vpop.eup %7154  ;;  %7164 = vrsqrt.f32 %v5141_v55  ;;  %v5142_v32 = vadd.f32 1e-05, %v5126_v46  ;;  %v5127_v11 = vmul.f32 0.03125, %v5105_v38 }
0x162a   : > { %v5206_v44 = vadd.f32 %v10495_v4, %v5186_v56  ;;  %v5168_v13 = vmul.f32 %v7155_v63, %v10421_v61  ;;  %6641 = vmatprep.mubr.msk.bf16.mxu1 %vm1140_vm1, %v5223_v35  ;;  %v5108_v33 = vpop.xlane.xlu1 %5107  ;;  %v5187_v17 = vmul.f32 %v10490_v2, %v5167_v15 }
0x162b   : > { %v7157_v51 = vpop.eup %7156  ;;  %7166 = vrsqrt.f32 %v5142_v32  ;;  %v5143_v34 = vadd.f32 1e-05, %v5127_v11  ;;  %v5128_v41 = vmul.f32 0.03125, %v5108_v33 }
0x162c   : > { %v5169_v60 = vmul.f32 %v7157_v51, %v10427_v20  ;;  %v5111_v47 = vpop.xlane.xlu0 %5110  ;;  %v5224_v37 = vpack.c.bf16 %v5206_v44, %v5205_v62  ;;  %v5188_v1 = vmul.f32 %v10490_v2, %v5168_v13  ;;  %v5207_v59 = vadd.f32 %v10495_v4, %v5187_v17 }
0x162d   : > { %v7159_v16 = vpop.eup %7158  ;;  %7168 = vrsqrt.f32 %v5143_v34  ;;  %v5144_v0 = vadd.f32 1e-05, %v5128_v41  ;;  %v5129_v18 = vmul.f32 0.03125, %v5111_v47 }
0x162e   : > { %v5170_v61 = vmul.f32 %v7159_v16, %v10433_v48  ;;  %6642 = vmatmul.mubr.msk.bf16.vlgmr.msra.gmra.mrb[80].mxu1 %vm1140_vm1, %v5224_v37  ;;  %v5114_v53 = vpop.xlane.xlu1 %5113  ;;  %v5208_v42 = vadd.f32 %v10495_v4, %v5188_v1  ;;  %v5189_v28 = vmul.f32 %v10490_v2, %v5169_v60 }
0x162f   : > { %v7161_v20 = vpop.eup %7160  ;;  %7170 = vrsqrt.f32 %v5144_v0  ;;  %v5145_v40 = vadd.f32 1e-05, %v5129_v18  ;;  %v5130_v25 = vmul.f32 0.03125, %v5114_v53 }
0x1630   : > { %v5171_v31 = vmul.f32 %v7161_v20, %v10439_v6  ;;  %v5225_v49 = vpack.c.bf16 %v5208_v42, %v5207_v59  ;;  %v5190_v29 = vmul.f32 %v10490_v2, %v5170_v61  ;;  %v5209_v43 = vadd.f32 %v10495_v4, %v5189_v28 }
0x1631   : > { %v7163_v7 = vpop.eup %7162  ;;  %7172 = vrsqrt.f32 %v5145_v40  ;;  %v5146_v48 = vadd.f32 1e-05, %v5130_v25 }
0x1632   : > { %v5172_v58 = vmul.f32 %v7163_v7, %v10445_v23  ;;  %6645 = vmatprep.mubr.msk.bf16.mxu1 %vm1140_vm1, %v5225_v49  ;;  %v5210_v45 = vadd.f32 %v10495_v4, %v5190_v29  ;;  %v5191_v14 = vmul.f32 %v10490_v2, %v5171_v31 }
0x1633   : > { %v7165_v27 = vpop.eup %7164  ;;  %7174 = vrsqrt.f32 %v5146_v48 }
0x1634   : > { %v5173_v6 = vmul.f32 %v7165_v27, %v10451_v54  ;;  %v5226_v21 = vpack.c.bf16 %v5210_v45, %v5209_v43  ;;  %v5192_v57 = vmul.f32 %v10490_v2, %v5172_v58  ;;  %v5211_v23 = vadd.f32 %v10495_v4, %v5191_v14 }
0x1635   : > { %v7167_v22 = vpop.eup %7166 }
0x1636   : > { %v5174_v36 = vmul.f32 %v7167_v22, %v10457_v5  ;;  %6646 = vmatmul.mubr.msk.bf16.gmra.mrb[84].mxu1 %vm1140_vm1, %v5226_v21  ;;  %v5212_v39 = vadd.f32 %v10495_v4, %v5192_v57  ;;  %v5193_v8 = vmul.f32 %v10490_v2, %v5173_v6 }
0x1637   : > { %v7169_v30 = vpop.eup %7168 }
0x1638   : > { %v5175_v12 = vmul.f32 %v7169_v30, %v10463_v19  ;;  %v5227_v52 = vpack.c.bf16 %v5212_v39, %v5211_v23  ;;  %v5194_v54 = vmul.f32 %v10490_v2, %v5174_v36  ;;  %v5213_v5 = vadd.f32 %v10495_v4, %v5193_v8 }
0x1639   : > { %v7171_v24 = vpop.eup %7170 }
0x163a   : > { %v5176_v3 = vmul.f32 %v7171_v24, %v10469_v26  ;;  %6649 = vmatprep.mubr.msk.bf16.mxu1 %vm1140_vm1, %v5227_v52  ;;  %v5214_v55 = vadd.f32 %v10495_v4, %v5194_v54  ;;  %v5195_v46 = vmul.f32 %v10490_v2, %v5175_v12 }
0x163b   : > { %v7173_v56 = vpop.eup %7172 }
0x163c   : > { %v5177_v15 = vmul.f32 %v7173_v56, %v10475_v9  ;;  %v5228_v38 = vpack.c.bf16 %v5214_v55, %v5213_v5  ;;  %v5196_v19 = vmul.f32 %v10490_v2, %v5176_v3  ;;  %v5215_v26 = vadd.f32 %v10495_v4, %v5195_v46 }
0x163d   : > { %v7175_v35 = vpop.eup %7174 }
0x163e   : > { %v5178_v63 = vmul.f32 %v7175_v35, %v10481_v50  ;;  %6650 = vmatmul.mubr.msk.bf16.gmra.mrb[88].mxu1 %vm1140_vm1, %v5228_v38  ;;  %v5216_v32 = vadd.f32 %v10495_v4, %v5196_v19  ;;  %v5197_v11 = vmul.f32 %v10490_v2, %v5177_v15  ;;  %v6248_v50 = vld [vmem:[#allocation35] ss:$0 sm:$0xff] }
0x1640   : > { %v5229_v62 = vpack.c.bf16 %v5216_v32, %v5215_v26  ;;  %v5198_v44 = vmul.f32 %v10490_v2, %v5178_v63  ;;  %v5217_v9 = vadd.f32 %v10495_v4, %v5197_v11  ;;  %v8001_v11 = vmov 0  }
0x1641   : > { %6966 = vset.pattern.permute.xlu0 %v8001_v11 }
0x1642   : > { %6653 = vmatprep.mubr.msk.bf16.mxu1 %vm1140_vm1, %v5229_v62  ;;  %v5218_v13 = vadd.f32 %v10495_v4, %v5198_v44  ;;  %v10558_v62 = vld [vmem:[#allocation38] ss:$0 sm:$0xff] }
0x1644   : > { %v5230_v33 = vpack.c.bf16 %v5218_v13, %v5217_v9 }
0x1646   : > { %6654 = vmatmul.mubr.msk.bf16.gmra.mrb[92].mxu1 %vm1140_vm1, %v5230_v33  ;;  %v10561_v33 = vld [vmem:[#allocation39] ss:$0 sm:$0xff] }
0x1701   : > { %v6643_v17 = vpop.f32.mrb[80].mxu1 }
0x1702   : > { %v5317_v51 = vadd.f32 %v6643_v17, %v6248_v50  ;;  %v5308_v34 = vpop.f32.mrb[81].mxu1 }
0x1703   : > { %v5309_v41 = vadd.f32 %v6248_v50, %v5308_v34  ;;  %v6644_v60 = vpop.f32.mrb[82].mxu1 }
0x1704   : > { %v5320_v47 = vadd.f32 %v6644_v60, %v6248_v50  ;;  %v5311_v37 = vpop.f32.mrb[83].mxu1  ;;  %v5373_v16 = vmax.f32 %v5317_v51, 0.0 }
0x1705   : > { %v5312_v1 = vadd.f32 %v6248_v50, %v5311_v37  ;;  %v5371_v0 = vmax.f32 %v5309_v41, 0.0 }
0x1706   : > { %v5374_v2 = vmax.f32 %v5320_v47, 0.0 }
0x1707   : > { %v5372_v18 = vmax.f32 %v5312_v1, 0.0 }
0x1708   : > { %v5390_v61 = vpack.c.bf16 %v5374_v2, %v5373_v16 }
0x1709   : > { %v5389_v53 = vpack.c.bf16 %v5372_v18, %v5371_v0  ;;  %v6647_v4 = vpop.f32.mrb[84].mxu1 }
0x170a   : > { %v5333_v59 = vadd.f32 %v6647_v4, %v6248_v50  ;;  %v5324_v42 = vpop.f32.mrb[85].mxu1 }
0x170b   : > { %v5325_v28 = vadd.f32 %v6248_v50, %v5324_v42  ;;  %v6648_v20 = vpop.f32.mrb[86].mxu1  ;;  %6659 = vmatprep.mubr.msk.bf16.mxu0 %vm5410_vm12, %v5389_v53 }
0x170c   : > { %v5336_v40 = vadd.f32 %v6648_v20, %v6248_v50  ;;  %v5327_v25 = vpop.f32.mrb[87].mxu1  ;;  %6660 = vmatmul.mubr.msk.bf16.vlgmr.msra.gmra.mrb[80].mxu0 %vm5410_vm12, %v5390_v61  ;;  %v5377_v49 = vmax.f32 %v5333_v59, 0.0 }
0x170d   : > { %v5328_v31 = vadd.f32 %v6248_v50, %v5327_v25  ;;  %v5375_v7 = vmax.f32 %v5325_v28, 0.0 }
0x170e   : > { %v5378_v29 = vmax.f32 %v5336_v40, 0.0 }
0x170f   : > { %v5376_v48 = vmax.f32 %v5328_v31, 0.0 }
0x1710   : > { %v5392_v58 = vpack.c.bf16 %v5378_v29, %v5377_v49 }
0x1711   : > { %v5391_v43 = vpack.c.bf16 %v5376_v48, %v5375_v7  ;;  %v6651_v45 = vpop.f32.mrb[88].mxu1 }
0x1712   : > { %v5349_v14 = vadd.f32 %v6651_v45, %v6248_v50  ;;  %v5340_v27 = vpop.f32.mrb[89].mxu1 }
0x1713   : > { %v5341_v6 = vadd.f32 %v6248_v50, %v5340_v27  ;;  %v6652_v21 = vpop.f32.mrb[90].mxu1  ;;  %6663 = vmatprep.mubr.msk.bf16.mxu0 %vm5410_vm12, %v5391_v43 }
0x1714   : > { %v5352_v57 = vadd.f32 %v6652_v21, %v6248_v50  ;;  %v5343_v22 = vpop.f32.mrb[91].mxu1  ;;  %6664 = vmatmul.mubr.msk.bf16.gmra.mrb[84].mxu0 %vm5410_vm12, %v5392_v58  ;;  %v5381_v23 = vmax.f32 %v5349_v14, 0.0 }
0x1715   : > { %v5344_v36 = vadd.f32 %v6248_v50, %v5343_v22  ;;  %v5379_v8 = vmax.f32 %v5341_v6, 0.0 }
0x1716   : > { %v5382_v39 = vmax.f32 %v5352_v57, 0.0 }
0x1717   : > { %v5380_v30 = vmax.f32 %v5344_v36, 0.0 }
0x1718   : > { %v5394_v12 = vpack.c.bf16 %v5382_v39, %v5381_v23 }
0x1719   : > { %v5393_v52 = vpack.c.bf16 %v5380_v30, %v5379_v8  ;;  %v6655_v54 = vpop.f32.mrb[92].mxu1 }
0x171a   : > { %v5365_v24 = vadd.f32 %v6655_v54, %v6248_v50  ;;  %v5356_v3 = vpop.f32.mrb[93].mxu1 }
0x171b   : > { %v5357_v5 = vadd.f32 %v6248_v50, %v5356_v3  ;;  %v6656_v55 = vpop.f32.mrb[94].mxu1  ;;  %6667 = vmatprep.mubr.msk.bf16.mxu0 %vm5410_vm12, %v5393_v52 }
0x171c   : > { %v5368_v46 = vadd.f32 %v6656_v55, %v6248_v50  ;;  %v5359_v56 = vpop.f32.mrb[95].mxu1  ;;  %6668 = vmatmul.mubr.msk.bf16.gmra.mrb[88].mxu0 %vm5410_vm12, %v5394_v12  ;;  %v5385_v38 = vmax.f32 %v5365_v24, 0.0 }
0x171d   : > { %v5360_v15 = vadd.f32 %v6248_v50, %v5359_v56  ;;  %v5383_v35 = vmax.f32 %v5357_v5, 0.0 }
0x171e   : > { %v5386_v19 = vmax.f32 %v5368_v46, 0.0 }
0x171f   : > { %v5384_v63 = vmax.f32 %v5360_v15, 0.0 }
0x1720   : > { %v5396_v26 = vpack.c.bf16 %v5386_v19, %v5385_v38 }
0x1721   : > { %v5395_v32 = vpack.c.bf16 %v5384_v63, %v5383_v35 }
0x1723   : > { %6671 = vmatprep.mubr.msk.bf16.mxu0 %vm5410_vm12, %v5395_v32 }
0x1724   : > { %6672 = vmatmul.mubr.msk.bf16.gmra.mrb[92].mxu0 %vm5410_vm12, %v5396_v26 }
0x17df   : > { %v6661_v44 = vpop.f32.mrb[80].mxu0 }
0x17e0   : > { %v5478_v9 = vadd.f32 %v6661_v44, %v10558_v62  ;;  %v5469_v13 = vpop.f32.mrb[81].mxu0 }
0x17e1   : > { %v5470_v50 = vadd.f32 %v10558_v62, %v5469_v13  ;;  %v6662_v17 = vpop.f32.mrb[82].mxu0 }
0x17e2   : > { %v5534_v51 = vmax.f32 %v5478_v9, 0.0  ;;  %v5481_v34 = vadd.f32 %v6662_v17, %v10558_v62  ;;  %v5472_v41 = vpop.f32.mrb[83].mxu0 }
0x17e3   : > { %v5532_v60 = vmax.f32 %v5470_v50, 0.0  ;;  %v5473_v47 = vadd.f32 %v10558_v62, %v5472_v41 }
0x17e4   : > { %v5557_v37 = vmul.f32 %v10561_v33, %v5534_v51  ;;  %v5535_v2 = vmax.f32 %v5481_v34, 0.0 }
0x17e5   : > { %v5533_v1 = vmax.f32 %v5473_v47, 0.0  ;;  %v5555_v16 = vmul.f32 %v10561_v33, %v5532_v60 }
0x17e6   : > { %v5577_v0 = vsel %vm5410_vm12, %v5557_v37, 0.0  ;;  %v5558_v28 = vmul.f32 %v10561_v33, %v5535_v2 }
0x17e7   : > { %v5556_v18 = vmul.f32 %v10561_v33, %v5533_v1  ;;  %5578 = vadd.xlane.f32.xlu0 %v5577_v0  ;;  %v6665_v61 = vpop.f32.mrb[84].mxu0  ;;  %v5571_v31 = vsel %vm5410_vm12, %v5555_v16, 0.0 }
0x17e8   : > { %v5494_v53 = vadd.f32 %v6665_v61, %v10558_v62  ;;  %v5485_v4 = vpop.f32.mrb[85].mxu0  ;;  %v5580_v48 = vsel %vm5410_vm12, %v5558_v28, 0.0 }
0x17e9   : > { %v6666_v59 = vpop.f32.mrb[86].mxu0  ;;  %v5574_v42 = vsel %vm5410_vm12, %v5556_v18, 0.0  ;;  %v5486_v40 = vadd.f32 %v10558_v62, %v5485_v4 }
0x17ea   : > { %v5538_v20 = vmax.f32 %v5494_v53, 0.0  ;;  %5575 = vadd.xlane.f32.xlu1 %v5574_v42  ;;  %v5488_v25 = vpop.f32.mrb[87].mxu0  ;;  %v5497_v49 = vadd.f32 %v6666_v59, %v10558_v62 }
0x17eb   : > { %5572 = vadd.xlane.f32.xlu0 %v5571_v31  ;;  %v5536_v7 = vmax.f32 %v5486_v40, 0.0  ;;  %v5489_v27 = vadd.f32 %v10558_v62, %v5488_v25 }
0x17ec   : > { %v5561_v29 = vmul.f32 %v10561_v33, %v5538_v20  ;;  %v5539_v14 = vmax.f32 %v5497_v49, 0.0 }
0x17ed   : > { %v5559_v21 = vmul.f32 %v10561_v33, %v5536_v7  ;;  %v5537_v52 = vmax.f32 %v5489_v27, 0.0 }
0x17ee   : > { %v5589_v23 = vsel %vm5410_vm12, %v5561_v29, 0.0  ;;  %v5562_v12 = vmul.f32 %v10561_v33, %v5539_v14 }
0x17ef   : > { %5581 = vadd.xlane.f32.xlu0 %v5580_v48  ;;  %v6669_v58 = vpop.f32.mrb[88].mxu0  ;;  %v5583_v5 = vsel %vm5410_vm12, %v5559_v21, 0.0  ;;  %v5560_v38 = vmul.f32 %v10561_v33, %v5537_v52 }
0x17f0   : > { %v5510_v43 = vadd.f32 %v6669_v58, %v10558_v62  ;;  %v5501_v45 = vpop.f32.mrb[89].mxu0  ;;  %v5592_v63 = vsel %vm5410_vm12, %v5562_v12, 0.0 }
0x17f1   : > { %v6670_v6 = vpop.f32.mrb[90].mxu0  ;;  %v5502_v54 = vadd.f32 %v10558_v62, %v5501_v45  ;;  %v5586_v50 = vsel %vm5410_vm12, %v5560_v38, 0.0 }
0x17f2   : > { %v5542_v57 = vmax.f32 %v5510_v43, 0.0  ;;  %v5513_v22 = vadd.f32 %v6670_v6, %v10558_v62  ;;  %v5504_v36 = vpop.f32.mrb[91].mxu0 }
0x17f3   : > { %v5505_v39 = vadd.f32 %v10558_v62, %v5504_v36  ;;  %5590 = vadd.xlane.f32.xlu0 %v5589_v23  ;;  %v5540_v19 = vmax.f32 %v5502_v54, 0.0 }
0x17f4   : > { %v5565_v8 = vmul.f32 %v10561_v33, %v5542_v57  ;;  %v5543_v30 = vmax.f32 %v5513_v22, 0.0 }
0x17f5   : > { %v5541_v3 = vmax.f32 %v5505_v39, 0.0  ;;  %v5563_v13 = vmul.f32 %v10561_v33, %v5540_v19 }
0x17f6   : > { %v5566_v24 = vmul.f32 %v10561_v33, %v5543_v30  ;;  %v5601_v55 = vsel %vm5410_vm12, %v5565_v8, 0.0 }
0x17f7   : > { %5584 = vadd.xlane.f32.xlu0 %v5583_v5  ;;  %5602 = vadd.xlane.f32.xlu1 %v5601_v55  ;;  %v6673_v46 = vpop.f32.mrb[92].mxu0  ;;  %v5564_v26 = vmul.f32 %v10561_v33, %v5541_v3  ;;  %v5595_v60 = vsel %vm5410_vm12, %v5563_v13, 0.0 }
0x17f8   : > { %v5526_v56 = vadd.f32 %v6673_v46, %v10558_v62  ;;  %v5517_v15 = vpop.f32.mrb[93].mxu0  ;;  %v5604_v9 = vsel %vm5410_vm12, %v5566_v24, 0.0 }
0x17f9   : > { %v6674_v35 = vpop.f32.mrb[94].mxu0  ;;  %v5518_v11 = vadd.f32 %v10558_v62, %v5517_v15  ;;  %v5598_v41 = vsel %vm5410_vm12, %v5564_v26, 0.0 }
0x17fa   : > { %v5546_v32 = vmax.f32 %v5526_v56, 0.0  ;;  %v5520_v44 = vpop.f32.mrb[95].mxu0  ;;  %v5529_v37 = vadd.f32 %v6674_v35, %v10558_v62 }
0x17fb   : > { %5593 = vadd.xlane.f32.xlu0 %v5592_v63  ;;  %5605 = vadd.xlane.f32.xlu1 %v5604_v9  ;;  %v5544_v51 = vmax.f32 %v5518_v11, 0.0  ;;  %v5521_v34 = vadd.f32 %v10558_v62, %v5520_v44  ;;  %v6270_v62 = vld [vmem:[#allocation2] ss:$0 sm:$0xff] }
0x17fc   : > { %v5569_v17 = vmul.f32 %v10561_v33, %v5546_v32  ;;  %v5547_v2 = vmax.f32 %v5529_v37, 0.0 }
0x17fd   : > { %v5567_v47 = vmul.f32 %v10561_v33, %v5544_v51  ;;  %v5545_v1 = vmax.f32 %v5521_v34, 0.0 }
0x17fe   : > { %v5613_v16 = vsel %vm5410_vm12, %v5569_v17, 0.0  ;;  %v5570_v61 = vmul.f32 %v10561_v33, %v5547_v2 }
0x17ff   : > { %5587 = vadd.xlane.f32.xlu0 %v5586_v50  ;;  %5599 = vadd.xlane.f32.xlu1 %v5598_v41  ;;  %v5568_v0 = vmul.f32 %v10561_v33, %v5545_v1  ;;  %v5607_v18 = vsel %vm5410_vm12, %v5567_v47, 0.0 }
0x1800   : > { %v5616_v4 = vsel %vm5410_vm12, %v5570_v61, 0.0 }
0x1801   : > { %v5610_v53 = vsel %vm5410_vm12, %v5568_v0, 0.0 }
0x1803   : > { %5596 = vadd.xlane.f32.xlu0 %v5595_v60  ;;  %5614 = vadd.xlane.f32.xlu1 %v5613_v16 }
0x1807   : > { %5608 = vadd.xlane.f32.xlu1 %v5607_v18 }
0x180b   : > { %5611 = vadd.xlane.f32.xlu1 %v5610_v53 }
0x180f   : > { %5617 = vadd.xlane.f32.xlu1 %v5616_v4 }
0x1819   : > { %5626 = vperm.xlu0 %6966, %v6270_v62  }
0x1874   : > { %v5579_v59 = vpop.xlane.xlu0 %5578 }
0x1877   : > { %v5576_v20 = vpop.xlane.xlu1 %5575 }
0x1878   : > { %v5573_v42 = vpop.xlane.xlu0 %5572 }
0x187c   : > { %v5582_v28 = vpop.xlane.xlu0 %5581 }
0x1880   : > { %v5591_v40 = vpop.xlane.xlu0 %5590 }
0x1884   : > { %v5585_v25 = vpop.xlane.xlu0 %5584  ;;  %v5603_v31 = vpop.xlane.xlu1 %5602 }
0x1888   : > { %v5594_v49 = vpop.xlane.xlu0 %5593  ;;  %v5606_v29 = vpop.xlane.xlu1 %5605 }
0x188c   : > { %v5600_v7 = vpop.xlane.xlu1 %5599  ;;  %v5588_v48 = vpop.xlane.xlu0 %5587 }
0x1890   : > { %v5615_v33 = vpop.xlane.xlu1 %5614  ;;  %v5597_v58 = vpop.xlane.xlu0 %5596 }
0x1894   : > { %v5609_v43 = vpop.xlane.xlu1 %5608 }
0x1898   : > { %v5627_v45 = vpop.permute.xlu0 %5626  ;;  %v5612_v14 = vpop.xlane.xlu1 %5611 }
0x1899   : > { %v5637_v27 = vadd.f32 %v5627_v45, %v5597_v58  ;;  %v5638_v6 = vadd.f32 %v5627_v45, %v5600_v7  ;;  %v5639_v21 = vadd.f32 %v5627_v45, %v5603_v31  ;;  %v5640_v57 = vadd.f32 %v5627_v45, %v5606_v29 }
0x189a   : > { %v5641_v22 = vadd.f32 %v5627_v45, %v5609_v43  ;;  %v5642_v36 = vadd.f32 %v5627_v45, %v5612_v14  ;;  %v5643_v23 = vadd.f32 %v5627_v45, %v5615_v33  ;;  %v5629_v12 = vadd.f32 %v5627_v45, %v5573_v42 }
0x189b   : > { %v5696_v39 = vrot.slane %v5637_v27, %v8820_v10  ;;  %v5700_v8 = vrot.slane %v5638_v6, %v8820_v10  ;;  %v5704_v30 = vrot.slane %v5639_v21, %v8820_v10  ;;  %v5630_v54 = vadd.f32 %v5627_v45, %v5576_v20 }
0x189c   : > { %v5618_v52 = vpop.xlane.xlu1 %5617  ;;  %v5708_v24 = vrot.slane %v5640_v57, %v8820_v10  ;;  %v5631_v55 = vadd.f32 %v5627_v45, %v5579_v59  ;;  %v5712_v46 = vrot.slane %v5641_v22, %v8820_v10  ;;  %v5716_v15 = vrot.slane %v5642_v36, %v8820_v10 }
0x189d   : > { %v5732_v3 = vsel %vm2036_vm2, %v5700_v8, %v5696_v39  ;;  %v5644_v5 = vadd.f32 %v5627_v45, %v5618_v52  ;;  %v5632_v38 = vadd.f32 %v5627_v45, %v5582_v28  ;;  %v5720_v35 = vrot.slane %v5643_v23, %v8820_v10 }
0x189e   : > { %v5733_v56 = vsel %vm2038_vm3, %v5704_v30, %v5732_v3  ;;  %v5633_v63 = vadd.f32 %v5627_v45, %v5585_v25  ;;  %v5664_v26 = vrot.slane %v5629_v12, %v8820_v10  ;;  %v5634_v11 = vadd.f32 %v5627_v45, %v5588_v48 }
0x189f   : > { %v5734_v19 = vsel %vm2040_vm4, %v5708_v24, %v5733_v56  ;;  %v5668_v44 = vrot.slane %v5630_v54, %v8820_v10  ;;  %v5672_v9 = vrot.slane %v5631_v55, %v8820_v10  ;;  %v5724_v50 = vrot.slane %v5644_v5, %v8820_v10 }
0x18a0   : > { %v5735_v32 = vsel %vm2042_vm6, %v5712_v46, %v5734_v19  ;;  %v5635_v17 = vadd.f32 %v5627_v45, %v5591_v40  ;;  %v5636_v34 = vadd.f32 %v5627_v45, %v5594_v49  ;;  %v5676_v41 = vrot.slane %v5632_v38, %v8820_v10 }
0x18a1   : > { %v5736_v13 = vsel %vm2044_vm7, %v5716_v15, %v5735_v32  ;;  %v5725_v60 = vsel %vm2036_vm2, %v5668_v44, %v5664_v26  ;;  %v5680_v37 = vrot.slane %v5633_v63, %v8820_v10  ;;  %v5684_v16 = vrot.slane %v5634_v11, %v8820_v10 }
0x18a2   : > { %v5737_v51 = vsel %vm2046_vm8, %v5720_v35, %v5736_v13  ;;  %v5726_v1 = vsel %vm2038_vm3, %v5672_v9, %v5725_v60  ;;  %v5688_v0 = vrot.slane %v5635_v17, %v8820_v10  ;;  %v5692_v61 = vrot.slane %v5636_v34, %v8820_v10 }
0x18a3   : > { %v5738_v47 = vsel %vm2048_vm9, %v5724_v50, %v5737_v51  ;;  %v5727_v2 = vsel %vm2040_vm4, %v5676_v41, %v5726_v1 }
0x18a4   : > { %5742 = vst.msk [vmem:[%s1110_s24 + $0x8] sm:$0xff] %vm2054_vm10, %v5738_v47  ;;  %v5728_v18 = vsel %vm2042_vm6, %v5680_v37, %v5727_v2 }
0x18a5   : > { %v5729_v53 = vsel %vm2044_vm7, %v5684_v16, %v5728_v18 }
0x18a6   : > { %v5730_v4 = vsel %vm2046_vm8, %v5688_v0, %v5729_v53 }
0x18a7   : > { %v5731_v62 = vsel %vm2048_vm9, %v5692_v61, %v5730_v4 }
0x18a8   : > { %5741 = vst.msk [vmem:[%s1110_s24] sm:$0xff] %vm2054_vm10, %v5731_v62 }
0x18a9   : > { %7863 = shalt.err (!%p7860_p3)
}
0x18aa   : > { %s7864_s30 = scalar_lea.hbm %s10645_s2, 256  ;;  %s7868_s9 = scalar_lea.hbm %s10884_s28, 512 }
0x18ab   : > { %p7865_p5 = scmp.ne.s32.totalorder %s10645_s2, %s7864_s30  ;;  %p7869_p4 = scmp.lt.u32.totalorder %s10645_s2, %s10884_s28 }
0x18ac   : > { %p7870_p12 = scmp.lt.u32.totalorder %s7868_s9, %s7864_s30  ;;  %p7872_p13 = scmp.lt.u32.totalorder %s7864_s30, %s10645_s2 }
0x18ad   : > { %p7866_p9 = pnand %p7865_p5, %p10885_p0 }
0x18ae   : > { %p7871_p1 = por %p7870_p12, %p7869_p4 }
0x18af   : > { %p7867_p7 = pneg %p7866_p9 }
0x18b0   : > { %p7873_p2 = por %p7872_p13, %p7871_p1 }
0x18b2   : > { %p7874_p8 = pnand %p7873_p2, %p7867_p7 }
0x18b4   : > { %7877 = shalt.err (!%p7874_p8)
}
0x18b5   : > { %s8003_s3 = smov 128   ;;  %s8004_s13 = smov 8  }
0x18b6   : > { %6769 = dma.vmem_to_hbm [thread:$0]  (%p10885_p0), %s10647_s8, 256, %s10645_s2, %s5744_s6, %s8003_s3, %s8003_s3, %s8004_s13  }
0x18b7 PF: > { %s10886_s24 = sld [smem:[#allocation56_spill]]  ;;  %s10887_s4 = sld [smem:[#allocation59_spill]] }
0x18b8   : > { %p10888_p6 = scmp.ne.s32.totalorder %s10830_s15, 0 }
0x18bd   : > { %s5772_s5 = sand.u32 1, %s10886_s24   ;;  %p10889_p10 = scmp.ge.s32.totalorder %s10887_s4, 2 }
0x18be   : > { %s5773_s30 = scalar_lea.sflag [#allocation5], %s5772_s5 }
0x18bf   : > { %p6846_p11 = pnand %p10889_p10, %p10888_p6 }
0x18c1   : > { %7947 = dma.done.wait (!%p6846_p11), %s5773_s30, 256  }
0x18c2   : > { %7949 = vsyncadd (!%p6846_p11), %s5773_s30, 4294967040  ;;  %s10890_s6 = sld [smem:[#allocation57_spill]]  ;;  %s10891_s24 = sld [smem:[#allocation58_spill]] }
0x18c3   : > { %p52_p3 = scmp.ge.s32.totalorder %s8677_s7, 4   ;;  %s10892_s30 = smov %s8689_s11 }
0x18c5   :  { %54 = sbr.rel (!%p52_p3) target bundleno = 34 (0x22), region = 267 }
0x18cc   :  { %5778 = vsyncpa [#allocation4], 1 }
0x18cd   :  { %5780 = vsyncpa [#allocation4 + $0x1], 1 }
0x18ce   :  { %5781 = vsyncpa [#allocation7], 1 }
0x18cf   :  { %5782 = vsyncpa [#allocation10], 1 }
0x18d0   :  { %5783 = vsyncpa [#allocation13], 1 }
0x18d1   :  { %5784 = vsyncpa [#allocation16], 1 }
0x18d2   :  { %5785 = vsyncpa [#allocation19], 1 }
0x18d3   :  { %5786 = vsyncpa [#allocation22], 1 }
0x18d4   :  { %5787 = vsyncpa [#allocation25], 1 }
0x18d5   :  { %5788 = vsyncpa [#allocation28], 1 }
0x18d6   :  { %5789 = vsyncpa [#allocation31], 1 }
0x18d7   :  { %5790 = vsyncpa [#allocation34], 1 }
0x18d8   :  { %5791 = vsyncpa [#allocation37], 1 }
0x18d9   :  { %5792 = vsyncpa [#allocation40], 1 }
0x18da   :  { %5793 = vsyncpa [#allocation5], 1 }
0x18db   :  { %5795 = vsyncpa [#allocation5 + $0x1], 1 }

</bundles_post_ra>
